<compile_context>
chip_gen: v7x
topology: tpu7x:2x2x1
jax: 0.10.0
libtpu: 0.0.40
codegen_flags: <defaults>
</compile_context>

<pallas_src>
import functools
import math

import jax
import jax.numpy as jnp
from jax import lax
from jax.experimental import pallas as pl
from jax.experimental.pallas import tpu as pltpu

_EPS = 1e-5  # LayerNorm / BatchNorm1d eps (PyTorch defaults)


def _device_vmem_bytes():
    try:
        info = pltpu.get_tpu_info()
        cap = int(getattr(info, "vmem_capacity_bytes", 0))
        if cap > 0:
            return cap
    except Exception:
        pass
    return 128 * 1024 * 1024  # v5e / v6e default


_VMEM_CAP = _device_vmem_bytes()
# ~40 MiB on v7x (64 MiB physical per core), ~96 MiB on v5e/v6e (128 MiB physical).
_VMEM_LIMIT = max(32 * 1024 * 1024,
                  min(_VMEM_CAP - 24 * 1024 * 1024, 96 * 1024 * 1024))
_BIG_VMEM = _VMEM_CAP >= 100 * 1024 * 1024
_TQ_TARGET = 512 if _BIG_VMEM else 256     # attention query-tile target
_TL_TARGET = 512                           # pointwise (FFN / QKV / conv) tile target


# ----------------------------- shared in-kernel helpers -----------------------------
def _layer_norm(x, gamma, beta, eps=_EPS):
    # x: (L, C); gamma/beta: (1, C).  Matches torch.nn.LayerNorm (biased variance).
    mean = jnp.mean(x, axis=-1, keepdims=True)
    var = jnp.mean(jnp.square(x - mean), axis=-1, keepdims=True)
    return (x - mean) * lax.rsqrt(var + eps) * gamma + beta


def _silu(x):
    return x * jax.nn.sigmoid(x)


def _pick_tile(n, target):
    """Largest multiple-of-8 divisor of n that is <= target, else n (full block).

    NOTE: for awkward n this silently falls back to a full-length block (可 blow the
    VMEM budget for very long, prime-ish L); callers keep per-block footprints modest.
    """
    if n <= target:
        return n
    t = (target // 8) * 8
    while t >= 8:
        if n % t == 0:
            return t
        t -= 8
    return n


def _round_up(n, m):
    return ((n + m - 1) // m) * m


# ---------------- LN -> Linear -> SiLU -> Linear (+0.5x residual) [+ final LN] ----------------
def _ffn_kernel(x_ref, g_ref, b_ref, w1_ref, b1_ref, w2_ref, b2_ref, *rest):
    o_ref = rest[-1]
    x = x_ref[0]                                                       # (TL, C) f32
    xn = _layer_norm(x, g_ref[...], b_ref[...])
    h = _silu(jnp.dot(xn.astype(jnp.bfloat16), w1_ref[...],
                      preferred_element_type=jnp.float32) + b1_ref[...])
    y = x + 0.5 * (jnp.dot(h.astype(jnp.bfloat16), w2_ref[...],
                           preferred_element_type=jnp.float32) + b2_ref[...])
    if len(rest) == 3:                                                 # fused trailing norm2
        y = _layer_norm(y, rest[0][...], rest[1][...])
    o_ref[0] = y


def ffn_block(x, pp, final_ln=None):
    B, L, C = x.shape
    F = pp["w1"].shape[1]
    TL = _pick_tile(L, _TL_TARGET)
    specs = [
        pl.BlockSpec((1, TL, C), lambda b, t: (b, t, 0)),
        pl.BlockSpec((1, C), lambda b, t: (0, 0)),
        pl.BlockSpec((1, C), lambda b, t: (0, 0)),
        pl.BlockSpec((C, F), lambda b, t: (0, 0)),
        pl.BlockSpec((1, F), lambda b, t: (0, 0)),
        pl.BlockSpec((F, C), lambda b, t: (0, 0)),
        pl.BlockSpec((1, C), lambda b, t: (0, 0)),
    ]
    args = [x, pp["ln_g"].reshape(1, C), pp["ln_b"].reshape(1, C),
            pp["w1"].astype(jnp.bfloat16), pp["b1"].reshape(1, F),
            pp["w2"].astype(jnp.bfloat16), pp["b2"].reshape(1, C)]
    if final_ln is not None:
        g2, b2 = final_ln
        specs += [pl.BlockSpec((1, C), lambda b, t: (0, 0)),
                  pl.BlockSpec((1, C), lambda b, t: (0, 0))]
        args += [g2.reshape(1, C), b2.reshape(1, C)]
    return pl.pallas_call(
        _ffn_kernel,
        out_shape=jax.ShapeDtypeStruct((B, L, C), x.dtype),
        grid=(B, L // TL),
        in_specs=specs,
        out_specs=pl.BlockSpec((1, TL, C), lambda b, t: (b, t, 0)),
        compiler_params=pltpu.CompilerParams(
            dimension_semantics=("parallel", "parallel"),
            vmem_limit_bytes=_VMEM_LIMIT),
    )(*args)


# ---------------- MHA kernel A: norm1 + in_proj -> bf16 q / k / v ----------------
def _ln_qkv_kernel(x_ref, g_ref, b_ref, w_ref, q_ref, k_ref, v_ref):
    x = x_ref[0]                                                       # (TL, C) f32
    C = x.shape[-1]
    xn = _layer_norm(x, g_ref[...], b_ref[...])
    # in_proj (no bias); weight columns pre-ordered [q | k | v] (head-major inside each)
    proj = jnp.dot(xn.astype(jnp.bfloat16), w_ref[...],
                   preferred_element_type=jnp.float32)                 # (TL, 3C)
    q_ref[0] = proj[:, :C].astype(q_ref.dtype)
    k_ref[0] = proj[:, C:2 * C].astype(k_ref.dtype)
    v_ref[0] = proj[:, 2 * C:].astype(v_ref.dtype)


# ---------------- MHA kernel B: scores + fused rel_shift + softmax + ctx + out_proj ----------------
def _attn_kernel(q_ref, k_ref, v_ref, pk_ref, bu_ref, bv_ref, xr_ref, wo_ref, bo_ref,
                 o_ref, attn_ref, *, nheads, scale, seq_len, q_tiles):
    C = q_ref.shape[-1]
    hd = C // nheads
    L = seq_len
    P_pad = pk_ref.shape[1]
    TQ = q_ref.shape[1]

    q = q_ref[0].astype(jnp.float32)                                   # (TQ, C)
    # fold the 1/sqrt(embed_dim) scale into the two biased queries (per perf review)
    qu = ((q + bu_ref[...]) * scale).astype(jnp.bfloat16)
    qv = ((q + bv_ref[...]) * scale).astype(jnp.bfloat16)
    k = k_ref[0]                                                       # (L, C) bf16
    v = v_ref[0]                                                       # (L, C) bf16

    ctx_parts = []
    for h in range(nheads):
        cs = slice(h * hd, (h + 1) * hd)
        ac = lax.dot_general(qu[:, cs], k[:, cs], (((1,), (1,)), ((), ())),
                             preferred_element_type=jnp.float32)       # (TQ, L)
        bd = lax.dot_general(qv[:, cs], pk_ref[h], (((1,), (1,)), ((), ())),
                             preferred_element_type=jnp.float32)       # (TQ, P_pad)
        # RelPosMHAXL rel_shift fused in-kernel: query row i needs bd columns starting
        # at (L-1-i).  p_k was padded with one leading zero row and P_pad is a multiple
        # of 128, so row r of this tile needs a right-rotation of (P_pad - L) + r
        # (+ tile offset), applied as a strided lane roll (XLU, no HBM round trip).
        bd = pltpu.roll(bd, P_pad - L, 1, stride=1, stride_axis=0)
        if q_tiles > 1:
            bd = pltpu.roll(bd, pl.program_id(1) * TQ, 1)
        s = ac + bd[:, :L]                                             # (TQ, L)
        m = jnp.max(s, axis=-1, keepdims=True)
        p = jnp.exp(s - m)
        denom = jnp.sum(p, axis=-1, keepdims=True)
        # NOTE: approx reciprocal -> attention rows sum to 1 +- ~1e-3 (inference-grade).
        attn = p * pl.reciprocal(denom, approx=True)
        attn_ref[0, h] = attn.astype(attn_ref.dtype)                   # bf16 HBM write
        ctx_parts.append(jnp.dot(attn.astype(jnp.bfloat16), v[:, cs],
                                 preferred_element_type=jnp.float32))  # (TQ, hd)
    # single out_proj matmul over the concatenated heads (contraction = C, not hd)
    ctx = jnp.concatenate(ctx_parts, axis=-1).astype(jnp.bfloat16)     # (TQ, C)
    o_ref[0] = xr_ref[0] + bo_ref[...] + jnp.dot(
        ctx, wo_ref[...], preferred_element_type=jnp.float32)


def mha_block(x, pos_embs, params):
    """norm1 -> RelPosMHAXL(x, x, x, pos_embs) -> + x.  Returns (out, attn[bf16])."""
    B, L, C = x.shape
    H = params["nhead"]
    hd = C // H
    assert H * hd == C
    P = pos_embs.shape[1]
    assert P == 2 * L - 1, "pos_embs must be (1, 2L-1, C)"
    scale = 1.0 / math.sqrt(C)            # RelPosMHAXL scales by 1/sqrt(embed_dim)

    # linear_pos is tiny ((2L-1, C) @ (C, C)); compute in XLA, lay out per head and pad
    # with one leading zero row + zero tail so P_pad is a multiple of 128 (used by the
    # in-kernel rel-shift roll and keeps the bd matmul lane-dense).
    p_k = (pos_embs[0].astype(jnp.float32) @ params["pos_w"]).reshape(P, H, hd)
    p_k = jnp.transpose(p_k, (1, 0, 2))                                # (H, P, hd)
    P_pad = _round_up(P + 1, 128)
    p_k = jnp.pad(p_k, ((0, 0), (1, P_pad - P - 1), (0, 0))).astype(jnp.bfloat16)

    # Kernel A: norm1 + in_proj -> bf16 q / k / v (halves the largest HBM intermediates)
    TL = _pick_tile(L, _TL_TARGET)
    qkv_sds = jax.ShapeDtypeStruct((B, L, C), jnp.bfloat16)
    q, k, v = pl.pallas_call(
        _ln_qkv_kernel,
        out_shape=(qkv_sds, qkv_sds, qkv_sds),
        grid=(B, L // TL),
        in_specs=[
            pl.BlockSpec((1, TL, C), lambda b, t: (b, t, 0)),
            pl.BlockSpec((1, C), lambda b, t: (0, 0)),
            pl.BlockSpec((1, C), lambda b, t: (0, 0)),
            pl.BlockSpec((C, 3 * C), lambda b, t: (0, 0)),
        ],
        out_specs=(pl.BlockSpec((1, TL, C), lambda b, t: (b, t, 0)),
                   pl.BlockSpec((1, TL, C), lambda b, t: (b, t, 0)),
                   pl.BlockSpec((1, TL, C), lambda b, t: (b, t, 0))),
        compiler_params=pltpu.CompilerParams(
            dimension_semantics=("parallel", "parallel"),
            vmem_limit_bytes=_VMEM_LIMIT),
    )(x, params["norm1_g"].reshape(1, C), params["norm1_b"].reshape(1, C),
      params["in_proj_w"].astype(jnp.bfloat16))

    # Kernel B: attention with fused rel_shift + fused out_proj + residual.
    TQ = _pick_tile(L, _TQ_TARGET)
    out, attn = pl.pallas_call(
        functools.partial(_attn_kernel, nheads=H, scale=scale, seq_len=L,
                          q_tiles=L // TQ),
        out_shape=(jax.ShapeDtypeStruct((B, L, C), x.dtype),
                   jax.ShapeDtypeStruct((B, H, L, L), jnp.bfloat16)),
        grid=(B, L // TQ),
        in_specs=[
            pl.BlockSpec((1, TQ, C), lambda b, t: (b, t, 0)),      # q tile (bf16)
            pl.BlockSpec((1, L, C), lambda b, t: (b, 0, 0)),       # full K (bf16)
            pl.BlockSpec((1, L, C), lambda b, t: (b, 0, 0)),       # full V (bf16)
            pl.BlockSpec((H, P_pad, hd), lambda b, t: (0, 0, 0)),  # p_k (bf16, resident)
            pl.BlockSpec((1, C), lambda b, t: (0, 0)),             # pos_bias_u (head-major)
            pl.BlockSpec((1, C), lambda b, t: (0, 0)),             # pos_bias_v (head-major)
            pl.BlockSpec((1, TQ, C), lambda b, t: (b, t, 0)),      # residual skip (f32)
            pl.BlockSpec((C, C), lambda b, t: (0, 0)),             # out_proj weight (bf16)
            pl.BlockSpec((1, C), lambda b, t: (0, 0)),             # out_proj bias
        ],
        out_specs=(pl.BlockSpec((1, TQ, C), lambda b, t: (b, t, 0)),
                   pl.BlockSpec((1, H, TQ, L), lambda b, t: (b, 0, t, 0))),
        compiler_params=pltpu.CompilerParams(
            dimension_semantics=("parallel", "parallel"),
            vmem_limit_bytes=_VMEM_LIMIT),
    )(q, k, v, p_k,
      params["pos_bias_u"].reshape(1, C), params["pos_bias_v"].reshape(1, C),
      x, params["out_proj_w"].astype(jnp.bfloat16), params["out_proj_b"].reshape(1, C))
    return out, attn


# ----------------------------- Conformer convolution module -----------------------------
def _ln_glu(x, g, b, wb, bb):
    """LayerNorm -> 1x1 conv (C->2C) -> GLU, all rows independent."""
    C = x.shape[-1]
    xn = _layer_norm(x, g, b)
    ab = jnp.dot(xn.astype(jnp.bfloat16), wb,
                 preferred_element_type=jnp.float32) + bb              # (rows, 2C)
    return ab[:, :C] * jax.nn.sigmoid(ab[:, C:])


def _depthwise_bn_silu_proj(z_scratch, x, wd_ref, wdb_ref, bns_ref, bnb_ref,
                            w2_ref, b2_ref, o_ref, *, rows, pad, lo):
    """Depthwise conv (reads z_scratch rows [lo-pad, lo+rows+pad)) -> BN -> SiLU -> 1x1."""
    K = wd_ref.shape[0]

    def tap(kk, acc):
        return acc + z_scratch[pl.ds(lo - pad + kk, rows), :] * wd_ref[pl.ds(kk, 1), :]

    acc0 = jnp.broadcast_to(wdb_ref[...], (rows, x.shape[-1]))         # hoisted bias
    acc = lax.fori_loop(0, K, tap, acc0, unroll=True)                  # fully unrolled
    # TODO(synk): BatchNorm1d uses inference (running) statistics; training-mode batch
    #             statistics across (B, L) are not reproduced here.
    h = _silu(acc * bns_ref[...] + bnb_ref[...])
    y = jnp.dot(h.astype(jnp.bfloat16), w2_ref[...],
                preferred_element_type=jnp.float32) + b2_ref[...]
    o_ref[0] = x + y                                                   # x + conv_module(x)


def _conv_kernel_full(x_ref, g_ref, b_ref, wb_ref, bb_ref, wd_ref, wdb_ref,
                      bns_ref, bnb_ref, w2_ref, b2_ref, o_ref, zp_ref, *, pad, hb):
    x = x_ref[0]                                                       # (L, C)
    Lb, C = x.shape
    z = _ln_glu(x, g_ref[...], b_ref[...], wb_ref[...], bb_ref[...])
    # zero only the halo rows (interior fully overwritten), 8-aligned central store
    zp_ref[pl.ds(hb - pad, pad), :] = jnp.zeros((pad, C), jnp.float32)
    zp_ref[pl.ds(hb + Lb, pad), :] = jnp.zeros((pad, C), jnp.float32)
    zp_ref[pl.ds(hb, Lb), :] = z
    _depthwise_bn_silu_proj(zp_ref, x, wd_ref, wdb_ref, bns_ref, bnb_ref,
                            w2_ref, b2_ref, o_ref, rows=Lb, pad=pad, lo=hb)


def _conv_kernel_tiled(xl_ref, x_ref, xr_ref, g_ref, b_ref, wb_ref, bb_ref, wd_ref,
                       wdb_ref, bns_ref, bnb_ref, w2_ref, b2_ref, o_ref, zp_ref,
                       *, pad, hb):
    t = pl.program_id(1)
    nt = pl.num_programs(1)
    x = x_ref[0]                                                       # (TL, C)
    TLb, C = x.shape
    z = _ln_glu(x, g_ref[...], b_ref[...], wb_ref[...], bb_ref[...])
    # Halos: recompute LN+GLU on 2*hb neighbour rows; zeroed at the sequence edges.
    zl = _ln_glu(xl_ref[0], g_ref[...], b_ref[...], wb_ref[...], bb_ref[...])
    zr = _ln_glu(xr_ref[0], g_ref[...], b_ref[...], wb_ref[...], bb_ref[...])
    zl = zl * (t > 0).astype(jnp.float32)
    zr = zr * (t < nt - 1).astype(jnp.float32)
    zp_ref[pl.ds(0, hb), :] = zl
    zp_ref[pl.ds(hb, TLb), :] = z
    zp_ref[pl.ds(hb + TLb, hb), :] = zr
    _depthwise_bn_silu_proj(zp_ref, x, wd_ref, wdb_ref, bns_ref, bnb_ref,
                            w2_ref, b2_ref, o_ref, rows=TLb, pad=pad, lo=hb)


def conv_module(x, pp):
    B, L, C = x.shape
    K = pp["wd"].shape[0]
    pad = (K - 1) // 2                                                 # non-causal, dilation=1
    hb = _round_up(pad, 8)                                             # 8-aligned halo
    bn_scale = pp["bn_g"] * lax.rsqrt(pp["bn_rv"] + _EPS)
    bn_shift = pp["bn_b"] - pp["bn_rm"] * bn_scale
    common = [pp["ln_g"].reshape(1, C), pp["ln_b"].reshape(1, C),
              pp["wb"].astype(jnp.bfloat16), pp["bb"].reshape(1, 2 * C),
              pp["wd"], pp["wdb"].reshape(1, C),
              bn_scale.reshape(1, C), bn_shift.reshape(1, C),
              pp["w2"].astype(jnp.bfloat16), pp["b2"].reshape(1, C)]
    pshapes = [(1, C), (1, C), (C, 2 * C), (1, 2 * C), (K, C), (1, C),
               (1, C), (1, C), (C, C), (1, C)]

    TL = _pick_tile(L, _TL_TARGET)
    tiled = (TL < L) and (hb <= TL) and (TL % hb == 0) and (L % hb == 0)
    if not tiled:
        # Single full-L block per batch element (short sequences, e.g. the demo).
        return pl.pallas_call(
            functools.partial(_conv_kernel_full, pad=pad, hb=hb),
            out_shape=jax.ShapeDtypeStruct((B, L, C), x.dtype),
            grid=(B,),
            in_specs=[pl.BlockSpec((1, L, C), lambda b: (b, 0, 0))]
                     + [pl.BlockSpec(s, lambda b: (0, 0)) for s in pshapes],
            out_specs=pl.BlockSpec((1, L, C), lambda b: (b, 0, 0)),
            scratch_shapes=[pltpu.VMEM((hb + L + pad, C), jnp.float32)],
            compiler_params=pltpu.CompilerParams(
                dimension_semantics=("parallel",),
                vmem_limit_bytes=_VMEM_LIMIT),
        )(x, *common)

    # L-tiled path with a small recomputed halo (keeps blocks inside v7x VMEM and gives
    # the second TensorCore work when B is small).
    r = TL // hb
    nhb = L // hb
    return pl.pallas_call(
        functools.partial(_conv_kernel_tiled, pad=pad, hb=hb),
        out_shape=jax.ShapeDtypeStruct((B, L, C), x.dtype),
        grid=(B, L // TL),
        in_specs=[
            pl.BlockSpec((1, hb, C), lambda b, t: (b, jnp.maximum(t * r - 1, 0), 0)),
            pl.BlockSpec((1, TL, C), lambda b, t: (b, t, 0)),
            pl.BlockSpec((1, hb, C),
                         lambda b, t: (b, jnp.minimum(t * r + r, nhb - 1), 0)),
        ] + [pl.BlockSpec(s, lambda b, t: (0, 0)) for s in pshapes],
        out_specs=pl.BlockSpec((1, TL, C), lambda b, t: (b, t, 0)),
        scratch_shapes=[pltpu.VMEM((hb + TL + hb, C), jnp.float32)],
        compiler_params=pltpu.CompilerParams(
            dimension_semantics=("parallel", "parallel"),
            vmem_limit_bytes=_VMEM_LIMIT),
    )(x, x, x, *common)


# ----------------------------- full ConformerEncoderLayer -----------------------------
def conformer_encoder_layer(x, pos_embs, params):
    # x = x + 0.5 * ffn_module1(x)
    x = ffn_block(x, params["ffn1"])
    # skip = x; x = norm1(x); x, attn = mha(x, x, x, pos_embs); x = x + skip
    x, attn = mha_block(x, pos_embs, params)
    # x = x + convolution_module(x)      (residual added inside the kernel)
    x = conv_module(x, params["conv"])
    # x = norm2(x + 0.5 * ffn_module2(x))  (norm2 fused into the ffn kernel epilogue)
    x = ffn_block(x, params["ffn2"], final_ln=(params["norm2_g"], params["norm2_b"]))
    return x, attn


# ----------------------------- pure-JAX float32 reference -----------------------------
def _reference_forward(x, pos_embs, p):
    """Mirror of the PyTorch ConformerEncoderLayer forward (same param conventions)."""
    B, L, C = x.shape
    H = p["nhead"]
    hd = C // H

    def ln(v, g, b):
        m = jnp.mean(v, -1, keepdims=True)
        s = jnp.mean(jnp.square(v - m), -1, keepdims=True)
        return (v - m) * lax.rsqrt(s + _EPS) * g + b

    def ffn(v, pp):
        h = jax.nn.silu(ln(v, pp["ln_g"], pp["ln_b"]) @ pp["w1"] + pp["b1"])
        return v + 0.5 * (h @ pp["w2"] + pp["b2"])

    def rel_shift(t):  # exact torch rel_shift: pad / reshape / slice
        Bh, Hh, Lh, Ph = t.shape
        t = jnp.concatenate([jnp.zeros((Bh, Hh, Lh, 1), t.dtype), t], axis=-1)
        t = t.reshape(Bh, Hh, Ph + 1, Lh)[:, :, 1:, :].reshape(Bh, Hh, Lh, Ph)
        return t[..., : Ph // 2 + 1]

    x = ffn(x, p["ffn1"])
    skip = x
    xn = ln(x, p["norm1_g"], p["norm1_b"])
    q, k, v = jnp.split(xn @ p["in_proj_w"], 3, axis=-1)
    q = q.reshape(B, L, H, hd)
    k = k.reshape(B, L, H, hd)
    v = v.reshape(B, L, H, hd)
    p_k = (pos_embs[0] @ p["pos_w"]).reshape(-1, H, hd)                 # (2L-1, H, hd)
    ac = jnp.einsum("blhd,bshd->bhls", q + p["pos_bias_u"], k)
    bd = rel_shift(jnp.einsum("blhd,phd->bhlp", q + p["pos_bias_v"], p_k))
    attn = jax.nn.softmax((ac + bd) / math.sqrt(C), axis=-1)
    ctx = jnp.einsum("bhls,bshd->blhd", attn, v).reshape(B, L, C)
    x = ctx @ p["out_proj_w"] + p["out_proj_b"] + skip

    cp = p["conv"]
    z = ln(x, cp["ln_g"], cp["ln_b"]) @ cp["wb"] + cp["bb"]
    z = z[..., :C] * jax.nn.sigmoid(z[..., C:])
    K = cp["wd"].shape[0]
    pad = (K - 1) // 2
    zp = jnp.pad(z, ((0, 0), (pad, pad), (0, 0)))
    dw = sum(zp[:, kk:kk + L, :] * cp["wd"][kk] for kk in range(K)) + cp["wdb"]
    h = (dw - cp["bn_rm"]) * cp["bn_g"] * lax.rsqrt(cp["bn_rv"] + _EPS) + cp["bn_b"]
    x = x + jax.nn.silu(h) @ cp["w2"] + cp["b2"]
    x = ln(ffn(x, p["ffn2"]), p["norm2_g"], p["norm2_b"])
    return x, attn


# ----------------------------- deterministic parameter init -----------------------------
def init_params(key, d_model, d_ffn, nhead, kernel_size):
    """Random parameters in the kernels' layout.

    Conventions vs. the PyTorch module (pure parameter re-layouts, same math):
      * Linear / 1x1-conv weights stored transposed as (in_features, out_features);
      * in_proj_w (C, 3C) columns ordered [q | k | v] with heads contiguous inside each
        block (PyTorch interleaves (q, k, v) per head - permute when porting weights);
      * pos_bias_u / pos_bias_v stored as (nhead, head_dim);
      * depthwise conv weight stored as (kernel_size, channels).
    """
    C, F, H, K = d_model, d_ffn, nhead, kernel_size
    keys = iter(jax.random.split(key, 32))

    def w(shape, scale=0.05):
        return (scale * jax.random.normal(next(keys), shape)).astype(jnp.float32)

    def ffn_p():
        return dict(ln_g=jnp.ones((C,), jnp.float32), ln_b=jnp.zeros((C,), jnp.float32),
                    w1=w((C, F)), b1=w((F,)), w2=w((F, C)), b2=w((C,)))

    return dict(
        nhead=H,
        ffn1=ffn_p(), ffn2=ffn_p(),
        norm1_g=jnp.ones((C,), jnp.float32), norm1_b=jnp.zeros((C,), jnp.float32),
        norm2_g=jnp.ones((C,), jnp.float32), norm2_b=jnp.zeros((C,), jnp.float32),
        in_proj_w=w((C, 3 * C)),
        pos_w=w((C, C), 0.3),                 # linear_pos weight^T (bias=False)
        out_proj_w=w((C, C)), out_proj_b=w((C,)),
        pos_bias_u=w((H, C // H), 0.3), pos_bias_v=w((H, C // H), 0.3),
        conv=dict(
            ln_g=jnp.ones((C,), jnp.float32), ln_b=jnp.zeros((C,), jnp.float32),
            wb=w((C, 2 * C)), bb=w((2 * C,)),       # bottleneck 1x1 conv: [value | gate]
            wd=w((K, C)), wdb=w((C,)),
            bn_g=jnp.ones((C,), jnp.float32), bn_b=jnp.zeros((C,), jnp.float32),
            bn_rm=jnp.zeros((C,), jnp.float32), bn_rv=jnp.ones((C,), jnp.float32),
            w2=w((C, C)), b2=w((C,)),
        ),
    )


if __name__ == "__main__":
    B, L = 2, 8
    d_model, d_ffn, nhead, kernel_size = 32, 64, 4, 31

    key = jax.random.PRNGKey(0)
    kx, kp, kw = jax.random.split(key, 3)
    x = jax.random.normal(kx, (B, L, d_model), jnp.float32)
    pos_embs = jax.random.normal(kp, (1, 2 * L - 1, d_model), jnp.float32)
    params = init_params(kw, d_model, d_ffn, nhead, kernel_size)

    fwd = jax.jit(lambda xx, pe: conformer_encoder_layer(xx, pe, params))
    out, attn = fwd(x, pos_embs)
    jax.block_until_ready((out, attn))

    assert out.shape == (B, L, d_model)
    assert attn.shape == (B, nhead, L, L)
    assert bool(jnp.all(jnp.isfinite(out))) and bool(jnp.all(jnp.isfinite(attn)))

    # pure-JAX f32 reference check (loose tolerance: bf16 matmuls + approx reciprocal)
    ref_out, ref_attn = _reference_forward(x, pos_embs, params)
    assert float(jnp.max(jnp.abs(attn.astype(jnp.float32) - ref_attn))) < 2e-2
    assert float(jnp.max(jnp.abs(out - ref_out))) < 1e-1

    print("KERNEL_OK")
</pallas_src>

<mosaic_0001>
module attributes {stable_mosaic.version = 11 : i64} {
  func.func @_ffn_kernel(%arg0: i32, %arg1: i32, %arg2: memref<1x8x32xf32, #tpu.memory_space<vmem>>, %arg3: memref<1x32xf32, #tpu.memory_space<vmem>>, %arg4: memref<1x32xf32, #tpu.memory_space<vmem>>, %arg5: memref<32x64xbf16, #tpu.memory_space<vmem>>, %arg6: memref<1x64xf32, #tpu.memory_space<vmem>>, %arg7: memref<64x32xbf16, #tpu.memory_space<vmem>>, %arg8: memref<1x32xf32, #tpu.memory_space<vmem>>, %arg9: memref<1x8x32xf32, #tpu.memory_space<vmem>>) attributes {dimension_semantics = [#tpu.dimension_semantics<parallel>, #tpu.dimension_semantics<parallel>], iteration_bounds = array<i64: 2, 1>, scalar_prefetch = 0 : i64, scratch_operands = 0 : i64, tpu.core_type = #tpu.core_type<tc>, window_params = [{transform_indices = @transform_0, window_bounds = array<i64: 1, 8, 32>}, {pipeline_mode = #tpu.pipeline_mode<synchronous>, transform_indices = @transform_1, window_bounds = array<i64: 1, 32>}, {pipeline_mode = #tpu.pipeline_mode<synchronous>, transform_indices = @transform_2, window_bounds = array<i64: 1, 32>}, {pipeline_mode = #tpu.pipeline_mode<synchronous>, transform_indices = @transform_3, window_bounds = array<i64: 32, 64>}, {pipeline_mode = #tpu.pipeline_mode<synchronous>, transform_indices = @transform_4, window_bounds = array<i64: 1, 64>}, {pipeline_mode = #tpu.pipeline_mode<synchronous>, transform_indices = @transform_5, window_bounds = array<i64: 64, 32>}, {pipeline_mode = #tpu.pipeline_mode<synchronous>, transform_indices = @transform_6, window_bounds = array<i64: 1, 32>}, {transform_indices = @transform_7, window_bounds = array<i64: 1, 8, 32>}]} {
    %c0 = arith.constant 0 : index
    %c0_0 = arith.constant 0 : index
    %c0_1 = arith.constant 0 : index
    %0 = vector.load %arg2[%c0, %c0_0, %c0_1] : memref<1x8x32xf32, #tpu.memory_space<vmem>>, vector<1x8x32xf32>
    %1 = vector.shape_cast %0 : vector<1x8x32xf32> to vector<8x32xf32>
    %c0_2 = arith.constant 0 : index
    %c0_3 = arith.constant 0 : index
    %2 = vector.load %arg3[%c0_2, %c0_3] : memref<1x32xf32, #tpu.memory_space<vmem>>, vector<1x32xf32>
    %c0_4 = arith.constant 0 : index
    %c0_5 = arith.constant 0 : index
    %3 = vector.load %arg4[%c0_4, %c0_5] : memref<1x32xf32, #tpu.memory_space<vmem>>, vector<1x32xf32>
    %cst = arith.constant dense<0.000000e+00> : vector<8xf32>
    %4 = vector.multi_reduction <add>, %1, %cst [1] : vector<8x32xf32> to vector<8xf32>
    %5 = vector.shape_cast %4 : vector<8xf32> to vector<8x1xf32>
    %cst_6 = arith.constant 3.200000e+01 : f32
    %6 = vector.broadcast %cst_6 : f32 to vector<8x1xf32>
    %7 = arith.divf %5, %6 : vector<8x1xf32>
    %8 = vector.broadcast %7 : vector<8x1xf32> to vector<8x32xf32>
    %9 = arith.subf %1, %8 : vector<8x32xf32>
    %10 = arith.mulf %9, %9 : vector<8x32xf32>
    %cst_7 = arith.constant dense<0.000000e+00> : vector<8xf32>
    %11 = vector.multi_reduction <add>, %10, %cst_7 [1] : vector<8x32xf32> to vector<8xf32>
    %12 = vector.shape_cast %11 : vector<8xf32> to vector<8x1xf32>
    %cst_8 = arith.constant 3.200000e+01 : f32
    %13 = vector.broadcast %cst_8 : f32 to vector<8x1xf32>
    %14 = arith.divf %12, %13 : vector<8x1xf32>
    %15 = vector.broadcast %7 : vector<8x1xf32> to vector<8x32xf32>
    %16 = arith.subf %1, %15 : vector<8x32xf32>
    %cst_9 = arith.constant 9.99999974E-6 : f32
    %17 = vector.broadcast %cst_9 : f32 to vector<8x1xf32>
    %18 = arith.addf %14, %17 : vector<8x1xf32>
    %19 = math.rsqrt %18 : vector<8x1xf32>
    %20 = vector.broadcast %19 : vector<8x1xf32> to vector<8x32xf32>
    %21 = arith.mulf %16, %20 : vector<8x32xf32>
    %22 = vector.broadcast %2 : vector<1x32xf32> to vector<8x32xf32>
    %23 = arith.mulf %21, %22 : vector<8x32xf32>
    %24 = vector.broadcast %3 : vector<1x32xf32> to vector<8x32xf32>
    %25 = arith.addf %23, %24 : vector<8x32xf32>
    %26 = arith.truncf %25 : vector<8x32xf32> to vector<8x32xbf16>
    %c0_10 = arith.constant 0 : index
    %c0_11 = arith.constant 0 : index
    %27 = vector.load %arg5[%c0_10, %c0_11] : memref<32x64xbf16, #tpu.memory_space<vmem>>, vector<32x64xbf16>
    %cst_12 = arith.constant dense<0.000000e+00> : vector<8x64xf32>
    %28 = tpu.matmul %26, %27, %cst_12 {dimension_numbers = #tpu.dot_dimension_numbers<[1], [0], [0], [1], [0, 0, 1, 1], [], []>} : vector<8x32xbf16>, vector<32x64xbf16>, vector<8x64xf32> -> vector<8x64xf32>
    %c0_13 = arith.constant 0 : index
    %c0_14 = arith.constant 0 : index
    %29 = vector.load %arg6[%c0_13, %c0_14] : memref<1x64xf32, #tpu.memory_space<vmem>>, vector<1x64xf32>
    %30 = vector.broadcast %29 : vector<1x64xf32> to vector<8x64xf32>
    %31 = arith.addf %28, %30 : vector<8x64xf32>
    %32 = arith.negf %31 : vector<8x64xf32>
    %33 = math.exp %32 : vector<8x64xf32>
    %cst_15 = arith.constant 1.000000e+00 : f32
    %34 = vector.broadcast %cst_15 : f32 to vector<8x64xf32>
    %35 = arith.addf %34, %33 : vector<8x64xf32>
    %36 = arith.divf %34, %35 : vector<8x64xf32>
    %37 = arith.mulf %31, %36 : vector<8x64xf32>
    %38 = arith.truncf %37 : vector<8x64xf32> to vector<8x64xbf16>
    %c0_16 = arith.constant 0 : index
    %c0_17 = arith.constant 0 : index
    %39 = vector.load %arg7[%c0_16, %c0_17] : memref<64x32xbf16, #tpu.memory_space<vmem>>, vector<64x32xbf16>
    %cst_18 = arith.constant dense<0.000000e+00> : vector<8x32xf32>
    %40 = tpu.matmul %38, %39, %cst_18 {dimension_numbers = #tpu.dot_dimension_numbers<[1], [0], [0], [1], [0, 0, 1, 1], [], []>} : vector<8x64xbf16>, vector<64x32xbf16>, vector<8x32xf32> -> vector<8x32xf32>
    %c0_19 = arith.constant 0 : index
    %c0_20 = arith.constant 0 : index
    %41 = vector.load %arg8[%c0_19, %c0_20] : memref<1x32xf32, #tpu.memory_space<vmem>>, vector<1x32xf32>
    %42 = vector.broadcast %41 : vector<1x32xf32> to vector<8x32xf32>
    %43 = arith.addf %40, %42 : vector<8x32xf32>
    %cst_21 = arith.constant 5.000000e-01 : f32
    %44 = vector.broadcast %cst_21 : f32 to vector<8x32xf32>
    %45 = arith.mulf %44, %43 : vector<8x32xf32>
    %46 = arith.addf %1, %45 : vector<8x32xf32>
    %c0_22 = arith.constant 0 : index
    %c0_23 = arith.constant 0 : index
    %c0_24 = arith.constant 0 : index
    %47 = vector.load %arg9[%c0_22, %c0_23, %c0_24] : memref<1x8x32xf32, #tpu.memory_space<vmem>>, vector<1x8x32xf32>
    %48 = vector.shape_cast %47 : vector<1x8x32xf32> to vector<8x32xf32>
    %49 = vector.shape_cast %46 : vector<8x32xf32> to vector<1x8x32xf32>
    tpu.vector_store %arg9[%c0_22, %c0_23, %c0_24], %49 {strides = array<i32>} : memref<1x8x32xf32, #tpu.memory_space<vmem>>, vector<1x8x32xf32>,
    return
  }
  func.func @transform_0(%arg0: i32, %arg1: i32) -> (i32, i32, i32) {
    %c0_i32 = arith.constant 0 : i32
    %c0_i32_0 = arith.constant 0 : i32
    return %arg0, %arg1, %c0_i32 : i32, i32, i32
  }
  func.func @transform_1(%arg0: i32, %arg1: i32) -> (i32, i32) {
    %c0_i32 = arith.constant 0 : i32
    %c0_i32_0 = arith.constant 0 : i32
    %c0_i32_1 = arith.constant 0 : i32
    return %c0_i32, %c0_i32_0 : i32, i32
  }
  func.func @transform_2(%arg0: i32, %arg1: i32) -> (i32, i32) {
    %c0_i32 = arith.constant 0 : i32
    %c0_i32_0 = arith.constant 0 : i32
    %c0_i32_1 = arith.constant 0 : i32
    return %c0_i32, %c0_i32_0 : i32, i32
  }
  func.func @transform_3(%arg0: i32, %arg1: i32) -> (i32, i32) {
    %c0_i32 = arith.constant 0 : i32
    %c0_i32_0 = arith.constant 0 : i32
    %c0_i32_1 = arith.constant 0 : i32
    return %c0_i32, %c0_i32_0 : i32, i32
  }
  func.func @transform_4(%arg0: i32, %arg1: i32) -> (i32, i32) {
    %c0_i32 = arith.constant 0 : i32
    %c0_i32_0 = arith.constant 0 : i32
    %c0_i32_1 = arith.constant 0 : i32
    return %c0_i32, %c0_i32_0 : i32, i32
  }
  func.func @transform_5(%arg0: i32, %arg1: i32) -> (i32, i32) {
    %c0_i32 = arith.constant 0 : i32
    %c0_i32_0 = arith.constant 0 : i32
    %c0_i32_1 = arith.constant 0 : i32
    return %c0_i32, %c0_i32_0 : i32, i32
  }
  func.func @transform_6(%arg0: i32, %arg1: i32) -> (i32, i32) {
    %c0_i32 = arith.constant 0 : i32
    %c0_i32_0 = arith.constant 0 : i32
    %c0_i32_1 = arith.constant 0 : i32
    return %c0_i32, %c0_i32_0 : i32, i32
  }
  func.func @transform_7(%arg0: i32, %arg1: i32) -> (i32, i32, i32) {
    %c0_i32 = arith.constant 0 : i32
    %c0_i32_0 = arith.constant 0 : i32
    return %arg0, %arg1, %c0_i32 : i32, i32, i32
  }
}

module attributes {stable_mosaic.version = 11 : i64} {
  func.func @_ln_qkv_kernel(%arg0: i32, %arg1: i32, %arg2: memref<1x8x32xf32, #tpu.memory_space<vmem>>, %arg3: memref<1x32xf32, #tpu.memory_space<vmem>>, %arg4: memref<1x32xf32, #tpu.memory_space<vmem>>, %arg5: memref<32x96xbf16, #tpu.memory_space<vmem>>, %arg6: memref<1x8x32xbf16, #tpu.memory_space<vmem>>, %arg7: memref<1x8x32xbf16, #tpu.memory_space<vmem>>, %arg8: memref<1x8x32xbf16, #tpu.memory_space<vmem>>) attributes {dimension_semantics = [#tpu.dimension_semantics<parallel>, #tpu.dimension_semantics<parallel>], iteration_bounds = array<i64: 2, 1>, scalar_prefetch = 0 : i64, scratch_operands = 0 : i64, tpu.core_type = #tpu.core_type<tc>, window_params = [{transform_indices = @transform_0, window_bounds = array<i64: 1, 8, 32>}, {pipeline_mode = #tpu.pipeline_mode<synchronous>, transform_indices = @transform_1, window_bounds = array<i64: 1, 32>}, {pipeline_mode = #tpu.pipeline_mode<synchronous>, transform_indices = @transform_2, window_bounds = array<i64: 1, 32>}, {pipeline_mode = #tpu.pipeline_mode<synchronous>, transform_indices = @transform_3, window_bounds = array<i64: 32, 96>}, {transform_indices = @transform_4, window_bounds = array<i64: 1, 8, 32>}, {transform_indices = @transform_5, window_bounds = array<i64: 1, 8, 32>}, {transform_indices = @transform_6, window_bounds = array<i64: 1, 8, 32>}]} {
    %c0 = arith.constant 0 : index
    %c0_0 = arith.constant 0 : index
    %c0_1 = arith.constant 0 : index
    %0 = vector.load %arg2[%c0, %c0_0, %c0_1] : memref<1x8x32xf32, #tpu.memory_space<vmem>>, vector<1x8x32xf32>
    %1 = vector.shape_cast %0 : vector<1x8x32xf32> to vector<8x32xf32>
    %c0_2 = arith.constant 0 : index
    %c0_3 = arith.constant 0 : index
    %2 = vector.load %arg3[%c0_2, %c0_3] : memref<1x32xf32, #tpu.memory_space<vmem>>, vector<1x32xf32>
    %c0_4 = arith.constant 0 : index
    %c0_5 = arith.constant 0 : index
    %3 = vector.load %arg4[%c0_4, %c0_5] : memref<1x32xf32, #tpu.memory_space<vmem>>, vector<1x32xf32>
    %cst = arith.constant dense<0.000000e+00> : vector<8xf32>
    %4 = vector.multi_reduction <add>, %1, %cst [1] : vector<8x32xf32> to vector<8xf32>
    %5 = vector.shape_cast %4 : vector<8xf32> to vector<8x1xf32>
    %cst_6 = arith.constant 3.200000e+01 : f32
    %6 = vector.broadcast %cst_6 : f32 to vector<8x1xf32>
    %7 = arith.divf %5, %6 : vector<8x1xf32>
    %8 = vector.broadcast %7 : vector<8x1xf32> to vector<8x32xf32>
    %9 = arith.subf %1, %8 : vector<8x32xf32>
    %10 = arith.mulf %9, %9 : vector<8x32xf32>
    %cst_7 = arith.constant dense<0.000000e+00> : vector<8xf32>
    %11 = vector.multi_reduction <add>, %10, %cst_7 [1] : vector<8x32xf32> to vector<8xf32>
    %12 = vector.shape_cast %11 : vector<8xf32> to vector<8x1xf32>
    %cst_8 = arith.constant 3.200000e+01 : f32
    %13 = vector.broadcast %cst_8 : f32 to vector<8x1xf32>
    %14 = arith.divf %12, %13 : vector<8x1xf32>
    %15 = vector.broadcast %7 : vector<8x1xf32> to vector<8x32xf32>
    %16 = arith.subf %1, %15 : vector<8x32xf32>
    %cst_9 = arith.constant 9.99999974E-6 : f32
    %17 = vector.broadcast %cst_9 : f32 to vector<8x1xf32>
    %18 = arith.addf %14, %17 : vector<8x1xf32>
    %19 = math.rsqrt %18 : vector<8x1xf32>
    %20 = vector.broadcast %19 : vector<8x1xf32> to vector<8x32xf32>
    %21 = arith.mulf %16, %20 : vector<8x32xf32>
    %22 = vector.broadcast %2 : vector<1x32xf32> to vector<8x32xf32>
    %23 = arith.mulf %21, %22 : vector<8x32xf32>
    %24 = vector.broadcast %3 : vector<1x32xf32> to vector<8x32xf32>
    %25 = arith.addf %23, %24 : vector<8x32xf32>
    %26 = arith.truncf %25 : vector<8x32xf32> to vector<8x32xbf16>
    %c0_10 = arith.constant 0 : index
    %c0_11 = arith.constant 0 : index
    %27 = vector.load %arg5[%c0_10, %c0_11] : memref<32x96xbf16, #tpu.memory_space<vmem>>, vector<32x96xbf16>
    %cst_12 = arith.constant dense<0.000000e+00> : vector<8x96xf32>
    %28 = tpu.matmul %26, %27, %cst_12 {dimension_numbers = #tpu.dot_dimension_numbers<[1], [0], [0], [1], [0, 0, 1, 1], [], []>} : vector<8x32xbf16>, vector<32x96xbf16>, vector<8x96xf32> -> vector<8x96xf32>
    %29 = vector.extract_strided_slice %28 {offsets = [0, 0], sizes = [8, 32], strides = [1, 1]} : vector<8x96xf32> to vector<8x32xf32>
    %30 = arith.truncf %29 : vector<8x32xf32> to vector<8x32xbf16>
    %c0_13 = arith.constant 0 : index
    %c0_14 = arith.constant 0 : index
    %c0_15 = arith.constant 0 : index
    %31 = vector.load %arg6[%c0_13, %c0_14, %c0_15] : memref<1x8x32xbf16, #tpu.memory_space<vmem>>, vector<1x8x32xbf16>
    %32 = vector.shape_cast %31 : vector<1x8x32xbf16> to vector<8x32xbf16>
    %33 = vector.shape_cast %30 : vector<8x32xbf16> to vector<1x8x32xbf16>
    tpu.vector_store %arg6[%c0_13, %c0_14, %c0_15], %33 {strides = array<i32>} : memref<1x8x32xbf16, #tpu.memory_space<vmem>>, vector<1x8x32xbf16>,
    %34 = vector.extract_strided_slice %28 {offsets = [0, 32], sizes = [8, 32], strides = [1, 1]} : vector<8x96xf32> to vector<8x32xf32>
    %35 = arith.truncf %34 : vector<8x32xf32> to vector<8x32xbf16>
    %c0_16 = arith.constant 0 : index
    %c0_17 = arith.constant 0 : index
    %c0_18 = arith.constant 0 : index
    %36 = vector.load %arg7[%c0_16, %c0_17, %c0_18] : memref<1x8x32xbf16, #tpu.memory_space<vmem>>, vector<1x8x32xbf16>
    %37 = vector.shape_cast %36 : vector<1x8x32xbf16> to vector<8x32xbf16>
    %38 = vector.shape_cast %35 : vector<8x32xbf16> to vector<1x8x32xbf16>
    tpu.vector_store %arg7[%c0_16, %c0_17, %c0_18], %38 {strides = array<i32>} : memref<1x8x32xbf16, #tpu.memory_space<vmem>>, vector<1x8x32xbf16>,
    %39 = vector.extract_strided_slice %28 {offsets = [0, 64], sizes = [8, 32], strides = [1, 1]} : vector<8x96xf32> to vector<8x32xf32>
    %40 = arith.truncf %39 : vector<8x32xf32> to vector<8x32xbf16>
    %c0_19 = arith.constant 0 : index
    %c0_20 = arith.constant 0 : index
    %c0_21 = arith.constant 0 : index
    %41 = vector.load %arg8[%c0_19, %c0_20, %c0_21] : memref<1x8x32xbf16, #tpu.memory_space<vmem>>, vector<1x8x32xbf16>
    %42 = vector.shape_cast %41 : vector<1x8x32xbf16> to vector<8x32xbf16>
    %43 = vector.shape_cast %40 : vector<8x32xbf16> to vector<1x8x32xbf16>
    tpu.vector_store %arg8[%c0_19, %c0_20, %c0_21], %43 {strides = array<i32>} : memref<1x8x32xbf16, #tpu.memory_space<vmem>>, vector<1x8x32xbf16>,
    return
  }
  func.func @transform_0(%arg0: i32, %arg1: i32) -> (i32, i32, i32) {
    %c0_i32 = arith.constant 0 : i32
    %c0_i32_0 = arith.constant 0 : i32
    return %arg0, %arg1, %c0_i32 : i32, i32, i32
  }
  func.func @transform_1(%arg0: i32, %arg1: i32) -> (i32, i32) {
    %c0_i32 = arith.constant 0 : i32
    %c0_i32_0 = arith.constant 0 : i32
    %c0_i32_1 = arith.constant 0 : i32
    return %c0_i32, %c0_i32_0 : i32, i32
  }
  func.func @transform_2(%arg0: i32, %arg1: i32) -> (i32, i32) {
    %c0_i32 = arith.constant 0 : i32
    %c0_i32_0 = arith.constant 0 : i32
    %c0_i32_1 = arith.constant 0 : i32
    return %c0_i32, %c0_i32_0 : i32, i32
  }
  func.func @transform_3(%arg0: i32, %arg1: i32) -> (i32, i32) {
    %c0_i32 = arith.constant 0 : i32
    %c0_i32_0 = arith.constant 0 : i32
    %c0_i32_1 = arith.constant 0 : i32
    return %c0_i32, %c0_i32_0 : i32, i32
  }
  func.func @transform_4(%arg0: i32, %arg1: i32) -> (i32, i32, i32) {
    %c0_i32 = arith.constant 0 : i32
    %c0_i32_0 = arith.constant 0 : i32
    return %arg0, %arg1, %c0_i32 : i32, i32, i32
  }
  func.func @transform_5(%arg0: i32, %arg1: i32) -> (i32, i32, i32) {
    %c0_i32 = arith.constant 0 : i32
    %c0_i32_0 = arith.constant 0 : i32
    return %arg0, %arg1, %c0_i32 : i32, i32, i32
  }
  func.func @transform_6(%arg0: i32, %arg1: i32) -> (i32, i32, i32) {
    %c0_i32 = arith.constant 0 : i32
    %c0_i32_0 = arith.constant 0 : i32
    return %arg0, %arg1, %c0_i32 : i32, i32, i32
  }
}

module attributes {stable_mosaic.version = 11 : i64} {
  func.func @_attn_kernel(%arg0: i32, %arg1: i32, %arg2: memref<1x8x32xbf16, #tpu.memory_space<vmem>>, %arg3: memref<1x8x32xbf16, #tpu.memory_space<vmem>>, %arg4: memref<1x8x32xbf16, #tpu.memory_space<vmem>>, %arg5: memref<4x128x8xbf16, #tpu.memory_space<vmem>>, %arg6: memref<1x32xf32, #tpu.memory_space<vmem>>, %arg7: memref<1x32xf32, #tpu.memory_space<vmem>>, %arg8: memref<1x8x32xf32, #tpu.memory_space<vmem>>, %arg9: memref<32x32xbf16, #tpu.memory_space<vmem>>, %arg10: memref<1x32xf32, #tpu.memory_space<vmem>>, %arg11: memref<1x8x32xf32, #tpu.memory_space<vmem>>, %arg12: memref<1x4x8x8xbf16, #tpu.memory_space<vmem>>) attributes {dimension_semantics = [#tpu.dimension_semantics<parallel>, #tpu.dimension_semantics<parallel>], iteration_bounds = array<i64: 2, 1>, scalar_prefetch = 0 : i64, scratch_operands = 0 : i64, tpu.core_type = #tpu.core_type<tc>, window_params = [{transform_indices = @transform_0, window_bounds = array<i64: 1, 8, 32>}, {transform_indices = @transform_1, window_bounds = array<i64: 1, 8, 32>}, {transform_indices = @transform_2, window_bounds = array<i64: 1, 8, 32>}, {pipeline_mode = #tpu.pipeline_mode<synchronous>, transform_indices = @transform_3, window_bounds = array<i64: 4, 128, 8>}, {pipeline_mode = #tpu.pipeline_mode<synchronous>, transform_indices = @transform_4, window_bounds = array<i64: 1, 32>}, {pipeline_mode = #tpu.pipeline_mode<synchronous>, transform_indices = @transform_5, window_bounds = array<i64: 1, 32>}, {transform_indices = @transform_6, window_bounds = array<i64: 1, 8, 32>}, {pipeline_mode = #tpu.pipeline_mode<synchronous>, transform_indices = @transform_7, window_bounds = array<i64: 32, 32>}, {pipeline_mode = #tpu.pipeline_mode<synchronous>, transform_indices = @transform_8, window_bounds = array<i64: 1, 32>}, {transform_indices = @transform_9, window_bounds = array<i64: 1, 8, 32>}, {transform_indices = @transform_10, window_bounds = array<i64: 1, 4, 8, 8>}]} {
    %c0 = arith.constant 0 : index
    %c0_0 = arith.constant 0 : index
    %c0_1 = arith.constant 0 : index
    %0 = vector.load %arg2[%c0, %c0_0, %c0_1] : memref<1x8x32xbf16, #tpu.memory_space<vmem>>, vector<1x8x32xbf16>
    %1 = vector.shape_cast %0 : vector<1x8x32xbf16> to vector<8x32xbf16>
    %2 = arith.extf %1 : vector<8x32xbf16> to vector<8x32xf32>
    %c0_2 = arith.constant 0 : index
    %c0_3 = arith.constant 0 : index
    %3 = vector.load %arg6[%c0_2, %c0_3] : memref<1x32xf32, #tpu.memory_space<vmem>>, vector<1x32xf32>
    %4 = vector.broadcast %3 : vector<1x32xf32> to vector<8x32xf32>
    %5 = arith.addf %2, %4 : vector<8x32xf32>
    %cst = arith.constant 0.176776692 : f32
    %6 = vector.broadcast %cst : f32 to vector<8x32xf32>
    %7 = arith.mulf %5, %6 : vector<8x32xf32>
    %8 = arith.truncf %7 : vector<8x32xf32> to vector<8x32xbf16>
    %c0_4 = arith.constant 0 : index
    %c0_5 = arith.constant 0 : index
    %9 = vector.load %arg7[%c0_4, %c0_5] : memref<1x32xf32, #tpu.memory_space<vmem>>, vector<1x32xf32>
    %10 = vector.broadcast %9 : vector<1x32xf32> to vector<8x32xf32>
    %11 = arith.addf %2, %10 : vector<8x32xf32>
    %cst_6 = arith.constant 0.176776692 : f32
    %12 = vector.broadcast %cst_6 : f32 to vector<8x32xf32>
    %13 = arith.mulf %11, %12 : vector<8x32xf32>
    %14 = arith.truncf %13 : vector<8x32xf32> to vector<8x32xbf16>
    %c0_7 = arith.constant 0 : index
    %c0_8 = arith.constant 0 : index
    %c0_9 = arith.constant 0 : index
    %15 = vector.load %arg3[%c0_7, %c0_8, %c0_9] : memref<1x8x32xbf16, #tpu.memory_space<vmem>>, vector<1x8x32xbf16>
    %16 = vector.shape_cast %15 : vector<1x8x32xbf16> to vector<8x32xbf16>
    %c0_10 = arith.constant 0 : index
    %c0_11 = arith.constant 0 : index
    %c0_12 = arith.constant 0 : index
    %17 = vector.load %arg4[%c0_10, %c0_11, %c0_12] : memref<1x8x32xbf16, #tpu.memory_space<vmem>>, vector<1x8x32xbf16>
    %18 = vector.shape_cast %17 : vector<1x8x32xbf16> to vector<8x32xbf16>
    %19 = vector.extract_strided_slice %8 {offsets = [0, 0], sizes = [8, 8], strides = [1, 1]} : vector<8x32xbf16> to vector<8x8xbf16>
    %20 = vector.extract_strided_slice %16 {offsets = [0, 0], sizes = [8, 8], strides = [1, 1]} : vector<8x32xbf16> to vector<8x8xbf16>
    %cst_13 = arith.constant dense<0.000000e+00> : vector<8x8xf32>
    %21 = tpu.matmul %19, %20, %cst_13 {dimension_numbers = #tpu.dot_dimension_numbers<[1], [1], [0], [0], [0, 0, 1, 0], [], []>} : vector<8x8xbf16>, vector<8x8xbf16>, vector<8x8xf32> -> vector<8x8xf32>
    %22 = vector.extract_strided_slice %14 {offsets = [0, 0], sizes = [8, 8], strides = [1, 1]} : vector<8x32xbf16> to vector<8x8xbf16>
    %c0_14 = arith.constant 0 : index
    %c0_15 = arith.constant 0 : index
    %c0_16 = arith.constant 0 : index
    %23 = vector.load %arg5[%c0_14, %c0_15, %c0_16] : memref<4x128x8xbf16, #tpu.memory_space<vmem>>, vector<1x128x8xbf16>
    %24 = vector.shape_cast %23 : vector<1x128x8xbf16> to vector<128x8xbf16>
    %cst_17 = arith.constant dense<0.000000e+00> : vector<8x128xf32>
    %25 = tpu.matmul %22, %24, %cst_17 {dimension_numbers = #tpu.dot_dimension_numbers<[1], [1], [0], [0], [0, 0, 1, 0], [], []>} : vector<8x8xbf16>, vector<128x8xbf16>, vector<8x128xf32> -> vector<8x128xf32>
    %c120_i32 = arith.constant 120 : i32
    %26 = tpu.dynamic_rotate %25 by %c120_i32 dim 1 {stride = 1 : si32, stride_dimension = 0 : si32} : vector<8x128xf32>, i32 -> vector<8x128xf32>
    %27 = vector.extract_strided_slice %26 {offsets = [0, 0], sizes = [8, 8], strides = [1, 1]} : vector<8x128xf32> to vector<8x8xf32>
    %28 = arith.addf %21, %27 : vector<8x8xf32>
    %cst_18 = arith.constant dense<0xFF800000> : vector<8xf32>
    %29 = vector.multi_reduction <maximumf>, %28, %cst_18 [1] : vector<8x8xf32> to vector<8xf32>
    %30 = vector.shape_cast %29 : vector<8xf32> to vector<8x1xf32>
    %31 = vector.broadcast %30 : vector<8x1xf32> to vector<8x8xf32>
    %32 = arith.subf %28, %31 : vector<8x8xf32>
    %33 = math.exp %32 : vector<8x8xf32>
    %cst_19 = arith.constant dense<0.000000e+00> : vector<8xf32>
    %34 = vector.multi_reduction <add>, %33, %cst_19 [1] : vector<8x8xf32> to vector<8xf32>
    %35 = vector.shape_cast %34 : vector<8xf32> to vector<8x1xf32>
    %36 = tpu.reciprocal %35 {approx = true} : vector<8x1xf32> -> vector<8x1xf32>
    %37 = vector.broadcast %36 : vector<8x1xf32> to vector<8x8xf32>
    %38 = arith.mulf %33, %37 : vector<8x8xf32>
    %39 = arith.truncf %38 : vector<8x8xf32> to vector<8x8xbf16>
    %c0_20 = arith.constant 0 : index
    %c0_21 = arith.constant 0 : index
    %c0_22 = arith.constant 0 : index
    %c0_23 = arith.constant 0 : index
    %40 = vector.load %arg12[%c0_20, %c0_21, %c0_22, %c0_23] : memref<1x4x8x8xbf16, #tpu.memory_space<vmem>>, vector<1x1x8x8xbf16>
    %41 = vector.shape_cast %40 : vector<1x1x8x8xbf16> to vector<8x8xbf16>
    %42 = vector.shape_cast %39 : vector<8x8xbf16> to vector<1x1x8x8xbf16>
    tpu.vector_store %arg12[%c0_20, %c0_21, %c0_22, %c0_23], %42 {strides = array<i32>} : memref<1x4x8x8xbf16, #tpu.memory_space<vmem>>, vector<1x1x8x8xbf16>,
    %43 = arith.truncf %38 : vector<8x8xf32> to vector<8x8xbf16>
    %44 = vector.extract_strided_slice %18 {offsets = [0, 0], sizes = [8, 8], strides = [1, 1]} : vector<8x32xbf16> to vector<8x8xbf16>
    %cst_24 = arith.constant dense<0.000000e+00> : vector<8x8xf32>
    %45 = tpu.matmul %43, %44, %cst_24 {dimension_numbers = #tpu.dot_dimension_numbers<[1], [0], [0], [1], [0, 0, 1, 1], [], []>} : vector<8x8xbf16>, vector<8x8xbf16>, vector<8x8xf32> -> vector<8x8xf32>
    %46 = vector.extract_strided_slice %8 {offsets = [0, 8], sizes = [8, 8], strides = [1, 1]} : vector<8x32xbf16> to vector<8x8xbf16>
    %47 = vector.extract_strided_slice %16 {offsets = [0, 8], sizes = [8, 8], strides = [1, 1]} : vector<8x32xbf16> to vector<8x8xbf16>
    %cst_25 = arith.constant dense<0.000000e+00> : vector<8x8xf32>
    %48 = tpu.matmul %46, %47, %cst_25 {dimension_numbers = #tpu.dot_dimension_numbers<[1], [1], [0], [0], [0, 0, 1, 0], [], []>} : vector<8x8xbf16>, vector<8x8xbf16>, vector<8x8xf32> -> vector<8x8xf32>
    %49 = vector.extract_strided_slice %14 {offsets = [0, 8], sizes = [8, 8], strides = [1, 1]} : vector<8x32xbf16> to vector<8x8xbf16>
    %c1 = arith.constant 1 : index
    %c0_26 = arith.constant 0 : index
    %c0_27 = arith.constant 0 : index
    %50 = vector.load %arg5[%c1, %c0_26, %c0_27] : memref<4x128x8xbf16, #tpu.memory_space<vmem>>, vector<1x128x8xbf16>
    %51 = vector.shape_cast %50 : vector<1x128x8xbf16> to vector<128x8xbf16>
    %cst_28 = arith.constant dense<0.000000e+00> : vector<8x128xf32>
    %52 = tpu.matmul %49, %51, %cst_28 {dimension_numbers = #tpu.dot_dimension_numbers<[1], [1], [0], [0], [0, 0, 1, 0], [], []>} : vector<8x8xbf16>, vector<128x8xbf16>, vector<8x128xf32> -> vector<8x128xf32>
    %c120_i32_29 = arith.constant 120 : i32
    %53 = tpu.dynamic_rotate %52 by %c120_i32_29 dim 1 {stride = 1 : si32, stride_dimension = 0 : si32} : vector<8x128xf32>, i32 -> vector<8x128xf32>
    %54 = vector.extract_strided_slice %53 {offsets = [0, 0], sizes = [8, 8], strides = [1, 1]} : vector<8x128xf32> to vector<8x8xf32>
    %55 = arith.addf %48, %54 : vector<8x8xf32>
    %cst_30 = arith.constant dense<0xFF800000> : vector<8xf32>
    %56 = vector.multi_reduction <maximumf>, %55, %cst_30 [1] : vector<8x8xf32> to vector<8xf32>
    %57 = vector.shape_cast %56 : vector<8xf32> to vector<8x1xf32>
    %58 = vector.broadcast %57 : vector<8x1xf32> to vector<8x8xf32>
    %59 = arith.subf %55, %58 : vector<8x8xf32>
    %60 = math.exp %59 : vector<8x8xf32>
    %cst_31 = arith.constant dense<0.000000e+00> : vector<8xf32>
    %61 = vector.multi_reduction <add>, %60, %cst_31 [1] : vector<8x8xf32> to vector<8xf32>
    %62 = vector.shape_cast %61 : vector<8xf32> to vector<8x1xf32>
    %63 = tpu.reciprocal %62 {approx = true} : vector<8x1xf32> -> vector<8x1xf32>
    %64 = vector.broadcast %63 : vector<8x1xf32> to vector<8x8xf32>
    %65 = arith.mulf %60, %64 : vector<8x8xf32>
    %66 = arith.truncf %65 : vector<8x8xf32> to vector<8x8xbf16>
    %c0_32 = arith.constant 0 : index
    %c1_33 = arith.constant 1 : index
    %c0_34 = arith.constant 0 : index
    %c0_35 = arith.constant 0 : index
    %67 = vector.load %arg12[%c0_32, %c1_33, %c0_34, %c0_35] : memref<1x4x8x8xbf16, #tpu.memory_space<vmem>>, vector<1x1x8x8xbf16>
    %68 = vector.shape_cast %67 : vector<1x1x8x8xbf16> to vector<8x8xbf16>
    %69 = vector.shape_cast %66 : vector<8x8xbf16> to vector<1x1x8x8xbf16>
    tpu.vector_store %arg12[%c0_32, %c1_33, %c0_34, %c0_35], %69 {strides = array<i32>} : memref<1x4x8x8xbf16, #tpu.memory_space<vmem>>, vector<1x1x8x8xbf16>,
    %70 = arith.truncf %65 : vector<8x8xf32> to vector<8x8xbf16>
    %71 = vector.extract_strided_slice %18 {offsets = [0, 8], sizes = [8, 8], strides = [1, 1]} : vector<8x32xbf16> to vector<8x8xbf16>
    %cst_36 = arith.constant dense<0.000000e+00> : vector<8x8xf32>
    %72 = tpu.matmul %70, %71, %cst_36 {dimension_numbers = #tpu.dot_dimension_numbers<[1], [0], [0], [1], [0, 0, 1, 1], [], []>} : vector<8x8xbf16>, vector<8x8xbf16>, vector<8x8xf32> -> vector<8x8xf32>
    %73 = vector.extract_strided_slice %8 {offsets = [0, 16], sizes = [8, 8], strides = [1, 1]} : vector<8x32xbf16> to vector<8x8xbf16>
    %74 = vector.extract_strided_slice %16 {offsets = [0, 16], sizes = [8, 8], strides = [1, 1]} : vector<8x32xbf16> to vector<8x8xbf16>
    %cst_37 = arith.constant dense<0.000000e+00> : vector<8x8xf32>
    %75 = tpu.matmul %73, %74, %cst_37 {dimension_numbers = #tpu.dot_dimension_numbers<[1], [1], [0], [0], [0, 0, 1, 0], [], []>} : vector<8x8xbf16>, vector<8x8xbf16>, vector<8x8xf32> -> vector<8x8xf32>
    %76 = vector.extract_strided_slice %14 {offsets = [0, 16], sizes = [8, 8], strides = [1, 1]} : vector<8x32xbf16> to vector<8x8xbf16>
    %c2 = arith.constant 2 : index
    %c0_38 = arith.constant 0 : index
    %c0_39 = arith.constant 0 : index
    %77 = vector.load %arg5[%c2, %c0_38, %c0_39] : memref<4x128x8xbf16, #tpu.memory_space<vmem>>, vector<1x128x8xbf16>
    %78 = vector.shape_cast %77 : vector<1x128x8xbf16> to vector<128x8xbf16>
    %cst_40 = arith.constant dense<0.000000e+00> : vector<8x128xf32>
    %79 = tpu.matmul %76, %78, %cst_40 {dimension_numbers = #tpu.dot_dimension_numbers<[1], [1], [0], [0], [0, 0, 1, 0], [], []>} : vector<8x8xbf16>, vector<128x8xbf16>, vector<8x128xf32> -> vector<8x128xf32>
    %c120_i32_41 = arith.constant 120 : i32
    %80 = tpu.dynamic_rotate %79 by %c120_i32_41 dim 1 {stride = 1 : si32, stride_dimension = 0 : si32} : vector<8x128xf32>, i32 -> vector<8x128xf32>
    %81 = vector.extract_strided_slice %80 {offsets = [0, 0], sizes = [8, 8], strides = [1, 1]} : vector<8x128xf32> to vector<8x8xf32>
    %82 = arith.addf %75, %81 : vector<8x8xf32>
    %cst_42 = arith.constant dense<0xFF800000> : vector<8xf32>
    %83 = vector.multi_reduction <maximumf>, %82, %cst_42 [1] : vector<8x8xf32> to vector<8xf32>
    %84 = vector.shape_cast %83 : vector<8xf32> to vector<8x1xf32>
    %85 = vector.broadcast %84 : vector<8x1xf32> to vector<8x8xf32>
    %86 = arith.subf %82, %85 : vector<8x8xf32>
    %87 = math.exp %86 : vector<8x8xf32>
    %cst_43 = arith.constant dense<0.000000e+00> : vector<8xf32>
    %88 = vector.multi_reduction <add>, %87, %cst_43 [1] : vector<8x8xf32> to vector<8xf32>
    %89 = vector.shape_cast %88 : vector<8xf32> to vector<8x1xf32>
    %90 = tpu.reciprocal %89 {approx = true} : vector<8x1xf32> -> vector<8x1xf32>
    %91 = vector.broadcast %90 : vector<8x1xf32> to vector<8x8xf32>
    %92 = arith.mulf %87, %91 : vector<8x8xf32>
    %93 = arith.truncf %92 : vector<8x8xf32> to vector<8x8xbf16>
    %c0_44 = arith.constant 0 : index
    %c2_45 = arith.constant 2 : index
    %c0_46 = arith.constant 0 : index
    %c0_47 = arith.constant 0 : index
    %94 = vector.load %arg12[%c0_44, %c2_45, %c0_46, %c0_47] : memref<1x4x8x8xbf16, #tpu.memory_space<vmem>>, vector<1x1x8x8xbf16>
    %95 = vector.shape_cast %94 : vector<1x1x8x8xbf16> to vector<8x8xbf16>
    %96 = vector.shape_cast %93 : vector<8x8xbf16> to vector<1x1x8x8xbf16>
    tpu.vector_store %arg12[%c0_44, %c2_45, %c0_46, %c0_47], %96 {strides = array<i32>} : memref<1x4x8x8xbf16, #tpu.memory_space<vmem>>, vector<1x1x8x8xbf16>,
    %97 = arith.truncf %92 : vector<8x8xf32> to vector<8x8xbf16>
    %98 = vector.extract_strided_slice %18 {offsets = [0, 16], sizes = [8, 8], strides = [1, 1]} : vector<8x32xbf16> to vector<8x8xbf16>
    %cst_48 = arith.constant dense<0.000000e+00> : vector<8x8xf32>
    %99 = tpu.matmul %97, %98, %cst_48 {dimension_numbers = #tpu.dot_dimension_numbers<[1], [0], [0], [1], [0, 0, 1, 1], [], []>} : vector<8x8xbf16>, vector<8x8xbf16>, vector<8x8xf32> -> vector<8x8xf32>
    %100 = vector.extract_strided_slice %8 {offsets = [0, 24], sizes = [8, 8], strides = [1, 1]} : vector<8x32xbf16> to vector<8x8xbf16>
    %101 = vector.extract_strided_slice %16 {offsets = [0, 24], sizes = [8, 8], strides = [1, 1]} : vector<8x32xbf16> to vector<8x8xbf16>
    %cst_49 = arith.constant dense<0.000000e+00> : vector<8x8xf32>
    %102 = tpu.matmul %100, %101, %cst_49 {dimension_numbers = #tpu.dot_dimension_numbers<[1], [1], [0], [0], [0, 0, 1, 0], [], []>} : vector<8x8xbf16>, vector<8x8xbf16>, vector<8x8xf32> -> vector<8x8xf32>
    %103 = vector.extract_strided_slice %14 {offsets = [0, 24], sizes = [8, 8], strides = [1, 1]} : vector<8x32xbf16> to vector<8x8xbf16>
    %c3 = arith.constant 3 : index
    %c0_50 = arith.constant 0 : index
    %c0_51 = arith.constant 0 : index
    %104 = vector.load %arg5[%c3, %c0_50, %c0_51] : memref<4x128x8xbf16, #tpu.memory_space<vmem>>, vector<1x128x8xbf16>
    %105 = vector.shape_cast %104 : vector<1x128x8xbf16> to vector<128x8xbf16>
    %cst_52 = arith.constant dense<0.000000e+00> : vector<8x128xf32>
    %106 = tpu.matmul %103, %105, %cst_52 {dimension_numbers = #tpu.dot_dimension_numbers<[1], [1], [0], [0], [0, 0, 1, 0], [], []>} : vector<8x8xbf16>, vector<128x8xbf16>, vector<8x128xf32> -> vector<8x128xf32>
    %c120_i32_53 = arith.constant 120 : i32
    %107 = tpu.dynamic_rotate %106 by %c120_i32_53 dim 1 {stride = 1 : si32, stride_dimension = 0 : si32} : vector<8x128xf32>, i32 -> vector<8x128xf32>
    %108 = vector.extract_strided_slice %107 {offsets = [0, 0], sizes = [8, 8], strides = [1, 1]} : vector<8x128xf32> to vector<8x8xf32>
    %109 = arith.addf %102, %108 : vector<8x8xf32>
    %cst_54 = arith.constant dense<0xFF800000> : vector<8xf32>
    %110 = vector.multi_reduction <maximumf>, %109, %cst_54 [1] : vector<8x8xf32> to vector<8xf32>
    %111 = vector.shape_cast %110 : vector<8xf32> to vector<8x1xf32>
    %112 = vector.broadcast %111 : vector<8x1xf32> to vector<8x8xf32>
    %113 = arith.subf %109, %112 : vector<8x8xf32>
    %114 = math.exp %113 : vector<8x8xf32>
    %cst_55 = arith.constant dense<0.000000e+00> : vector<8xf32>
    %115 = vector.multi_reduction <add>, %114, %cst_55 [1] : vector<8x8xf32> to vector<8xf32>
    %116 = vector.shape_cast %115 : vector<8xf32> to vector<8x1xf32>
    %117 = tpu.reciprocal %116 {approx = true} : vector<8x1xf32> -> vector<8x1xf32>
    %118 = vector.broadcast %117 : vector<8x1xf32> to vector<8x8xf32>
    %119 = arith.mulf %114, %118 : vector<8x8xf32>
    %120 = arith.truncf %119 : vector<8x8xf32> to vector<8x8xbf16>
    %c0_56 = arith.constant 0 : index
    %c3_57 = arith.constant 3 : index
    %c0_58 = arith.constant 0 : index
    %c0_59 = arith.constant 0 : index
    %121 = vector.load %arg12[%c0_56, %c3_57, %c0_58, %c0_59] : memref<1x4x8x8xbf16, #tpu.memory_space<vmem>>, vector<1x1x8x8xbf16>
    %122 = vector.shape_cast %121 : vector<1x1x8x8xbf16> to vector<8x8xbf16>
    %123 = vector.shape_cast %120 : vector<8x8xbf16> to vector<1x1x8x8xbf16>
    tpu.vector_store %arg12[%c0_56, %c3_57, %c0_58, %c0_59], %123 {strides = array<i32>} : memref<1x4x8x8xbf16, #tpu.memory_space<vmem>>, vector<1x1x8x8xbf16>,
    %124 = arith.truncf %119 : vector<8x8xf32> to vector<8x8xbf16>
    %125 = vector.extract_strided_slice %18 {offsets = [0, 24], sizes = [8, 8], strides = [1, 1]} : vector<8x32xbf16> to vector<8x8xbf16>
    %cst_60 = arith.constant dense<0.000000e+00> : vector<8x8xf32>
    %126 = tpu.matmul %124, %125, %cst_60 {dimension_numbers = #tpu.dot_dimension_numbers<[1], [0], [0], [1], [0, 0, 1, 1], [], []>} : vector<8x8xbf16>, vector<8x8xbf16>, vector<8x8xf32> -> vector<8x8xf32>
    %127 = tpu.concatenate %45, %72, %99, %126 in 1 : vector<8x8xf32>, vector<8x8xf32>, vector<8x8xf32>, vector<8x8xf32> -> vector<8x32xf32>
    %128 = arith.truncf %127 : vector<8x32xf32> to vector<8x32xbf16>
    %c0_61 = arith.constant 0 : index
    %c0_62 = arith.constant 0 : index
    %c0_63 = arith.constant 0 : index
    %129 = vector.load %arg8[%c0_61, %c0_62, %c0_63] : memref<1x8x32xf32, #tpu.memory_space<vmem>>, vector<1x8x32xf32>
    %130 = vector.shape_cast %129 : vector<1x8x32xf32> to vector<8x32xf32>
    %c0_64 = arith.constant 0 : index
    %c0_65 = arith.constant 0 : index
    %131 = vector.load %arg10[%c0_64, %c0_65] : memref<1x32xf32, #tpu.memory_space<vmem>>, vector<1x32xf32>
    %132 = vector.broadcast %131 : vector<1x32xf32> to vector<8x32xf32>
    %133 = arith.addf %130, %132 : vector<8x32xf32>
    %c0_66 = arith.constant 0 : index
    %c0_67 = arith.constant 0 : index
    %134 = vector.load %arg9[%c0_66, %c0_67] : memref<32x32xbf16, #tpu.memory_space<vmem>>, vector<32x32xbf16>
    %cst_68 = arith.constant dense<0.000000e+00> : vector<8x32xf32>
    %135 = tpu.matmul %128, %134, %cst_68 {dimension_numbers = #tpu.dot_dimension_numbers<[1], [0], [0], [1], [0, 0, 1, 1], [], []>} : vector<8x32xbf16>, vector<32x32xbf16>, vector<8x32xf32> -> vector<8x32xf32>
    %136 = arith.addf %133, %135 : vector<8x32xf32>
    %c0_69 = arith.constant 0 : index
    %c0_70 = arith.constant 0 : index
    %c0_71 = arith.constant 0 : index
    %137 = vector.load %arg11[%c0_69, %c0_70, %c0_71] : memref<1x8x32xf32, #tpu.memory_space<vmem>>, vector<1x8x32xf32>
    %138 = vector.shape_cast %137 : vector<1x8x32xf32> to vector<8x32xf32>
    %139 = vector.shape_cast %136 : vector<8x32xf32> to vector<1x8x32xf32>
    tpu.vector_store %arg11[%c0_69, %c0_70, %c0_71], %139 {strides = array<i32>} : memref<1x8x32xf32, #tpu.memory_space<vmem>>, vector<1x8x32xf32>,
    return
  }
  func.func @transform_0(%arg0: i32, %arg1: i32) -> (i32, i32, i32) {
    %c0_i32 = arith.constant 0 : i32
    %c0_i32_0 = arith.constant 0 : i32
    return %arg0, %arg1, %c0_i32 : i32, i32, i32
  }
  func.func @transform_1(%arg0: i32, %arg1: i32) -> (i32, i32, i32) {
    %c0_i32 = arith.constant 0 : i32
    %c0_i32_0 = arith.constant 0 : i32
    %c0_i32_1 = arith.constant 0 : i32
    return %arg0, %c0_i32, %c0_i32_0 : i32, i32, i32
  }
  func.func @transform_2(%arg0: i32, %arg1: i32) -> (i32, i32, i32) {
    %c0_i32 = arith.constant 0 : i32
    %c0_i32_0 = arith.constant 0 : i32
    %c0_i32_1 = arith.constant 0 : i32
    return %arg0, %c0_i32, %c0_i32_0 : i32, i32, i32
  }
  func.func @transform_3(%arg0: i32, %arg1: i32) -> (i32, i32, i32) {
    %c0_i32 = arith.constant 0 : i32
    %c0_i32_0 = arith.constant 0 : i32
    %c0_i32_1 = arith.constant 0 : i32
    %c0_i32_2 = arith.constant 0 : i32
    return %c0_i32, %c0_i32_0, %c0_i32_1 : i32, i32, i32
  }
  func.func @transform_4(%arg0: i32, %arg1: i32) -> (i32, i32) {
    %c0_i32 = arith.constant 0 : i32
    %c0_i32_0 = arith.constant 0 : i32
    %c0_i32_1 = arith.constant 0 : i32
    return %c0_i32, %c0_i32_0 : i32, i32
  }
  func.func @transform_5(%arg0: i32, %arg1: i32) -> (i32, i32) {
    %c0_i32 = arith.constant 0 : i32
    %c0_i32_0 = arith.constant 0 : i32
    %c0_i32_1 = arith.constant 0 : i32
    return %c0_i32, %c0_i32_0 : i32, i32
  }
  func.func @transform_6(%arg0: i32, %arg1: i32) -> (i32, i32, i32) {
    %c0_i32 = arith.constant 0 : i32
    %c0_i32_0 = arith.constant 0 : i32
    return %arg0, %arg1, %c0_i32 : i32, i32, i32
  }
  func.func @transform_7(%arg0: i32, %arg1: i32) -> (i32, i32) {
    %c0_i32 = arith.constant 0 : i32
    %c0_i32_0 = arith.constant 0 : i32
    %c0_i32_1 = arith.constant 0 : i32
    return %c0_i32, %c0_i32_0 : i32, i32
  }
  func.func @transform_8(%arg0: i32, %arg1: i32) -> (i32, i32) {
    %c0_i32 = arith.constant 0 : i32
    %c0_i32_0 = arith.constant 0 : i32
    %c0_i32_1 = arith.constant 0 : i32
    return %c0_i32, %c0_i32_0 : i32, i32
  }
  func.func @transform_9(%arg0: i32, %arg1: i32) -> (i32, i32, i32) {
    %c0_i32 = arith.constant 0 : i32
    %c0_i32_0 = arith.constant 0 : i32
    return %arg0, %arg1, %c0_i32 : i32, i32, i32
  }
  func.func @transform_10(%arg0: i32, %arg1: i32) -> (i32, i32, i32, i32) {
    %c0_i32 = arith.constant 0 : i32
    %c0_i32_0 = arith.constant 0 : i32
    %c0_i32_1 = arith.constant 0 : i32
    return %arg0, %c0_i32, %arg1, %c0_i32_0 : i32, i32, i32, i32
  }
}

module attributes {stable_mosaic.version = 11 : i64} {
  func.func @_conv_kernel_full(%arg0: i32, %arg1: memref<1x8x32xf32, #tpu.memory_space<vmem>>, %arg2: memref<1x32xf32, #tpu.memory_space<vmem>>, %arg3: memref<1x32xf32, #tpu.memory_space<vmem>>, %arg4: memref<32x64xbf16, #tpu.memory_space<vmem>>, %arg5: memref<1x64xf32, #tpu.memory_space<vmem>>, %arg6: memref<31x32xf32, #tpu.memory_space<vmem>>, %arg7: memref<1x32xf32, #tpu.memory_space<vmem>>, %arg8: memref<1x32xf32, #tpu.memory_space<vmem>>, %arg9: memref<1x32xf32, #tpu.memory_space<vmem>>, %arg10: memref<32x32xbf16, #tpu.memory_space<vmem>>, %arg11: memref<1x32xf32, #tpu.memory_space<vmem>>, %arg12: memref<1x8x32xf32, #tpu.memory_space<vmem>>, %arg13: memref<39x32xf32, #tpu.memory_space<vmem>>) attributes {dimension_semantics = [#tpu.dimension_semantics<parallel>], iteration_bounds = array<i64: 2>, scalar_prefetch = 0 : i64, scratch_operands = 1 : i64, tpu.core_type = #tpu.core_type<tc>, window_params = [{transform_indices = @transform_0, window_bounds = array<i64: 1, 8, 32>}, {pipeline_mode = #tpu.pipeline_mode<synchronous>, transform_indices = @transform_1, window_bounds = array<i64: 1, 32>}, {pipeline_mode = #tpu.pipeline_mode<synchronous>, transform_indices = @transform_2, window_bounds = array<i64: 1, 32>}, {pipeline_mode = #tpu.pipeline_mode<synchronous>, transform_indices = @transform_3, window_bounds = array<i64: 32, 64>}, {pipeline_mode = #tpu.pipeline_mode<synchronous>, transform_indices = @transform_4, window_bounds = array<i64: 1, 64>}, {pipeline_mode = #tpu.pipeline_mode<synchronous>, transform_indices = @transform_5, window_bounds = array<i64: 31, 32>}, {pipeline_mode = #tpu.pipeline_mode<synchronous>, transform_indices = @transform_6, window_bounds = array<i64: 1, 32>}, {pipeline_mode = #tpu.pipeline_mode<synchronous>, transform_indices = @transform_7, window_bounds = array<i64: 1, 32>}, {pipeline_mode = #tpu.pipeline_mode<synchronous>, transform_indices = @transform_8, window_bounds = array<i64: 1, 32>}, {pipeline_mode = #tpu.pipeline_mode<synchronous>, transform_indices = @transform_9, window_bounds = array<i64: 32, 32>}, {pipeline_mode = #tpu.pipeline_mode<synchronous>, transform_indices = @transform_10, window_bounds = array<i64: 1, 32>}, {transform_indices = @transform_11, window_bounds = array<i64: 1, 8, 32>}]} {
    %c0 = arith.constant 0 : index
    %c0_0 = arith.constant 0 : index
    %c0_1 = arith.constant 0 : index
    %0 = vector.load %arg1[%c0, %c0_0, %c0_1] : memref<1x8x32xf32, #tpu.memory_space<vmem>>, vector<1x8x32xf32>
    %1 = vector.shape_cast %0 : vector<1x8x32xf32> to vector<8x32xf32>
    %c0_2 = arith.constant 0 : index
    %c0_3 = arith.constant 0 : index
    %2 = vector.load %arg2[%c0_2, %c0_3] : memref<1x32xf32, #tpu.memory_space<vmem>>, vector<1x32xf32>
    %c0_4 = arith.constant 0 : index
    %c0_5 = arith.constant 0 : index
    %3 = vector.load %arg3[%c0_4, %c0_5] : memref<1x32xf32, #tpu.memory_space<vmem>>, vector<1x32xf32>
    %c0_6 = arith.constant 0 : index
    %c0_7 = arith.constant 0 : index
    %4 = vector.load %arg4[%c0_6, %c0_7] : memref<32x64xbf16, #tpu.memory_space<vmem>>, vector<32x64xbf16>
    %c0_8 = arith.constant 0 : index
    %c0_9 = arith.constant 0 : index
    %5 = vector.load %arg5[%c0_8, %c0_9] : memref<1x64xf32, #tpu.memory_space<vmem>>, vector<1x64xf32>
    %cst = arith.constant dense<0.000000e+00> : vector<8xf32>
    %6 = vector.multi_reduction <add>, %1, %cst [1] : vector<8x32xf32> to vector<8xf32>
    %7 = vector.shape_cast %6 : vector<8xf32> to vector<8x1xf32>
    %cst_10 = arith.constant 3.200000e+01 : f32
    %8 = vector.broadcast %cst_10 : f32 to vector<8x1xf32>
    %9 = arith.divf %7, %8 : vector<8x1xf32>
    %10 = vector.broadcast %9 : vector<8x1xf32> to vector<8x32xf32>
    %11 = arith.subf %1, %10 : vector<8x32xf32>
    %12 = arith.mulf %11, %11 : vector<8x32xf32>
    %cst_11 = arith.constant dense<0.000000e+00> : vector<8xf32>
    %13 = vector.multi_reduction <add>, %12, %cst_11 [1] : vector<8x32xf32> to vector<8xf32>
    %14 = vector.shape_cast %13 : vector<8xf32> to vector<8x1xf32>
    %cst_12 = arith.constant 3.200000e+01 : f32
    %15 = vector.broadcast %cst_12 : f32 to vector<8x1xf32>
    %16 = arith.divf %14, %15 : vector<8x1xf32>
    %17 = vector.broadcast %9 : vector<8x1xf32> to vector<8x32xf32>
    %18 = arith.subf %1, %17 : vector<8x32xf32>
    %cst_13 = arith.constant 9.99999974E-6 : f32
    %19 = vector.broadcast %cst_13 : f32 to vector<8x1xf32>
    %20 = arith.addf %16, %19 : vector<8x1xf32>
    %21 = math.rsqrt %20 : vector<8x1xf32>
    %22 = vector.broadcast %21 : vector<8x1xf32> to vector<8x32xf32>
    %23 = arith.mulf %18, %22 : vector<8x32xf32>
    %24 = vector.broadcast %2 : vector<1x32xf32> to vector<8x32xf32>
    %25 = arith.mulf %23, %24 : vector<8x32xf32>
    %26 = vector.broadcast %3 : vector<1x32xf32> to vector<8x32xf32>
    %27 = arith.addf %25, %26 : vector<8x32xf32>
    %28 = arith.truncf %27 : vector<8x32xf32> to vector<8x32xbf16>
    %cst_14 = arith.constant dense<0.000000e+00> : vector<8x64xf32>
    %29 = tpu.matmul %28, %4, %cst_14 {dimension_numbers = #tpu.dot_dimension_numbers<[1], [0], [0], [1], [0, 0, 1, 1], [], []>} : vector<8x32xbf16>, vector<32x64xbf16>, vector<8x64xf32> -> vector<8x64xf32>
    %30 = vector.broadcast %5 : vector<1x64xf32> to vector<8x64xf32>
    %31 = arith.addf %29, %30 : vector<8x64xf32>
    %32 = vector.extract_strided_slice %31 {offsets = [0, 0], sizes = [8, 32], strides = [1, 1]} : vector<8x64xf32> to vector<8x32xf32>
    %33 = vector.extract_strided_slice %31 {offsets = [0, 32], sizes = [8, 32], strides = [1, 1]} : vector<8x64xf32> to vector<8x32xf32>
    %34 = arith.negf %33 : vector<8x32xf32>
    %35 = math.exp %34 : vector<8x32xf32>
    %cst_15 = arith.constant 1.000000e+00 : f32
    %36 = vector.broadcast %cst_15 : f32 to vector<8x32xf32>
    %37 = arith.addf %36, %35 : vector<8x32xf32>
    %38 = arith.divf %36, %37 : vector<8x32xf32>
    %39 = arith.mulf %32, %38 : vector<8x32xf32>
    %cst_16 = arith.constant 0.000000e+00 : f32
    %40 = vector.broadcast %cst_16 : f32 to vector<15x32xf32>
    %c1 = arith.constant 1 : index
    %c0_17 = arith.constant 0 : index
    %41 = vector.load %arg13[%c1, %c0_17] : memref<39x32xf32, #tpu.memory_space<vmem>>, vector<15x32xf32>
    tpu.vector_store %arg13[%c1, %c0_17], %40 {strides = array<i32>} : memref<39x32xf32, #tpu.memory_space<vmem>>, vector<15x32xf32>,
    %cst_18 = arith.constant 0.000000e+00 : f32
    %42 = vector.broadcast %cst_18 : f32 to vector<15x32xf32>
    %c24 = arith.constant 24 : index
    %c0_19 = arith.constant 0 : index
    %43 = vector.load %arg13[%c24, %c0_19] : memref<39x32xf32, #tpu.memory_space<vmem>>, vector<15x32xf32>
    tpu.vector_store %arg13[%c24, %c0_19], %42 {strides = array<i32>} : memref<39x32xf32, #tpu.memory_space<vmem>>, vector<15x32xf32>,
    %c16 = arith.constant 16 : index
    %c0_20 = arith.constant 0 : index
    %44 = vector.load %arg13[%c16, %c0_20] : memref<39x32xf32, #tpu.memory_space<vmem>>, vector<8x32xf32>
    tpu.vector_store %arg13[%c16, %c0_20], %39 {strides = array<i32>} : memref<39x32xf32, #tpu.memory_space<vmem>>, vector<8x32xf32>,
    %c0_21 = arith.constant 0 : index
    %c0_22 = arith.constant 0 : index
    %45 = vector.load %arg7[%c0_21, %c0_22] : memref<1x32xf32, #tpu.memory_space<vmem>>, vector<1x32xf32>
    %46 = vector.shape_cast %45 : vector<1x32xf32> to vector<1x32xf32>
    %47 = vector.broadcast %46 : vector<1x32xf32> to vector<8x32xf32>
    %c0_i32 = arith.constant 0 : i32
    %c1_i32 = arith.constant 1 : i32
    %48 = arith.addi %c1_i32, %c0_i32 : i32
    %49 = arith.index_cast %48 : i32 to index
    %c0_23 = arith.constant 0 : index
    %50 = vector.load %arg13[%49, %c0_23] : memref<39x32xf32, #tpu.memory_space<vmem>>, vector<8x32xf32>
    %51 = arith.index_cast %c0_i32 : i32 to index
    %c0_24 = arith.constant 0 : index
    %52 = vector.load %arg6[%51, %c0_24] : memref<31x32xf32, #tpu.memory_space<vmem>>, vector<1x32xf32>
    %53 = vector.broadcast %52 : vector<1x32xf32> to vector<8x32xf32>
    %54 = arith.mulf %50, %53 : vector<8x32xf32>
    %55 = arith.addf %47, %54 : vector<8x32xf32>
    %c1_i32_25 = arith.constant 1 : i32
    %c1_i32_26 = arith.constant 1 : i32
    %56 = arith.addi %c1_i32_26, %c1_i32_25 : i32
    %57 = arith.index_cast %56 : i32 to index
    %c0_27 = arith.constant 0 : index
    %58 = vector.load %arg13[%57, %c0_27] : memref<39x32xf32, #tpu.memory_space<vmem>>, vector<8x32xf32>
    %59 = arith.index_cast %c1_i32_25 : i32 to index
    %c0_28 = arith.constant 0 : index
    %60 = vector.load %arg6[%59, %c0_28] : memref<31x32xf32, #tpu.memory_space<vmem>>, vector<1x32xf32>
    %61 = vector.broadcast %60 : vector<1x32xf32> to vector<8x32xf32>
    %62 = arith.mulf %58, %61 : vector<8x32xf32>
    %63 = arith.addf %55, %62 : vector<8x32xf32>
    %c2_i32 = arith.constant 2 : i32
    %c1_i32_29 = arith.constant 1 : i32
    %64 = arith.addi %c1_i32_29, %c2_i32 : i32
    %65 = arith.index_cast %64 : i32 to index
    %c0_30 = arith.constant 0 : index
    %66 = vector.load %arg13[%65, %c0_30] : memref<39x32xf32, #tpu.memory_space<vmem>>, vector<8x32xf32>
    %67 = arith.index_cast %c2_i32 : i32 to index
    %c0_31 = arith.constant 0 : index
    %68 = vector.load %arg6[%67, %c0_31] : memref<31x32xf32, #tpu.memory_space<vmem>>, vector<1x32xf32>
    %69 = vector.broadcast %68 : vector<1x32xf32> to vector<8x32xf32>
    %70 = arith.mulf %66, %69 : vector<8x32xf32>
    %71 = arith.addf %63, %70 : vector<8x32xf32>
    %c3_i32 = arith.constant 3 : i32
    %c1_i32_32 = arith.constant 1 : i32
    %72 = arith.addi %c1_i32_32, %c3_i32 : i32
    %73 = arith.index_cast %72 : i32 to index
    %c0_33 = arith.constant 0 : index
    %74 = vector.load %arg13[%73, %c0_33] : memref<39x32xf32, #tpu.memory_space<vmem>>, vector<8x32xf32>
    %75 = arith.index_cast %c3_i32 : i32 to index
    %c0_34 = arith.constant 0 : index
    %76 = vector.load %arg6[%75, %c0_34] : memref<31x32xf32, #tpu.memory_space<vmem>>, vector<1x32xf32>
    %77 = vector.broadcast %76 : vector<1x32xf32> to vector<8x32xf32>
    %78 = arith.mulf %74, %77 : vector<8x32xf32>
    %79 = arith.addf %71, %78 : vector<8x32xf32>
    %c4_i32 = arith.constant 4 : i32
    %c1_i32_35 = arith.constant 1 : i32
    %80 = arith.addi %c1_i32_35, %c4_i32 : i32
    %81 = arith.index_cast %80 : i32 to index
    %c0_36 = arith.constant 0 : index
    %82 = vector.load %arg13[%81, %c0_36] : memref<39x32xf32, #tpu.memory_space<vmem>>, vector<8x32xf32>
    %83 = arith.index_cast %c4_i32 : i32 to index
    %c0_37 = arith.constant 0 : index
    %84 = vector.load %arg6[%83, %c0_37] : memref<31x32xf32, #tpu.memory_space<vmem>>, vector<1x32xf32>
    %85 = vector.broadcast %84 : vector<1x32xf32> to vector<8x32xf32>
    %86 = arith.mulf %82, %85 : vector<8x32xf32>
    %87 = arith.addf %79, %86 : vector<8x32xf32>
    %c5_i32 = arith.constant 5 : i32
    %c1_i32_38 = arith.constant 1 : i32
    %88 = arith.addi %c1_i32_38, %c5_i32 : i32
    %89 = arith.index_cast %88 : i32 to index
    %c0_39 = arith.constant 0 : index
    %90 = vector.load %arg13[%89, %c0_39] : memref<39x32xf32, #tpu.memory_space<vmem>>, vector<8x32xf32>
    %91 = arith.index_cast %c5_i32 : i32 to index
    %c0_40 = arith.constant 0 : index
    %92 = vector.load %arg6[%91, %c0_40] : memref<31x32xf32, #tpu.memory_space<vmem>>, vector<1x32xf32>
    %93 = vector.broadcast %92 : vector<1x32xf32> to vector<8x32xf32>
    %94 = arith.mulf %90, %93 : vector<8x32xf32>
    %95 = arith.addf %87, %94 : vector<8x32xf32>
    %c6_i32 = arith.constant 6 : i32
    %c1_i32_41 = arith.constant 1 : i32
    %96 = arith.addi %c1_i32_41, %c6_i32 : i32
    %97 = arith.index_cast %96 : i32 to index
    %c0_42 = arith.constant 0 : index
    %98 = vector.load %arg13[%97, %c0_42] : memref<39x32xf32, #tpu.memory_space<vmem>>, vector<8x32xf32>
    %99 = arith.index_cast %c6_i32 : i32 to index
    %c0_43 = arith.constant 0 : index
    %100 = vector.load %arg6[%99, %c0_43] : memref<31x32xf32, #tpu.memory_space<vmem>>, vector<1x32xf32>
    %101 = vector.broadcast %100 : vector<1x32xf32> to vector<8x32xf32>
    %102 = arith.mulf %98, %101 : vector<8x32xf32>
    %103 = arith.addf %95, %102 : vector<8x32xf32>
    %c7_i32 = arith.constant 7 : i32
    %c1_i32_44 = arith.constant 1 : i32
    %104 = arith.addi %c1_i32_44, %c7_i32 : i32
    %105 = arith.index_cast %104 : i32 to index
    %c0_45 = arith.constant 0 : index
    %106 = vector.load %arg13[%105, %c0_45] : memref<39x32xf32, #tpu.memory_space<vmem>>, vector<8x32xf32>
    %107 = arith.index_cast %c7_i32 : i32 to index
    %c0_46 = arith.constant 0 : index
    %108 = vector.load %arg6[%107, %c0_46] : memref<31x32xf32, #tpu.memory_space<vmem>>, vector<1x32xf32>
    %109 = vector.broadcast %108 : vector<1x32xf32> to vector<8x32xf32>
    %110 = arith.mulf %106, %109 : vector<8x32xf32>
    %111 = arith.addf %103, %110 : vector<8x32xf32>
    %c8_i32 = arith.constant 8 : i32
    %c1_i32_47 = arith.constant 1 : i32
    %112 = arith.addi %c1_i32_47, %c8_i32 : i32
    %113 = arith.index_cast %112 : i32 to index
    %c0_48 = arith.constant 0 : index
    %114 = vector.load %arg13[%113, %c0_48] : memref<39x32xf32, #tpu.memory_space<vmem>>, vector<8x32xf32>
    %115 = arith.index_cast %c8_i32 : i32 to index
    %c0_49 = arith.constant 0 : index
    %116 = vector.load %arg6[%115, %c0_49] : memref<31x32xf32, #tpu.memory_space<vmem>>, vector<1x32xf32>
    %117 = vector.broadcast %116 : vector<1x32xf32> to vector<8x32xf32>
    %118 = arith.mulf %114, %117 : vector<8x32xf32>
    %119 = arith.addf %111, %118 : vector<8x32xf32>
    %c9_i32 = arith.constant 9 : i32
    %c1_i32_50 = arith.constant 1 : i32
    %120 = arith.addi %c1_i32_50, %c9_i32 : i32
    %121 = arith.index_cast %120 : i32 to index
    %c0_51 = arith.constant 0 : index
    %122 = vector.load %arg13[%121, %c0_51] : memref<39x32xf32, #tpu.memory_space<vmem>>, vector<8x32xf32>
    %123 = arith.index_cast %c9_i32 : i32 to index
    %c0_52 = arith.constant 0 : index
    %124 = vector.load %arg6[%123, %c0_52] : memref<31x32xf32, #tpu.memory_space<vmem>>, vector<1x32xf32>
    %125 = vector.broadcast %124 : vector<1x32xf32> to vector<8x32xf32>
    %126 = arith.mulf %122, %125 : vector<8x32xf32>
    %127 = arith.addf %119, %126 : vector<8x32xf32>
    %c10_i32 = arith.constant 10 : i32
    %c1_i32_53 = arith.constant 1 : i32
    %128 = arith.addi %c1_i32_53, %c10_i32 : i32
    %129 = arith.index_cast %128 : i32 to index
    %c0_54 = arith.constant 0 : index
    %130 = vector.load %arg13[%129, %c0_54] : memref<39x32xf32, #tpu.memory_space<vmem>>, vector<8x32xf32>
    %131 = arith.index_cast %c10_i32 : i32 to index
    %c0_55 = arith.constant 0 : index
    %132 = vector.load %arg6[%131, %c0_55] : memref<31x32xf32, #tpu.memory_space<vmem>>, vector<1x32xf32>
    %133 = vector.broadcast %132 : vector<1x32xf32> to vector<8x32xf32>
    %134 = arith.mulf %130, %133 : vector<8x32xf32>
    %135 = arith.addf %127, %134 : vector<8x32xf32>
    %c11_i32 = arith.constant 11 : i32
    %c1_i32_56 = arith.constant 1 : i32
    %136 = arith.addi %c1_i32_56, %c11_i32 : i32
    %137 = arith.index_cast %136 : i32 to index
    %c0_57 = arith.constant 0 : index
    %138 = vector.load %arg13[%137, %c0_57] : memref<39x32xf32, #tpu.memory_space<vmem>>, vector<8x32xf32>
    %139 = arith.index_cast %c11_i32 : i32 to index
    %c0_58 = arith.constant 0 : index
    %140 = vector.load %arg6[%139, %c0_58] : memref<31x32xf32, #tpu.memory_space<vmem>>, vector<1x32xf32>
    %141 = vector.broadcast %140 : vector<1x32xf32> to vector<8x32xf32>
    %142 = arith.mulf %138, %141 : vector<8x32xf32>
    %143 = arith.addf %135, %142 : vector<8x32xf32>
    %c12_i32 = arith.constant 12 : i32
    %c1_i32_59 = arith.constant 1 : i32
    %144 = arith.addi %c1_i32_59, %c12_i32 : i32
    %145 = arith.index_cast %144 : i32 to index
    %c0_60 = arith.constant 0 : index
    %146 = vector.load %arg13[%145, %c0_60] : memref<39x32xf32, #tpu.memory_space<vmem>>, vector<8x32xf32>
    %147 = arith.index_cast %c12_i32 : i32 to index
    %c0_61 = arith.constant 0 : index
    %148 = vector.load %arg6[%147, %c0_61] : memref<31x32xf32, #tpu.memory_space<vmem>>, vector<1x32xf32>
    %149 = vector.broadcast %148 : vector<1x32xf32> to vector<8x32xf32>
    %150 = arith.mulf %146, %149 : vector<8x32xf32>
    %151 = arith.addf %143, %150 : vector<8x32xf32>
    %c13_i32 = arith.constant 13 : i32
    %c1_i32_62 = arith.constant 1 : i32
    %152 = arith.addi %c1_i32_62, %c13_i32 : i32
    %153 = arith.index_cast %152 : i32 to index
    %c0_63 = arith.constant 0 : index
    %154 = vector.load %arg13[%153, %c0_63] : memref<39x32xf32, #tpu.memory_space<vmem>>, vector<8x32xf32>
    %155 = arith.index_cast %c13_i32 : i32 to index
    %c0_64 = arith.constant 0 : index
    %156 = vector.load %arg6[%155, %c0_64] : memref<31x32xf32, #tpu.memory_space<vmem>>, vector<1x32xf32>
    %157 = vector.broadcast %156 : vector<1x32xf32> to vector<8x32xf32>
    %158 = arith.mulf %154, %157 : vector<8x32xf32>
    %159 = arith.addf %151, %158 : vector<8x32xf32>
    %c14_i32 = arith.constant 14 : i32
    %c1_i32_65 = arith.constant 1 : i32
    %160 = arith.addi %c1_i32_65, %c14_i32 : i32
    %161 = arith.index_cast %160 : i32 to index
    %c0_66 = arith.constant 0 : index
    %162 = vector.load %arg13[%161, %c0_66] : memref<39x32xf32, #tpu.memory_space<vmem>>, vector<8x32xf32>
    %163 = arith.index_cast %c14_i32 : i32 to index
    %c0_67 = arith.constant 0 : index
    %164 = vector.load %arg6[%163, %c0_67] : memref<31x32xf32, #tpu.memory_space<vmem>>, vector<1x32xf32>
    %165 = vector.broadcast %164 : vector<1x32xf32> to vector<8x32xf32>
    %166 = arith.mulf %162, %165 : vector<8x32xf32>
    %167 = arith.addf %159, %166 : vector<8x32xf32>
    %c15_i32 = arith.constant 15 : i32
    %c1_i32_68 = arith.constant 1 : i32
    %168 = arith.addi %c1_i32_68, %c15_i32 : i32
    %169 = arith.index_cast %168 : i32 to index
    %c0_69 = arith.constant 0 : index
    %170 = vector.load %arg13[%169, %c0_69] : memref<39x32xf32, #tpu.memory_space<vmem>>, vector<8x32xf32>
    %171 = arith.index_cast %c15_i32 : i32 to index
    %c0_70 = arith.constant 0 : index
    %172 = vector.load %arg6[%171, %c0_70] : memref<31x32xf32, #tpu.memory_space<vmem>>, vector<1x32xf32>
    %173 = vector.broadcast %172 : vector<1x32xf32> to vector<8x32xf32>
    %174 = arith.mulf %170, %173 : vector<8x32xf32>
    %175 = arith.addf %167, %174 : vector<8x32xf32>
    %c16_i32 = arith.constant 16 : i32
    %c1_i32_71 = arith.constant 1 : i32
    %176 = arith.addi %c1_i32_71, %c16_i32 : i32
    %177 = arith.index_cast %176 : i32 to index
    %c0_72 = arith.constant 0 : index
    %178 = vector.load %arg13[%177, %c0_72] : memref<39x32xf32, #tpu.memory_space<vmem>>, vector<8x32xf32>
    %179 = arith.index_cast %c16_i32 : i32 to index
    %c0_73 = arith.constant 0 : index
    %180 = vector.load %arg6[%179, %c0_73] : memref<31x32xf32, #tpu.memory_space<vmem>>, vector<1x32xf32>
    %181 = vector.broadcast %180 : vector<1x32xf32> to vector<8x32xf32>
    %182 = arith.mulf %178, %181 : vector<8x32xf32>
    %183 = arith.addf %175, %182 : vector<8x32xf32>
    %c17_i32 = arith.constant 17 : i32
    %c1_i32_74 = arith.constant 1 : i32
    %184 = arith.addi %c1_i32_74, %c17_i32 : i32
    %185 = arith.index_cast %184 : i32 to index
    %c0_75 = arith.constant 0 : index
    %186 = vector.load %arg13[%185, %c0_75] : memref<39x32xf32, #tpu.memory_space<vmem>>, vector<8x32xf32>
    %187 = arith.index_cast %c17_i32 : i32 to index
    %c0_76 = arith.constant 0 : index
    %188 = vector.load %arg6[%187, %c0_76] : memref<31x32xf32, #tpu.memory_space<vmem>>, vector<1x32xf32>
    %189 = vector.broadcast %188 : vector<1x32xf32> to vector<8x32xf32>
    %190 = arith.mulf %186, %189 : vector<8x32xf32>
    %191 = arith.addf %183, %190 : vector<8x32xf32>
    %c18_i32 = arith.constant 18 : i32
    %c1_i32_77 = arith.constant 1 : i32
    %192 = arith.addi %c1_i32_77, %c18_i32 : i32
    %193 = arith.index_cast %192 : i32 to index
    %c0_78 = arith.constant 0 : index
    %194 = vector.load %arg13[%193, %c0_78] : memref<39x32xf32, #tpu.memory_space<vmem>>, vector<8x32xf32>
    %195 = arith.index_cast %c18_i32 : i32 to index
    %c0_79 = arith.constant 0 : index
    %196 = vector.load %arg6[%195, %c0_79] : memref<31x32xf32, #tpu.memory_space<vmem>>, vector<1x32xf32>
    %197 = vector.broadcast %196 : vector<1x32xf32> to vector<8x32xf32>
    %198 = arith.mulf %194, %197 : vector<8x32xf32>
    %199 = arith.addf %191, %198 : vector<8x32xf32>
    %c19_i32 = arith.constant 19 : i32
    %c1_i32_80 = arith.constant 1 : i32
    %200 = arith.addi %c1_i32_80, %c19_i32 : i32
    %201 = arith.index_cast %200 : i32 to index
    %c0_81 = arith.constant 0 : index
    %202 = vector.load %arg13[%201, %c0_81] : memref<39x32xf32, #tpu.memory_space<vmem>>, vector<8x32xf32>
    %203 = arith.index_cast %c19_i32 : i32 to index
    %c0_82 = arith.constant 0 : index
    %204 = vector.load %arg6[%203, %c0_82] : memref<31x32xf32, #tpu.memory_space<vmem>>, vector<1x32xf32>
    %205 = vector.broadcast %204 : vector<1x32xf32> to vector<8x32xf32>
    %206 = arith.mulf %202, %205 : vector<8x32xf32>
    %207 = arith.addf %199, %206 : vector<8x32xf32>
    %c20_i32 = arith.constant 20 : i32
    %c1_i32_83 = arith.constant 1 : i32
    %208 = arith.addi %c1_i32_83, %c20_i32 : i32
    %209 = arith.index_cast %208 : i32 to index
    %c0_84 = arith.constant 0 : index
    %210 = vector.load %arg13[%209, %c0_84] : memref<39x32xf32, #tpu.memory_space<vmem>>, vector<8x32xf32>
    %211 = arith.index_cast %c20_i32 : i32 to index
    %c0_85 = arith.constant 0 : index
    %212 = vector.load %arg6[%211, %c0_85] : memref<31x32xf32, #tpu.memory_space<vmem>>, vector<1x32xf32>
    %213 = vector.broadcast %212 : vector<1x32xf32> to vector<8x32xf32>
    %214 = arith.mulf %210, %213 : vector<8x32xf32>
    %215 = arith.addf %207, %214 : vector<8x32xf32>
    %c21_i32 = arith.constant 21 : i32
    %c1_i32_86 = arith.constant 1 : i32
    %216 = arith.addi %c1_i32_86, %c21_i32 : i32
    %217 = arith.index_cast %216 : i32 to index
    %c0_87 = arith.constant 0 : index
    %218 = vector.load %arg13[%217, %c0_87] : memref<39x32xf32, #tpu.memory_space<vmem>>, vector<8x32xf32>
    %219 = arith.index_cast %c21_i32 : i32 to index
    %c0_88 = arith.constant 0 : index
    %220 = vector.load %arg6[%219, %c0_88] : memref<31x32xf32, #tpu.memory_space<vmem>>, vector<1x32xf32>
    %221 = vector.broadcast %220 : vector<1x32xf32> to vector<8x32xf32>
    %222 = arith.mulf %218, %221 : vector<8x32xf32>
    %223 = arith.addf %215, %222 : vector<8x32xf32>
    %c22_i32 = arith.constant 22 : i32
    %c1_i32_89 = arith.constant 1 : i32
    %224 = arith.addi %c1_i32_89, %c22_i32 : i32
    %225 = arith.index_cast %224 : i32 to index
    %c0_90 = arith.constant 0 : index
    %226 = vector.load %arg13[%225, %c0_90] : memref<39x32xf32, #tpu.memory_space<vmem>>, vector<8x32xf32>
    %227 = arith.index_cast %c22_i32 : i32 to index
    %c0_91 = arith.constant 0 : index
    %228 = vector.load %arg6[%227, %c0_91] : memref<31x32xf32, #tpu.memory_space<vmem>>, vector<1x32xf32>
    %229 = vector.broadcast %228 : vector<1x32xf32> to vector<8x32xf32>
    %230 = arith.mulf %226, %229 : vector<8x32xf32>
    %231 = arith.addf %223, %230 : vector<8x32xf32>
    %c23_i32 = arith.constant 23 : i32
    %c1_i32_92 = arith.constant 1 : i32
    %232 = arith.addi %c1_i32_92, %c23_i32 : i32
    %233 = arith.index_cast %232 : i32 to index
    %c0_93 = arith.constant 0 : index
    %234 = vector.load %arg13[%233, %c0_93] : memref<39x32xf32, #tpu.memory_space<vmem>>, vector<8x32xf32>
    %235 = arith.index_cast %c23_i32 : i32 to index
    %c0_94 = arith.constant 0 : index
    %236 = vector.load %arg6[%235, %c0_94] : memref<31x32xf32, #tpu.memory_space<vmem>>, vector<1x32xf32>
    %237 = vector.broadcast %236 : vector<1x32xf32> to vector<8x32xf32>
    %238 = arith.mulf %234, %237 : vector<8x32xf32>
    %239 = arith.addf %231, %238 : vector<8x32xf32>
    %c24_i32 = arith.constant 24 : i32
    %c1_i32_95 = arith.constant 1 : i32
    %240 = arith.addi %c1_i32_95, %c24_i32 : i32
    %241 = arith.index_cast %240 : i32 to index
    %c0_96 = arith.constant 0 : index
    %242 = vector.load %arg13[%241, %c0_96] : memref<39x32xf32, #tpu.memory_space<vmem>>, vector<8x32xf32>
    %243 = arith.index_cast %c24_i32 : i32 to index
    %c0_97 = arith.constant 0 : index
    %244 = vector.load %arg6[%243, %c0_97] : memref<31x32xf32, #tpu.memory_space<vmem>>, vector<1x32xf32>
    %245 = vector.broadcast %244 : vector<1x32xf32> to vector<8x32xf32>
    %246 = arith.mulf %242, %245 : vector<8x32xf32>
    %247 = arith.addf %239, %246 : vector<8x32xf32>
    %c25_i32 = arith.constant 25 : i32
    %c1_i32_98 = arith.constant 1 : i32
    %248 = arith.addi %c1_i32_98, %c25_i32 : i32
    %249 = arith.index_cast %248 : i32 to index
    %c0_99 = arith.constant 0 : index
    %250 = vector.load %arg13[%249, %c0_99] : memref<39x32xf32, #tpu.memory_space<vmem>>, vector<8x32xf32>
    %251 = arith.index_cast %c25_i32 : i32 to index
    %c0_100 = arith.constant 0 : index
    %252 = vector.load %arg6[%251, %c0_100] : memref<31x32xf32, #tpu.memory_space<vmem>>, vector<1x32xf32>
    %253 = vector.broadcast %252 : vector<1x32xf32> to vector<8x32xf32>
    %254 = arith.mulf %250, %253 : vector<8x32xf32>
    %255 = arith.addf %247, %254 : vector<8x32xf32>
    %c26_i32 = arith.constant 26 : i32
    %c1_i32_101 = arith.constant 1 : i32
    %256 = arith.addi %c1_i32_101, %c26_i32 : i32
    %257 = arith.index_cast %256 : i32 to index
    %c0_102 = arith.constant 0 : index
    %258 = vector.load %arg13[%257, %c0_102] : memref<39x32xf32, #tpu.memory_space<vmem>>, vector<8x32xf32>
    %259 = arith.index_cast %c26_i32 : i32 to index
    %c0_103 = arith.constant 0 : index
    %260 = vector.load %arg6[%259, %c0_103] : memref<31x32xf32, #tpu.memory_space<vmem>>, vector<1x32xf32>
    %261 = vector.broadcast %260 : vector<1x32xf32> to vector<8x32xf32>
    %262 = arith.mulf %258, %261 : vector<8x32xf32>
    %263 = arith.addf %255, %262 : vector<8x32xf32>
    %c27_i32 = arith.constant 27 : i32
    %c1_i32_104 = arith.constant 1 : i32
    %264 = arith.addi %c1_i32_104, %c27_i32 : i32
    %265 = arith.index_cast %264 : i32 to index
    %c0_105 = arith.constant 0 : index
    %266 = vector.load %arg13[%265, %c0_105] : memref<39x32xf32, #tpu.memory_space<vmem>>, vector<8x32xf32>
    %267 = arith.index_cast %c27_i32 : i32 to index
    %c0_106 = arith.constant 0 : index
    %268 = vector.load %arg6[%267, %c0_106] : memref<31x32xf32, #tpu.memory_space<vmem>>, vector<1x32xf32>
    %269 = vector.broadcast %268 : vector<1x32xf32> to vector<8x32xf32>
    %270 = arith.mulf %266, %269 : vector<8x32xf32>
    %271 = arith.addf %263, %270 : vector<8x32xf32>
    %c28_i32 = arith.constant 28 : i32
    %c1_i32_107 = arith.constant 1 : i32
    %272 = arith.addi %c1_i32_107, %c28_i32 : i32
    %273 = arith.index_cast %272 : i32 to index
    %c0_108 = arith.constant 0 : index
    %274 = vector.load %arg13[%273, %c0_108] : memref<39x32xf32, #tpu.memory_space<vmem>>, vector<8x32xf32>
    %275 = arith.index_cast %c28_i32 : i32 to index
    %c0_109 = arith.constant 0 : index
    %276 = vector.load %arg6[%275, %c0_109] : memref<31x32xf32, #tpu.memory_space<vmem>>, vector<1x32xf32>
    %277 = vector.broadcast %276 : vector<1x32xf32> to vector<8x32xf32>
    %278 = arith.mulf %274, %277 : vector<8x32xf32>
    %279 = arith.addf %271, %278 : vector<8x32xf32>
    %c29_i32 = arith.constant 29 : i32
    %c1_i32_110 = arith.constant 1 : i32
    %280 = arith.addi %c1_i32_110, %c29_i32 : i32
    %281 = arith.index_cast %280 : i32 to index
    %c0_111 = arith.constant 0 : index
    %282 = vector.load %arg13[%281, %c0_111] : memref<39x32xf32, #tpu.memory_space<vmem>>, vector<8x32xf32>
    %283 = arith.index_cast %c29_i32 : i32 to index
    %c0_112 = arith.constant 0 : index
    %284 = vector.load %arg6[%283, %c0_112] : memref<31x32xf32, #tpu.memory_space<vmem>>, vector<1x32xf32>
    %285 = vector.broadcast %284 : vector<1x32xf32> to vector<8x32xf32>
    %286 = arith.mulf %282, %285 : vector<8x32xf32>
    %287 = arith.addf %279, %286 : vector<8x32xf32>
    %c30_i32 = arith.constant 30 : i32
    %c1_i32_113 = arith.constant 1 : i32
    %288 = arith.addi %c1_i32_113, %c30_i32 : i32
    %289 = arith.index_cast %288 : i32 to index
    %c0_114 = arith.constant 0 : index
    %290 = vector.load %arg13[%289, %c0_114] : memref<39x32xf32, #tpu.memory_space<vmem>>, vector<8x32xf32>
    %291 = arith.index_cast %c30_i32 : i32 to index
    %c0_115 = arith.constant 0 : index
    %292 = vector.load %arg6[%291, %c0_115] : memref<31x32xf32, #tpu.memory_space<vmem>>, vector<1x32xf32>
    %293 = vector.broadcast %292 : vector<1x32xf32> to vector<8x32xf32>
    %294 = arith.mulf %290, %293 : vector<8x32xf32>
    %295 = arith.addf %287, %294 : vector<8x32xf32>
    %c31_i32 = arith.constant 31 : i32
    %c0_116 = arith.constant 0 : index
    %c0_117 = arith.constant 0 : index
    %296 = vector.load %arg8[%c0_116, %c0_117] : memref<1x32xf32, #tpu.memory_space<vmem>>, vector<1x32xf32>
    %297 = vector.broadcast %296 : vector<1x32xf32> to vector<8x32xf32>
    %298 = arith.mulf %295, %297 : vector<8x32xf32>
    %c0_118 = arith.constant 0 : index
    %c0_119 = arith.constant 0 : index
    %299 = vector.load %arg9[%c0_118, %c0_119] : memref<1x32xf32, #tpu.memory_space<vmem>>, vector<1x32xf32>
    %300 = vector.broadcast %299 : vector<1x32xf32> to vector<8x32xf32>
    %301 = arith.addf %298, %300 : vector<8x32xf32>
    %302 = arith.negf %301 : vector<8x32xf32>
    %303 = math.exp %302 : vector<8x32xf32>
    %cst_120 = arith.constant 1.000000e+00 : f32
    %304 = vector.broadcast %cst_120 : f32 to vector<8x32xf32>
    %305 = arith.addf %304, %303 : vector<8x32xf32>
    %306 = arith.divf %304, %305 : vector<8x32xf32>
    %307 = arith.mulf %301, %306 : vector<8x32xf32>
    %308 = arith.truncf %307 : vector<8x32xf32> to vector<8x32xbf16>
    %c0_121 = arith.constant 0 : index
    %c0_122 = arith.constant 0 : index
    %309 = vector.load %arg10[%c0_121, %c0_122] : memref<32x32xbf16, #tpu.memory_space<vmem>>, vector<32x32xbf16>
    %cst_123 = arith.constant dense<0.000000e+00> : vector<8x32xf32>
    %310 = tpu.matmul %308, %309, %cst_123 {dimension_numbers = #tpu.dot_dimension_numbers<[1], [0], [0], [1], [0, 0, 1, 1], [], []>} : vector<8x32xbf16>, vector<32x32xbf16>, vector<8x32xf32> -> vector<8x32xf32>
    %c0_124 = arith.constant 0 : index
    %c0_125 = arith.constant 0 : index
    %311 = vector.load %arg11[%c0_124, %c0_125] : memref<1x32xf32, #tpu.memory_space<vmem>>, vector<1x32xf32>
    %312 = vector.broadcast %311 : vector<1x32xf32> to vector<8x32xf32>
    %313 = arith.addf %310, %312 : vector<8x32xf32>
    %314 = arith.addf %1, %313 : vector<8x32xf32>
    %c0_126 = arith.constant 0 : index
    %c0_127 = arith.constant 0 : index
    %c0_128 = arith.constant 0 : index
    %315 = vector.load %arg12[%c0_126, %c0_127, %c0_128] : memref<1x8x32xf32, #tpu.memory_space<vmem>>, vector<1x8x32xf32>
    %316 = vector.shape_cast %315 : vector<1x8x32xf32> to vector<8x32xf32>
    %317 = vector.shape_cast %314 : vector<8x32xf32> to vector<1x8x32xf32>
    tpu.vector_store %arg12[%c0_126, %c0_127, %c0_128], %317 {strides = array<i32>} : memref<1x8x32xf32, #tpu.memory_space<vmem>>, vector<1x8x32xf32>,
    return
  }
  func.func @transform_0(%arg0: i32) -> (i32, i32, i32) {
    %c0_i32 = arith.constant 0 : i32
    %c0_i32_0 = arith.constant 0 : i32
    %c0_i32_1 = arith.constant 0 : i32
    return %arg0, %c0_i32, %c0_i32_0 : i32, i32, i32
  }
  func.func @transform_1(%arg0: i32) -> (i32, i32) {
    %c0_i32 = arith.constant 0 : i32
    %c0_i32_0 = arith.constant 0 : i32
    %c0_i32_1 = arith.constant 0 : i32
    return %c0_i32, %c0_i32_0 : i32, i32
  }
  func.func @transform_2(%arg0: i32) -> (i32, i32) {
    %c0_i32 = arith.constant 0 : i32
    %c0_i32_0 = arith.constant 0 : i32
    %c0_i32_1 = arith.constant 0 : i32
    return %c0_i32, %c0_i32_0 : i32, i32
  }
  func.func @transform_3(%arg0: i32) -> (i32, i32) {
    %c0_i32 = arith.constant 0 : i32
    %c0_i32_0 = arith.constant 0 : i32
    %c0_i32_1 = arith.constant 0 : i32
    return %c0_i32, %c0_i32_0 : i32, i32
  }
  func.func @transform_4(%arg0: i32) -> (i32, i32) {
    %c0_i32 = arith.constant 0 : i32
    %c0_i32_0 = arith.constant 0 : i32
    %c0_i32_1 = arith.constant 0 : i32
    return %c0_i32, %c0_i32_0 : i32, i32
  }
  func.func @transform_5(%arg0: i32) -> (i32, i32) {
    %c0_i32 = arith.constant 0 : i32
    %c0_i32_0 = arith.constant 0 : i32
    %c0_i32_1 = arith.constant 0 : i32
    return %c0_i32, %c0_i32_0 : i32, i32
  }
  func.func @transform_6(%arg0: i32) -> (i32, i32) {
    %c0_i32 = arith.constant 0 : i32
    %c0_i32_0 = arith.constant 0 : i32
    %c0_i32_1 = arith.constant 0 : i32
    return %c0_i32, %c0_i32_0 : i32, i32
  }
  func.func @transform_7(%arg0: i32) -> (i32, i32) {
    %c0_i32 = arith.constant 0 : i32
    %c0_i32_0 = arith.constant 0 : i32
    %c0_i32_1 = arith.constant 0 : i32
    return %c0_i32, %c0_i32_0 : i32, i32
  }
  func.func @transform_8(%arg0: i32) -> (i32, i32) {
    %c0_i32 = arith.constant 0 : i32
    %c0_i32_0 = arith.constant 0 : i32
    %c0_i32_1 = arith.constant 0 : i32
    return %c0_i32, %c0_i32_0 : i32, i32
  }
  func.func @transform_9(%arg0: i32) -> (i32, i32) {
    %c0_i32 = arith.constant 0 : i32
    %c0_i32_0 = arith.constant 0 : i32
    %c0_i32_1 = arith.constant 0 : i32
    return %c0_i32, %c0_i32_0 : i32, i32
  }
  func.func @transform_10(%arg0: i32) -> (i32, i32) {
    %c0_i32 = arith.constant 0 : i32
    %c0_i32_0 = arith.constant 0 : i32
    %c0_i32_1 = arith.constant 0 : i32
    return %c0_i32, %c0_i32_0 : i32, i32
  }
  func.func @transform_11(%arg0: i32) -> (i32, i32, i32) {
    %c0_i32 = arith.constant 0 : i32
    %c0_i32_0 = arith.constant 0 : i32
    %c0_i32_1 = arith.constant 0 : i32
    return %arg0, %c0_i32, %c0_i32_0 : i32, i32, i32
  }
}

module attributes {stable_mosaic.version = 11 : i64} {
  func.func @_ffn_kernel(%arg0: i32, %arg1: i32, %arg2: memref<1x8x32xf32, #tpu.memory_space<vmem>>, %arg3: memref<1x32xf32, #tpu.memory_space<vmem>>, %arg4: memref<1x32xf32, #tpu.memory_space<vmem>>, %arg5: memref<32x64xbf16, #tpu.memory_space<vmem>>, %arg6: memref<1x64xf32, #tpu.memory_space<vmem>>, %arg7: memref<64x32xbf16, #tpu.memory_space<vmem>>, %arg8: memref<1x32xf32, #tpu.memory_space<vmem>>, %arg9: memref<1x32xf32, #tpu.memory_space<vmem>>, %arg10: memref<1x32xf32, #tpu.memory_space<vmem>>, %arg11: memref<1x8x32xf32, #tpu.memory_space<vmem>>) attributes {dimension_semantics = [#tpu.dimension_semantics<parallel>, #tpu.dimension_semantics<parallel>], iteration_bounds = array<i64: 2, 1>, scalar_prefetch = 0 : i64, scratch_operands = 0 : i64, tpu.core_type = #tpu.core_type<tc>, window_params = [{transform_indices = @transform_0, window_bounds = array<i64: 1, 8, 32>}, {pipeline_mode = #tpu.pipeline_mode<synchronous>, transform_indices = @transform_1, window_bounds = array<i64: 1, 32>}, {pipeline_mode = #tpu.pipeline_mode<synchronous>, transform_indices = @transform_2, window_bounds = array<i64: 1, 32>}, {pipeline_mode = #tpu.pipeline_mode<synchronous>, transform_indices = @transform_3, window_bounds = array<i64: 32, 64>}, {pipeline_mode = #tpu.pipeline_mode<synchronous>, transform_indices = @transform_4, window_bounds = array<i64: 1, 64>}, {pipeline_mode = #tpu.pipeline_mode<synchronous>, transform_indices = @transform_5, window_bounds = array<i64: 64, 32>}, {pipeline_mode = #tpu.pipeline_mode<synchronous>, transform_indices = @transform_6, window_bounds = array<i64: 1, 32>}, {pipeline_mode = #tpu.pipeline_mode<synchronous>, transform_indices = @transform_7, window_bounds = array<i64: 1, 32>}, {pipeline_mode = #tpu.pipeline_mode<synchronous>, transform_indices = @transform_8, window_bounds = array<i64: 1, 32>}, {transform_indices = @transform_9, window_bounds = array<i64: 1, 8, 32>}]} {
    %c0 = arith.constant 0 : index
    %c0_0 = arith.constant 0 : index
    %c0_1 = arith.constant 0 : index
    %0 = vector.load %arg2[%c0, %c0_0, %c0_1] : memref<1x8x32xf32, #tpu.memory_space<vmem>>, vector<1x8x32xf32>
    %1 = vector.shape_cast %0 : vector<1x8x32xf32> to vector<8x32xf32>
    %c0_2 = arith.constant 0 : index
    %c0_3 = arith.constant 0 : index
    %2 = vector.load %arg3[%c0_2, %c0_3] : memref<1x32xf32, #tpu.memory_space<vmem>>, vector<1x32xf32>
    %c0_4 = arith.constant 0 : index
    %c0_5 = arith.constant 0 : index
    %3 = vector.load %arg4[%c0_4, %c0_5] : memref<1x32xf32, #tpu.memory_space<vmem>>, vector<1x32xf32>
    %cst = arith.constant dense<0.000000e+00> : vector<8xf32>
    %4 = vector.multi_reduction <add>, %1, %cst [1] : vector<8x32xf32> to vector<8xf32>
    %5 = vector.shape_cast %4 : vector<8xf32> to vector<8x1xf32>
    %cst_6 = arith.constant 3.200000e+01 : f32
    %6 = vector.broadcast %cst_6 : f32 to vector<8x1xf32>
    %7 = arith.divf %5, %6 : vector<8x1xf32>
    %8 = vector.broadcast %7 : vector<8x1xf32> to vector<8x32xf32>
    %9 = arith.subf %1, %8 : vector<8x32xf32>
    %10 = arith.mulf %9, %9 : vector<8x32xf32>
    %cst_7 = arith.constant dense<0.000000e+00> : vector<8xf32>
    %11 = vector.multi_reduction <add>, %10, %cst_7 [1] : vector<8x32xf32> to vector<8xf32>
    %12 = vector.shape_cast %11 : vector<8xf32> to vector<8x1xf32>
    %cst_8 = arith.constant 3.200000e+01 : f32
    %13 = vector.broadcast %cst_8 : f32 to vector<8x1xf32>
    %14 = arith.divf %12, %13 : vector<8x1xf32>
    %15 = vector.broadcast %7 : vector<8x1xf32> to vector<8x32xf32>
    %16 = arith.subf %1, %15 : vector<8x32xf32>
    %cst_9 = arith.constant 9.99999974E-6 : f32
    %17 = vector.broadcast %cst_9 : f32 to vector<8x1xf32>
    %18 = arith.addf %14, %17 : vector<8x1xf32>
    %19 = math.rsqrt %18 : vector<8x1xf32>
    %20 = vector.broadcast %19 : vector<8x1xf32> to vector<8x32xf32>
    %21 = arith.mulf %16, %20 : vector<8x32xf32>
    %22 = vector.broadcast %2 : vector<1x32xf32> to vector<8x32xf32>
    %23 = arith.mulf %21, %22 : vector<8x32xf32>
    %24 = vector.broadcast %3 : vector<1x32xf32> to vector<8x32xf32>
    %25 = arith.addf %23, %24 : vector<8x32xf32>
    %26 = arith.truncf %25 : vector<8x32xf32> to vector<8x32xbf16>
    %c0_10 = arith.constant 0 : index
    %c0_11 = arith.constant 0 : index
    %27 = vector.load %arg5[%c0_10, %c0_11] : memref<32x64xbf16, #tpu.memory_space<vmem>>, vector<32x64xbf16>
    %cst_12 = arith.constant dense<0.000000e+00> : vector<8x64xf32>
    %28 = tpu.matmul %26, %27, %cst_12 {dimension_numbers = #tpu.dot_dimension_numbers<[1], [0], [0], [1], [0, 0, 1, 1], [], []>} : vector<8x32xbf16>, vector<32x64xbf16>, vector<8x64xf32> -> vector<8x64xf32>
    %c0_13 = arith.constant 0 : index
    %c0_14 = arith.constant 0 : index
    %29 = vector.load %arg6[%c0_13, %c0_14] : memref<1x64xf32, #tpu.memory_space<vmem>>, vector<1x64xf32>
    %30 = vector.broadcast %29 : vector<1x64xf32> to vector<8x64xf32>
    %31 = arith.addf %28, %30 : vector<8x64xf32>
    %32 = arith.negf %31 : vector<8x64xf32>
    %33 = math.exp %32 : vector<8x64xf32>
    %cst_15 = arith.constant 1.000000e+00 : f32
    %34 = vector.broadcast %cst_15 : f32 to vector<8x64xf32>
    %35 = arith.addf %34, %33 : vector<8x64xf32>
    %36 = arith.divf %34, %35 : vector<8x64xf32>
    %37 = arith.mulf %31, %36 : vector<8x64xf32>
    %38 = arith.truncf %37 : vector<8x64xf32> to vector<8x64xbf16>
    %c0_16 = arith.constant 0 : index
    %c0_17 = arith.constant 0 : index
    %39 = vector.load %arg7[%c0_16, %c0_17] : memref<64x32xbf16, #tpu.memory_space<vmem>>, vector<64x32xbf16>
    %cst_18 = arith.constant dense<0.000000e+00> : vector<8x32xf32>
    %40 = tpu.matmul %38, %39, %cst_18 {dimension_numbers = #tpu.dot_dimension_numbers<[1], [0], [0], [1], [0, 0, 1, 1], [], []>} : vector<8x64xbf16>, vector<64x32xbf16>, vector<8x32xf32> -> vector<8x32xf32>
    %c0_19 = arith.constant 0 : index
    %c0_20 = arith.constant 0 : index
    %41 = vector.load %arg8[%c0_19, %c0_20] : memref<1x32xf32, #tpu.memory_space<vmem>>, vector<1x32xf32>
    %42 = vector.broadcast %41 : vector<1x32xf32> to vector<8x32xf32>
    %43 = arith.addf %40, %42 : vector<8x32xf32>
    %cst_21 = arith.constant 5.000000e-01 : f32
    %44 = vector.broadcast %cst_21 : f32 to vector<8x32xf32>
    %45 = arith.mulf %44, %43 : vector<8x32xf32>
    %46 = arith.addf %1, %45 : vector<8x32xf32>
    %c0_22 = arith.constant 0 : index
    %c0_23 = arith.constant 0 : index
    %47 = vector.load %arg9[%c0_22, %c0_23] : memref<1x32xf32, #tpu.memory_space<vmem>>, vector<1x32xf32>
    %c0_24 = arith.constant 0 : index
    %c0_25 = arith.constant 0 : index
    %48 = vector.load %arg10[%c0_24, %c0_25] : memref<1x32xf32, #tpu.memory_space<vmem>>, vector<1x32xf32>
    %cst_26 = arith.constant dense<0.000000e+00> : vector<8xf32>
    %49 = vector.multi_reduction <add>, %46, %cst_26 [1] : vector<8x32xf32> to vector<8xf32>
    %50 = vector.shape_cast %49 : vector<8xf32> to vector<8x1xf32>
    %cst_27 = arith.constant 3.200000e+01 : f32
    %51 = vector.broadcast %cst_27 : f32 to vector<8x1xf32>
    %52 = arith.divf %50, %51 : vector<8x1xf32>
    %53 = vector.broadcast %52 : vector<8x1xf32> to vector<8x32xf32>
    %54 = arith.subf %46, %53 : vector<8x32xf32>
    %55 = arith.mulf %54, %54 : vector<8x32xf32>
    %cst_28 = arith.constant dense<0.000000e+00> : vector<8xf32>
    %56 = vector.multi_reduction <add>, %55, %cst_28 [1] : vector<8x32xf32> to vector<8xf32>
    %57 = vector.shape_cast %56 : vector<8xf32> to vector<8x1xf32>
    %cst_29 = arith.constant 3.200000e+01 : f32
    %58 = vector.broadcast %cst_29 : f32 to vector<8x1xf32>
    %59 = arith.divf %57, %58 : vector<8x1xf32>
    %60 = vector.broadcast %52 : vector<8x1xf32> to vector<8x32xf32>
    %61 = arith.subf %46, %60 : vector<8x32xf32>
    %cst_30 = arith.constant 9.99999974E-6 : f32
    %62 = vector.broadcast %cst_30 : f32 to vector<8x1xf32>
    %63 = arith.addf %59, %62 : vector<8x1xf32>
    %64 = math.rsqrt %63 : vector<8x1xf32>
    %65 = vector.broadcast %64 : vector<8x1xf32> to vector<8x32xf32>
    %66 = arith.mulf %61, %65 : vector<8x32xf32>
    %67 = vector.broadcast %47 : vector<1x32xf32> to vector<8x32xf32>
    %68 = arith.mulf %66, %67 : vector<8x32xf32>
    %69 = vector.broadcast %48 : vector<1x32xf32> to vector<8x32xf32>
    %70 = arith.addf %68, %69 : vector<8x32xf32>
    %c0_31 = arith.constant 0 : index
    %c0_32 = arith.constant 0 : index
    %c0_33 = arith.constant 0 : index
    %71 = vector.load %arg11[%c0_31, %c0_32, %c0_33] : memref<1x8x32xf32, #tpu.memory_space<vmem>>, vector<1x8x32xf32>
    %72 = vector.shape_cast %71 : vector<1x8x32xf32> to vector<8x32xf32>
    %73 = vector.shape_cast %70 : vector<8x32xf32> to vector<1x8x32xf32>
    tpu.vector_store %arg11[%c0_31, %c0_32, %c0_33], %73 {strides = array<i32>} : memref<1x8x32xf32, #tpu.memory_space<vmem>>, vector<1x8x32xf32>,
    return
  }
  func.func @transform_0(%arg0: i32, %arg1: i32) -> (i32, i32, i32) {
    %c0_i32 = arith.constant 0 : i32
    %c0_i32_0 = arith.constant 0 : i32
    return %arg0, %arg1, %c0_i32 : i32, i32, i32
  }
  func.func @transform_1(%arg0: i32, %arg1: i32) -> (i32, i32) {
    %c0_i32 = arith.constant 0 : i32
    %c0_i32_0 = arith.constant 0 : i32
    %c0_i32_1 = arith.constant 0 : i32
    return %c0_i32, %c0_i32_0 : i32, i32
  }
  func.func @transform_2(%arg0: i32, %arg1: i32) -> (i32, i32) {
    %c0_i32 = arith.constant 0 : i32
    %c0_i32_0 = arith.constant 0 : i32
    %c0_i32_1 = arith.constant 0 : i32
    return %c0_i32, %c0_i32_0 : i32, i32
  }
  func.func @transform_3(%arg0: i32, %arg1: i32) -> (i32, i32) {
    %c0_i32 = arith.constant 0 : i32
    %c0_i32_0 = arith.constant 0 : i32
    %c0_i32_1 = arith.constant 0 : i32
    return %c0_i32, %c0_i32_0 : i32, i32
  }
  func.func @transform_4(%arg0: i32, %arg1: i32) -> (i32, i32) {
    %c0_i32 = arith.constant 0 : i32
    %c0_i32_0 = arith.constant 0 : i32
    %c0_i32_1 = arith.constant 0 : i32
    return %c0_i32, %c0_i32_0 : i32, i32
  }
  func.func @transform_5(%arg0: i32, %arg1: i32) -> (i32, i32) {
    %c0_i32 = arith.constant 0 : i32
    %c0_i32_0 = arith.constant 0 : i32
    %c0_i32_1 = arith.constant 0 : i32
    return %c0_i32, %c0_i32_0 : i32, i32
  }
  func.func @transform_6(%arg0: i32, %arg1: i32) -> (i32, i32) {
    %c0_i32 = arith.constant 0 : i32
    %c0_i32_0 = arith.constant 0 : i32
    %c0_i32_1 = arith.constant 0 : i32
    return %c0_i32, %c0_i32_0 : i32, i32
  }
  func.func @transform_7(%arg0: i32, %arg1: i32) -> (i32, i32) {
    %c0_i32 = arith.constant 0 : i32
    %c0_i32_0 = arith.constant 0 : i32
    %c0_i32_1 = arith.constant 0 : i32
    return %c0_i32, %c0_i32_0 : i32, i32
  }
  func.func @transform_8(%arg0: i32, %arg1: i32) -> (i32, i32) {
    %c0_i32 = arith.constant 0 : i32
    %c0_i32_0 = arith.constant 0 : i32
    %c0_i32_1 = arith.constant 0 : i32
    return %c0_i32, %c0_i32_0 : i32, i32
  }
  func.func @transform_9(%arg0: i32, %arg1: i32) -> (i32, i32, i32) {
    %c0_i32 = arith.constant 0 : i32
    %c0_i32_0 = arith.constant 0 : i32
    return %arg0, %arg1, %c0_i32 : i32, i32, i32
  }
}

</mosaic_0001>

<bundles_post_ra>
// kernel: _lambda_.6
= control target key start
LH: loop header
LB: loop body
LE: loop exit
PB: predicated region body
PF: predicated region fallthrough
CT: control target
= control target key end

     0   :  { %12 = vsyncpa [#allocation3], 0  ;;  %s1506_s0 = inlined_call_operand.hbm [shape: f32[2,8,32], index: 0, kind: input, shape index: {}]   ;;  %s1507_s1 = inlined_call_operand.hbm [shape: f32[1,32], index: 1, kind: input, shape index: {}]   ;;  %s1508_s2 = inlined_call_operand.hbm [shape: f32[1,32], index: 2, kind: input, shape index: {}]   ;;  %s1509_s3 = inlined_call_operand.hbm [shape: bf16[32,96], index: 3, kind: input, shape index: {}]   ;;  %s1510_s4 = inlined_call_operand.hbm [shape: bf16[2,8,32], index: 4, kind: output, shape index: {0}]   ;;  %s1511_s5 = inlined_call_operand.hbm [shape: bf16[2,8,32], index: 5, kind: output, shape index: {1}]   ;;  %s1512_s6 = inlined_call_operand.hbm [shape: bf16[2,8,32], index: 6, kind: output, shape index: {2}]  }
   0x1   :  { %14 = vsyncpa [#allocation3 + $0x1], 0 }
   0x2   :  { %15 = vsyncpa [#allocation6], 0 }
   0x3   :  { %16 = vsyncpa [#allocation9], 0 }
   0x4   :  { %17 = vsyncpa [#allocation4], 0 }
   0x5   :  { %19 = vsyncpa [#allocation4 + $0x1], 0 }
   0x6   :  { %20 = vsyncpa [#allocation12], 0 }
   0x7   :  { %22 = vsyncpa [#allocation12 + $0x1], 0  ;;  %s1148_s21 = smov 0   ;;  %s1150_s22 = smov 0  }
   0x8   :  { %s1152_s23 = smov 0   ;;  %s1154_s24 = smov 0  }
   0x9   :  { %s1156_s25 = smov 0   ;;  %s1158_s26 = smov 0  }
   0xa LB: > { %s1179_s27 = sadd.s32 4294967295, %s1098_s26   ;;  %s1516_s28 = sadd.s32 4294967294, %s1098_s26   ;;  %s1098_s26 = sphi %s1158_s26, %s28_s26   ;;  %s1094_s25 = sphi %s1156_s25, %s1538_s25   ;;  %s1090_s24 = sphi %s1154_s24, %s1537_s24   ;;  %s1086_s23 = sphi %s1152_s23, %s1536_s23   ;;  %s1082_s22 = sphi %s1150_s22, %s1535_s22   ;;  %s1078_s21 = sphi %s1148_s21, %s1534_s21  }
   0xb   : > { %p62_p0 = scmp.ne.s32.totalorder %s1082_s22, %s1078_s21  ;;  %p1513_p1 = scmp.eq.s32.totalorder %s1179_s27, 0 }
   0xc   : > { %p157_p3 = scmp.eq.s32.totalorder %s1516_s28, 1  ;;  %p680_p5 = scmp.ge.s32.totalorder %s1098_s26, 1 }
   0xd   : > { %p1190_p4 = por %p1513_p1, %p62_p0  ;;  %p220_p7 = scmp.lt.s32.totalorder %s1098_s26, 3 }
   0xe   : > { %p1195_p6 = por %p157_p3, %p62_p0  ;;  %s1100_s8 = smov [#allocation5]  }
   0xf   : > { %s1517_s29 = scalar_select %p1190_p4, 1, 0 }
  0x10   : > { %s1518_s30 = scalar_select %p1195_p6, 1, 0 }
  0x11   : > { %p1200_p8 = pnand %p680_p5, %p220_p7  ;;  %s233_s9 = sshll.u32 %s1100_s8, 4  ;;  %s234_s9 = int_to_ptr.vmem [resolvable:$true] %s233_s9 }
  0x12   : > { %s1101_s10 = smov [#allocation7]   ;;  %s1102_s13 = smov [#allocation8]  }
  0x13   : > { %s1519_s7 = scalar_select %p1200_p8, 1, 0 }
  0x14   : > { %p741_p10 = pneg %p1200_p8  ;;  %s244_s11 = sshll.u32 %s1101_s10, 4  ;;  %s1213_s11 = int_to_ptr.vmem [resolvable:$true] %s244_s11 }
  0x15   : > { %s254_s14 = sshll.u32 %s1102_s13, 4  ;;  %s834_s17 = scalar_lea.hbm %s1507_s1, 16  ;;  %s1215_s14 = int_to_ptr.vmem [resolvable:$true] %s254_s14 }
  0x16   : > { %p1209_p11 = pnand %p741_p10, %p1513_p1  ;;  %p835_p12 = scmp.ne.s32.totalorder %s1507_s1, %s834_s17 }
  0x17   : > { %p841_p5 = scmp.lt.u32.totalorder %s834_s17, %s1507_s1 }
  0x18   : > { %p1225_p13 = pneg %p1209_p11 }
  0x1a   : > { %p837_p0 = pnand %p1225_p13, %p835_p12 }
  0x1c   : > { %p838_p3 = pneg %p837_p0 }
  0x1e   : > { %p843_p7 = pnand %p841_p5, %p838_p3 }
  0x20   : > { %846 = shalt.err (!%p843_p7)
}
  0x21   : > { %s847_s13 = scalar_lea.vmem %s234_s9, 16  ;;  %s854_s15 = scalar_lea.vmem %s234_s9, 32 }
  0x22   : > { %p848_p10 = scmp.ne.s32.totalorder %s234_s9, %s847_s13  ;;  %p855_p2 = scmp.lt.s32.totalorder %s234_s9, %s234_s9 }
  0x23   : > { %p856_p6 = scmp.lt.s32.totalorder %s854_s15, %s847_s13 }
  0x24   : > { %p850_p9 = pnand %p848_p10, %p1225_p13 }
  0x25   : > { %p857_p4 = por %p856_p6, %p855_p2 }
  0x26   : > { %p851_p1 = pneg %p850_p9 }
  0x28   : > { %p858_p8 = pnand %p857_p4, %p851_p1 }
  0x2a   : > { %861 = shalt.err (!%p858_p8)
}
  0x2b   : > { %744 = dma.hbm_to_vmem [thread:$0]  (!%p1209_p11), %s1507_s1, 16, %s234_s9, [#allocation6]  }
  0x2c   : > { %s862_s8 = scalar_lea.hbm %s1508_s2, 16 }
  0x2d   : > { %p863_p9 = scmp.ne.s32.totalorder %s1508_s2, %s862_s8  ;;  %p869_p1 = scmp.lt.u32.totalorder %s862_s8, %s1508_s2 }
  0x2f   : > { %p865_p12 = pnand %p863_p9, %p1225_p13 }
  0x31   : > { %p866_p2 = pneg %p865_p12 }
  0x33   : > { %p871_p4 = pnand %p869_p1, %p866_p2 }
  0x35   : > { %874 = shalt.err (!%p871_p4)
}
  0x36   : > { %s875_s9 = scalar_lea.vmem %s1213_s11, 16  ;;  %s882_s28 = scalar_lea.vmem %s1213_s11, 32 }
  0x37   : > { %p876_p6 = scmp.ne.s32.totalorder %s1213_s11, %s875_s9  ;;  %p883_p3 = scmp.lt.s32.totalorder %s1213_s11, %s1213_s11 }
  0x38   : > { %p884_p5 = scmp.lt.s32.totalorder %s882_s28, %s875_s9 }
  0x39   : > { %p878_p8 = pnand %p876_p6, %p1225_p13 }
  0x3a   : > { %p885_p7 = por %p884_p5, %p883_p3 }
  0x3b   : > { %p879_p0 = pneg %p878_p8 }
  0x3d   : > { %p886_p10 = pnand %p885_p7, %p879_p0 }
  0x3f   : > { %889 = shalt.err (!%p886_p10)
}
  0x40   : > { %747 = dma.hbm_to_vmem [thread:$0]  (!%p1209_p11), %s1508_s2, 16, %s1213_s11, [#allocation6]  }
  0x41   : > { %s890_s8 = scalar_lea.hbm %s1509_s3, 256 }
  0x42   : > { %p891_p9 = scmp.ne.s32.totalorder %s1509_s3, %s890_s8  ;;  %p897_p1 = scmp.lt.u32.totalorder %s890_s8, %s1509_s3 }
  0x44   : > { %p893_p12 = pnand %p891_p9, %p1225_p13 }
  0x46   : > { %p894_p2 = pneg %p893_p12 }
  0x48   : > { %p899_p4 = pnand %p897_p1, %p894_p2 }
  0x4a   : > { %902 = shalt.err (!%p899_p4)
}
  0x4b   : > { %s903_s11 = scalar_lea.vmem %s1215_s14, 256  ;;  %p911_p3 = scmp.lt.s32.totalorder %s1215_s14, %s1215_s14 }
  0x4c   : > { %p904_p6 = scmp.ne.s32.totalorder %s1215_s14, %s903_s11  ;;  %p912_p5 = scmp.lt.s32.totalorder %s903_s11, %s903_s11 }
  0x4e   : > { %p906_p8 = pnand %p904_p6, %p1225_p13  ;;  %p913_p7 = por %p912_p5, %p911_p3 }
  0x50   : > { %p907_p0 = pneg %p906_p8 }
  0x52   : > { %p914_p10 = pnand %p913_p7, %p907_p0 }
  0x54   : > { %917 = shalt.err (!%p914_p10)
}
  0x55   : > { %s1103_s28 = smov 64   ;;  %s1104_s20 = smov 4  }
  0x56   : > { %750 = dma.hbm_to_vmem [thread:$0]  (!%p1209_p11), %s1509_s3, 256, %s1215_s14, [#allocation9], %s1103_s28, %s1103_s28, %s1104_s20  }
  0x57   : > { %s49_s17 = sadd.s32 1, %s1086_s23  ;;  %s40_s19 = sadd.s32 1, %s1094_s25 }
  0x58   : > { %p56_p13 = scmp.ne.s32.totalorder %s1086_s23, %s1082_s22  ;;  %p42_p9 = scmp.ge.s32.totalorder %s40_s19, 2 }
  0x59   : > { %p57_p12 = scmp.eq.s32.totalorder %s1098_s26, 0  ;;  %p1522_p2 = scmp.eq.s32.totalorder %s1179_s27, 1 }
  0x5a   : > { %p768_p4 = scmp.lt.s32.totalorder %s1098_s26, 2  ;;  %s1540_s19 = smov (%p42_p9, %s40_s19), 0 }
  0x5b   : > { %p1295_p1 = por %p1522_p2, %p56_p13  ;;  %p58_p6 = por %p57_p12, %p56_p13 }
  0x5c   : > { %s268_s12 = sand.u32 1, %s1086_s23   ;;  %s44_s10 = ssub.s32 %s1094_s25, %s1540_s19 }
  0x5d   : > { %p47_p8 = scmp.eq.s32.totalorder %s44_s10, 0  ;;  %s685_s14 = sshll.u32 %s268_s12, 3 }
  0x5e   : > { %s686_s13 = sshll.u32 %s1094_s25, 7  ;;  %s272_s20 = scalar_lea.vmem [#allocation2], %s685_s14 }
  0x5f   : > { %s1307_s15 = scalar_select %p47_p8, %s1086_s23, %s49_s17  }
  0x60   : > { %s1312_s28 = scalar_lea.hbm %s1506_s0, %s686_s13  ;;  %s280_s16 = sshll.u32 %s272_s20, 4  ;;  %s1314_s16 = int_to_ptr.vmem [resolvable:$true] %s280_s16 }
  0x61   : > { %p1318_p11 = pnand %p768_p4, %p58_p6  ;;  %s269_s17 = scalar_lea.sflag [#allocation3], %s268_s12 }
  0x62   : > { %s918_s10 = scalar_lea.hbm %s1312_s28, 128  ;;  %s923_s9 = scalar_lea.hbm %s1506_s0, 256 }
  0x63   : > { %p919_p0 = scmp.ne.s32.totalorder %s1312_s28, %s918_s10  ;;  %p920_p3 = pneg %p1318_p11 }
  0x64   : > { %p924_p10 = scmp.lt.u32.totalorder %s1312_s28, %s1506_s0  ;;  %p925_p13 = scmp.lt.u32.totalorder %s923_s9, %s918_s10 }
  0x65   : > { %p921_p5 = pnand %p920_p3, %p919_p0  ;;  %p927_p12 = scmp.lt.u32.totalorder %s918_s10, %s1312_s28 }
  0x66   : > { %p926_p9 = por %p925_p13, %p924_p10 }
  0x67   : > { %p922_p7 = pneg %p921_p5 }
  0x68   : > { %p928_p2 = por %p927_p12, %p926_p9 }
  0x6a   : > { %p929_p4 = pnand %p928_p2, %p922_p7 }
  0x6c   : > { %932 = shalt.err (!%p929_p4)
}
  0x6d   : > { %s933_s12 = scalar_lea.vmem %s1314_s16, 128  ;;  %s1105_s14 = smov [#allocation2]  }
  0x6e   : > { %p934_p6 = scmp.ne.s32.totalorder %s1314_s16, %s933_s12  ;;  %s938_s13 = sshll.u32 %s1105_s14, 4  ;;  %s939_s13 = int_to_ptr.vmem [resolvable:$false] %s938_s13 }
  0x6f   : > { %s940_s11 = scalar_lea.vmem %s939_s13, 256  ;;  %p941_p5 = scmp.lt.s32.totalorder %s1314_s16, %s939_s13 }
  0x70   : > { %p936_p8 = pnand %p934_p6, %p920_p3  ;;  %p942_p10 = scmp.lt.s32.totalorder %s940_s11, %s933_s12 }
  0x72   : > { %p937_p0 = pneg %p936_p8  ;;  %p943_p13 = por %p942_p10, %p941_p5 }
  0x74   : > { %p944_p9 = pnand %p943_p13, %p937_p0 }
  0x76   : > { %947 = shalt.err (!%p944_p9)
}
  0x77   : > { %754 = dma.hbm_to_vmem [thread:$0]  (!%p1318_p11), %s1312_s28, 128, %s1314_s16, %s269_s17  }
  0x78   : > { %p1525_p7 = scmp.ne.s32.totalorder %s1519_s7, 0 }
  0x79   : > { %s1350_s10 = sand.u32 (!%p1525_p7), 1, %s1082_s22   ;;  %p1526_p3 = scmp.ne.s32.totalorder (!%p1525_p7), %s1517_s29, 0 }
  0x7a   : > { %289 = sbr.rel (%p1525_p7) target bundleno = 819 (0x333), region = 36  ;;  %s688_s9 = sshll.u32 (!%p1525_p7), %s1350_s10, 3 }
  0x7b   : > { %s292_s20 = scalar_lea.sflag (!%p1525_p7), [#allocation3], %s1350_s10  ;;  %s295_s12 = scalar_lea.vmem (!%p1525_p7), [#allocation2], %s688_s9 }
  0x81   : > { %1057 = dma.done.wait (%p1526_p3), %s292_s20, 128  }
  0x82   : > { %1059 = vsyncadd (%p1526_p3), %s292_s20, 4294967168  ;;  %p1527_p12 = scmp.eq.s32.totalorder %s1179_s27, 0 }
  0x84   : > { %1061 = dma.done.wait (%p1527_p12), [#allocation6], 32   ;;  %p1528_p11 = pmov %p1527_p12 }
  0x86   : > { %1063 = vsyncadd (%p1528_p11), [#allocation6], 4294967264  ;;  %p1529_p2 = pmov %p1528_p11 }
  0x88   : > { %1065 = dma.done.wait (%p1529_p2), [#allocation9], 256   ;;  %p1530_p4 = pmov %p1529_p2 }
  0x89   : > { %vm350_vm0 = vcmask 261120   ;;  %v347_v0 = vld [vmem:[%s295_s12] sm:$0xff]  ;;  %v830_v7 = vld [vmem:[#allocation8] sm:$0xff]   ;;  %v1106_v8 = vmov 0.0   ;;  %vm1107_vm1 = vmmov 0   ;;  %s1370_s29 = sshll.u32 %s1350_s10, 2 }
  0x8a   : > { %1067 = vsyncadd (%p1530_p4), [#allocation9], 4294967040  ;;  %v351_v1 = vsel %vm350_vm0, %v347_v0, 0.0  ;;  %713 = vmatprep.subr.bf16.mxu0 %v1106_v8  ;;  %v831_v9 = vld [vmem:[#allocation8 + $0x8] sm:$0xff]   ;;  %717 = vmatprep.mubr.msk.bf16.mxu0 %vm1107_vm1, %v1106_v8  ;;  %v695_v14 = vld [vmem:[#allocation5] ss:$0 sm:$0xff] }
  0x8b   : > { %352 = vadd.xlane.f32.xlu0 %v351_v1  ;;  %714 = vmatpush3.bf16.msra.mxu0 %v830_v7  ;;  %v696_v16 = vld [vmem:[#allocation7] ss:$0 sm:$0xff]  ;;  %s1373_s7 = sshll.u32 %s1090_s24, 6  ;;  %s331_s28 = scalar_lea.vmem [#allocation10], %s1370_s29  ;;  %vm440_vm2 = vcmask 257024  }
  0x8c   : > { %715 = vmatprep.subr.bf16.mxu0 %v1106_v8  ;;  %s478_s16 = sshll.u32 %s331_s28, 4  ;;  %s1380_s14 = scalar_lea.hbm %s1510_s4, %s1373_s7  ;;  %s1382_s16 = int_to_ptr.vmem [resolvable:$true] %s478_s16 }
  0x8d   : > { %s1108_s24 = smov 96   ;;  %s454_s13 = scalar_lea.sflag [#allocation4], %s1350_s10 }
  0x8e   : > { %s948_s11 = scalar_lea.vmem %s1382_s16, 64  ;;  %s1109_s9 = smov [#allocation10]  }
  0x8f   : > { %716 = vmatpush3.bf16.msra.mxu0 %v831_v9  ;;  %p949_p6 = scmp.ne.s32.totalorder %s1382_s16, %s948_s11  ;;  %s952_s20 = sshll.u32 %s1109_s9, 4  ;;  %s953_s20 = int_to_ptr.vmem [resolvable:$false] %s952_s20 }
  0x90   : > { %s954_s12 = scalar_lea.vmem %s953_s20, 128  ;;  %p955_p5 = scmp.lt.s32.totalorder %s1382_s16, %s953_s20 }
  0x91   : > { %p950_p8 = pnand %p949_p6, %p1295_p1  ;;  %p956_p10 = scmp.lt.s32.totalorder %s954_s12, %s948_s11 }
  0x93   : > { %p951_p0 = pneg %p950_p8  ;;  %p957_p13 = por %p956_p10, %p955_p5 }
  0x95   : > { %p958_p9 = pnand %p957_p13, %p951_p0 }
 0x118   : > { %v353_v2 = vpop.xlane.xlu0 %352 }
 0x119   : > { %v355_v3 = vmul.f32 0.03125, %v353_v2 }
 0x11b   : > { %v356_v4 = vsub.f32 %v347_v0, %v355_v3 }
 0x11d   : > { %v357_v5 = vmul.f32 %v356_v4, %v356_v4 }
 0x11f   : > { %v358_v6 = vsel %vm350_vm0, %v357_v5, 0.0 }
 0x120   : > { %359 = vadd.xlane.f32.xlu0 %v358_v6 }
 0x1ad   : > { %v360_v10 = vpop.xlane.xlu0 %359 }
 0x1ae   : > { %v361_v11 = vmul.f32 0.03125, %v360_v10 }
 0x1b0   : > { %v362_v12 = vadd.f32 1e-05, %v361_v11 }
 0x1b2   : > { %832 = vrsqrt.f32 %v362_v12 }
 0x1bc   : > { %v833_v13 = vpop.eup %832 }
 0x1bd   : > { %v364_v15 = vmul.f32 %v833_v13, %v356_v4 }
 0x1bf   : > { %v371_v17 = vmul.f32 %v695_v14, %v364_v15 }
 0x1c1   : > { %v378_v18 = vadd.f32 %v696_v16, %v371_v17 }
 0x1c3   : > { %v379_v19 = vpack.c.bf16 %v378_v18, %v378_v18 }
 0x1c5   : > { %718 = vmatmul.mubr.msk.bf16.vlgmr.msra.gmra.mrb[0].mxu0 %vm350_vm0, %v379_v19 }
 0x298   : > { %v433_v20 = vpop.f32.mrb[0].mxu0 }
 0x299   : > { %v439_v21 = vpack.c.bf16 %v433_v20, %v433_v20  ;;  %v719_v22 = vpop.f32.mrb[1].mxu0 }
 0x29a   : > { %v436_v23 = vpop.f32.mrb[2].mxu0 }
 0x29b   : > { %445 = vrot.lane.b32.xlu1 %v439_v21, %s1108_s24  ;;  %v720_v24 = vpop.f32.mrb[3].mxu0  ;;  %441 = vst.msk [vmem:[%s331_s28] sm:$0xf] %vm440_vm2, %v439_v21 }
 0x29c   : > { %961 = shalt.err (!%p958_p9)
}
 0x29d   : > { %s962_s10 = scalar_lea.hbm %s1380_s14, 64  ;;  %s966_s17 = scalar_lea.hbm %s1510_s4, 128 }
 0x29e   : > { %p963_p7 = scmp.ne.s32.totalorder %s1380_s14, %s962_s10  ;;  %p967_p11 = scmp.lt.u32.totalorder %s1380_s14, %s1510_s4 }
 0x29f   : > { %p968_p2 = scmp.lt.u32.totalorder %s966_s17, %s962_s10  ;;  %p970_p6 = scmp.lt.u32.totalorder %s962_s10, %s1380_s14 }
 0x2a0   : > { %p964_p3 = pnand %p963_p7, %p1295_p1 }
 0x2a1   : > { %p969_p4 = por %p968_p2, %p967_p11 }
 0x2a2   : > { %p965_p12 = pneg %p964_p3 }
 0x2a3   : > { %p971_p8 = por %p970_p6, %p969_p4 }
 0x2a5   : > { %p972_p0 = pnand %p971_p8, %p965_p12 }
 0x2a7   : > { %975 = shalt.err (!%p972_p0)
}
 0x2a8   : > { %735 = dma.vmem_to_hbm [thread:$0]  (%p1295_p1), %s1382_s16, 64, %s1380_s14, %s454_s13  }
 0x2a9   : > { %s1110_s11 = smov 64   ;;  %s458_s20 = sand.u32 1, %s1179_s27  }
 0x2aa   : > { %449 = vrot.lane.b32.xlu1 %v439_v21, %s1110_s11  ;;  %s338_s12 = scalar_lea.vmem [#allocation11], %s1370_s29  ;;  %s1413_s17 = scalar_lea.hbm %s1511_s5, %s1373_s7 }
 0x2ab   : > { %s492_s28 = sshll.u32 %s338_s12, 4  ;;  %s345_s24 = scalar_lea.vmem [#allocation13], %s1370_s29  ;;  %s1415_s28 = int_to_ptr.vmem [resolvable:$true] %s492_s28 }
 0x2ac   : > { %s1420_s9 = sshll.u32 %s345_s24, 4  ;;  %s1423_s27 = scalar_lea.sflag [#allocation12], %s458_s20  ;;  %s1454_s9 = int_to_ptr.vmem [resolvable:$true] %s1420_s9 }
 0x2ad   : > { %s976_s16 = scalar_lea.vmem %s1415_s28, 64  ;;  %s1111_s14 = smov [#allocation11]  }
 0x2ae   : > { %p977_p5 = scmp.ne.s32.totalorder %s1415_s28, %s976_s16  ;;  %s980_s13 = sshll.u32 %s1111_s14, 4  ;;  %s981_s13 = int_to_ptr.vmem [resolvable:$false] %s980_s13 }
 0x2af   : > { %s982_s11 = scalar_lea.vmem %s981_s13, 128  ;;  %p983_p9 = scmp.lt.s32.totalorder %s1415_s28, %s981_s13 }
 0x2b0   : > { %p978_p10 = pnand %p977_p5, %p1295_p1  ;;  %p984_p7 = scmp.lt.s32.totalorder %s982_s11, %s976_s16 }
 0x2b2   : > { %p979_p13 = pneg %p978_p10  ;;  %p985_p3 = por %p984_p7, %p983_p9 }
 0x2b4   : > { %p986_p12 = pnand %p985_p3, %p979_p13 }
 0x30d   : > { %v446_v25 = vpop.permute.xlu1 %445 }
 0x30e   : > { %448 = vst.msk [vmem:[%s338_s12] sm:$0xf] %vm440_vm2, %v446_v25 }
 0x30f   : > { %989 = shalt.err (!%p986_p12)
}
 0x310   : > { %s990_s20 = scalar_lea.hbm %s1413_s17, 64  ;;  %s994_s18 = scalar_lea.hbm %s1511_s5, 128 }
 0x311   : > { %p991_p11 = scmp.ne.s32.totalorder %s1413_s17, %s990_s20  ;;  %p995_p6 = scmp.lt.u32.totalorder %s1413_s17, %s1511_s5 }
 0x312   : > { %p996_p8 = scmp.lt.u32.totalorder %s994_s18, %s990_s20  ;;  %p998_p5 = scmp.lt.u32.totalorder %s990_s20, %s1413_s17 }
 0x313   : > { %p992_p2 = pnand %p991_p11, %p1295_p1 }
 0x314   : > { %p997_p0 = por %p996_p8, %p995_p6 }
 0x315   : > { %p993_p4 = pneg %p992_p2 }
 0x316   : > { %p999_p10 = por %p998_p5, %p997_p0 }
 0x318   : > { %p1000_p13 = pnand %p999_p10, %p993_p4 }
 0x31a   : > { %1003 = shalt.err (!%p1000_p13)
}
 0x31b   : > { %736 = dma.vmem_to_hbm [thread:$0]  (%p1295_p1), %s1415_s28, 64, %s1413_s17, %s1423_s27  }
 0x31c   : > { %s1451_s12 = scalar_lea.hbm %s1512_s6, %s1373_s7  ;;  %v450_v26 = vpop.permute.xlu1 %449  ;;  %s1004_s20 = scalar_lea.vmem %s1454_s9, 64 }
 0x31d   : > { %452 = vst.msk [vmem:[%s345_s24] sm:$0xf] %vm440_vm2, %v450_v26  ;;  %p1005_p9 = scmp.ne.s32.totalorder %s1454_s9, %s1004_s20  ;;  %s1112_s28 = smov [#allocation13]  }
 0x31e   : > { %s1008_s17 = sshll.u32 %s1112_s28, 4  ;;  %s1009_s17 = int_to_ptr.vmem [resolvable:$false] %s1008_s17 }
 0x31f   : > { %p1006_p7 = pnand %p1005_p9, %p1295_p1  ;;  %s1010_s10 = scalar_lea.vmem %s1009_s17, 128 }
 0x320   : > { %p1011_p12 = scmp.lt.s32.totalorder %s1454_s9, %s1009_s17  ;;  %p1012_p11 = scmp.lt.s32.totalorder %s1010_s10, %s1004_s20 }
 0x321   : > { %p1007_p3 = pneg %p1006_p7 }
 0x322   : > { %p1013_p2 = por %p1012_p11, %p1011_p12 }
 0x324   : > { %p1014_p4 = pnand %p1013_p2, %p1007_p3 }
 0x326   : > { %1017 = shalt.err (!%p1014_p4)
}
 0x327   : > { %s1018_s29 = scalar_lea.hbm %s1451_s12, 64  ;;  %s1022_s18 = scalar_lea.hbm %s1512_s6, 128 }
 0x328   : > { %p1019_p6 = scmp.ne.s32.totalorder %s1451_s12, %s1018_s29  ;;  %p1023_p5 = scmp.lt.u32.totalorder %s1451_s12, %s1512_s6 }
 0x329   : > { %p1024_p10 = scmp.lt.u32.totalorder %s1022_s18, %s1018_s29  ;;  %p1026_p9 = scmp.lt.u32.totalorder %s1018_s29, %s1451_s12 }
 0x32a   : > { %p1020_p8 = pnand %p1019_p6, %p1295_p1 }
 0x32b   : > { %p1025_p13 = por %p1024_p10, %p1023_p5 }
 0x32c   : > { %p1021_p0 = pneg %p1020_p8 }
 0x32d   : > { %p1027_p7 = por %p1026_p9, %p1025_p13 }
 0x32f   : > { %p1028_p3 = pnand %p1027_p7, %p1021_p0 }
 0x331   : > { %1031 = shalt.err (!%p1028_p3)
}
 0x332   : > { %737 = dma.vmem_to_hbm [thread:$0]  (%p1295_p1), %s1454_s9, 64, %s1451_s12, %s1423_s27  }
 0x333 PF: > { %s518_s16 = sand.u32 1, %s1078_s21   ;;  %p1531_p12 = scmp.ne.s32.totalorder %s1518_s30, 0 }
 0x334   : > { %p1532_p11 = scmp.ge.s32.totalorder %s1098_s26, 2  ;;  %s519_s11 = scalar_lea.sflag [#allocation4], %s518_s16 }
 0x336   : > { %p756_p2 = pnand %p1532_p11, %p1531_p12 }
 0x338   : > { %1069 = dma.done.wait (!%p756_p2), %s519_s11, 64  }
 0x339   : > { %1071 = vsyncadd (!%p756_p2), %s519_s11, 4294967232  ;;  %s1533_s20 = sadd.s32 4294967294, %s1098_s26  }
 0x33a   : > { %s527_s28 = sand.u32 1, %s1533_s20  }
 0x33b   : > { %s528_s17 = scalar_lea.sflag [#allocation12], %s527_s28 }
 0x33c   : > { %1073 = dma.done.wait (!%p756_p2), %s528_s17, 128  }
 0x33d   : > { %1075 = vsyncadd (!%p756_p2), %s528_s17, 4294967168  ;;  %s28_s26 = sadd.s32 1, %s1098_s26   ;;  %s1534_s21 = smov %s1082_s22 }
 0x33e   : > { %p25_p1 = scmp.ge.s32.totalorder %s28_s26, 4   ;;  %s1535_s22 = smov %s1086_s23 }
 0x33f   : > { %s1536_s23 = smov %s1307_s15  ;;  %s1537_s24 = smov %s1094_s25 }
 0x340   : > { %s1538_s25 = smov %s1540_s19  ;;  %27 = sbr.rel (!%p25_p1) target bundleno = 10 (0xa), region = 125 }
 0x347   :  { %542 = vsyncpa [#allocation3], 1 }
 0x348   :  { %544 = vsyncpa [#allocation3 + $0x1], 1 }
 0x349   :  { %545 = vsyncpa [#allocation6], 1 }
 0x34a   :  { %546 = vsyncpa [#allocation9], 1 }
 0x34b   :  { %547 = vsyncpa [#allocation4], 1 }
 0x34c   :  { %549 = vsyncpa [#allocation4 + $0x1], 1 }
 0x34d   :  { %550 = vsyncpa [#allocation12], 1 }
 0x34e   :  { %552 = vsyncpa [#allocation12 + $0x1], 1 }

// kernel: _lambda_.5
= control target key start
LH: loop header
LB: loop body
LE: loop exit
PB: predicated region body
PF: predicated region fallthrough
CT: control target
= control target key end

     0   :  { %s1628_s0 = inlined_call_operand.hbm [shape: f32[2,8,32], index: 0, kind: input, shape index: {}]   ;;  %s1629_s1 = inlined_call_operand.hbm [shape: f32[1,32], index: 1, kind: input, shape index: {}]   ;;  %s1630_s2 = inlined_call_operand.hbm [shape: f32[1,32], index: 2, kind: input, shape index: {}]   ;;  %s1631_s3 = inlined_call_operand.hbm [shape: bf16[32,64], index: 3, kind: input, shape index: {}]   ;;  %s1632_s4 = inlined_call_operand.hbm [shape: f32[1,64], index: 4, kind: input, shape index: {}]   ;;  %s1633_s5 = inlined_call_operand.hbm [shape: bf16[64,32], index: 5, kind: input, shape index: {}]   ;;  %s1634_s6 = inlined_call_operand.hbm [shape: f32[1,32], index: 6, kind: input, shape index: {}]   ;;  %s1635_s7 = inlined_call_operand.hbm [shape: f32[2,8,32], index: 7, kind: output, shape index: {}]  }
   0x1   :  { %1641 = sst [smem:[#allocation20_spill]] %s1629_s1 }
   0x2   :  { %1642 = sst [smem:[#allocation21_spill]] %s1631_s3 }
   0x3   :  { %12 = vsyncpa [#allocation3], 0 }
   0x4   :  { %14 = vsyncpa [#allocation3 + $0x1], 0 }
   0x5   :  { %15 = vsyncpa [#allocation6], 0 }
   0x6   :  { %16 = vsyncpa [#allocation9], 0 }
   0x7   :  { %17 = vsyncpa [#allocation12], 0 }
   0x8   :  { %18 = vsyncpa [#allocation4], 0 }
   0x9   :  { %20 = vsyncpa [#allocation4 + $0x1], 0  ;;  %s1287_s24 = smov 0   ;;  %s1289_s25 = smov 0  }
   0xa   :  { %s1291_s26 = smov 0   ;;  %s1293_s27 = smov 0  }
   0xb   :  { %s1295_s28 = smov 0   ;;  %s1297_s29 = smov 0  }
   0xc LB: > { %s1639_s30 = sadd.s32 4294967295, %s1233_s29   ;;  %p738_p0 = scmp.ge.s32.totalorder %s1233_s29, 1  ;;  %s1233_s29 = sphi %s1297_s29, %s26_s29   ;;  %s1229_s28 = sphi %s1295_s28, %s1665_s28   ;;  %s1225_s27 = sphi %s1293_s27, %s1664_s27   ;;  %s1221_s26 = sphi %s1291_s26, %s1663_s26   ;;  %s1217_s25 = sphi %s1289_s25, %s1662_s25   ;;  %s1213_s24 = sphi %s1287_s24, %s1661_s24  }
   0xd   : > { %p1321_p1 = scmp.eq.s32.totalorder %s1639_s30, 0  ;;  %p225_p2 = scmp.lt.s32.totalorder %s1233_s29, 3 }
   0xe   : > { %s1235_s10 = smov [#allocation5]   ;;  %s1236_s12 = smov [#allocation8]  }
   0xf   : > { %s1643_s8 = scalar_select %p1321_p1, 1, 0 }
  0x10   : > { %p1326_p3 = pnand %p738_p0, %p225_p2  ;;  %s238_s11 = sshll.u32 %s1235_s10, 4  ;;  %s239_s11 = int_to_ptr.vmem [resolvable:$true] %s238_s11 }
  0x11   : > { %s259_s13 = sshll.u32 %s1236_s12, 4  ;;  %s1237_s15 = smov [#allocation11]   ;;  %s1339_s13 = int_to_ptr.vmem [resolvable:$true] %s259_s13 }
  0x12   : > { %s1644_s9 = scalar_select %p1326_p3, 1, 0 }
  0x13   : > { %p830_p5 = pneg %p1326_p3  ;;  %s1341_s16 = sshll.u32 %s1237_s15, 4  ;;  %s284_s16 = int_to_ptr.vmem [resolvable:$true] %s1341_s16 }
  0x14   : > { %s1646_s1 = sld [smem:[#allocation20_spill]] }
  0x15   : > { %p1335_p6 = pnand %p830_p5, %p1321_p1 }
  0x17   : > { %p1351_p8 = pneg %p1335_p6 }
  0x1a   : > { %s941_s19 = scalar_lea.hbm %s1646_s1, 16 }
  0x1b   : > { %p942_p7 = scmp.ne.s32.totalorder %s1646_s1, %s941_s19  ;;  %p948_p11 = scmp.lt.u32.totalorder %s941_s19, %s1646_s1 }
  0x1d   : > { %p944_p9 = pnand %p1351_p8, %p942_p7 }
  0x1f   : > { %p945_p10 = pneg %p944_p9 }
  0x21   : > { %p950_p12 = pnand %p948_p11, %p945_p10 }
  0x23   : > { %953 = shalt.err (!%p950_p12)
}
  0x24   : > { %s954_s12 = scalar_lea.vmem %s239_s11, 16  ;;  %s961_s15 = scalar_lea.vmem %s239_s11, 32 }
  0x25   : > { %p955_p13 = scmp.ne.s32.totalorder %s239_s11, %s954_s12  ;;  %p962_p5 = scmp.lt.s32.totalorder %s239_s11, %s239_s11 }
  0x26   : > { %p963_p4 = scmp.lt.s32.totalorder %s961_s15, %s954_s12 }
  0x27   : > { %p957_p0 = pnand %p955_p13, %p1351_p8 }
  0x28   : > { %p964_p3 = por %p963_p4, %p962_p5 }
  0x29   : > { %p958_p2 = pneg %p957_p0 }
  0x2b   : > { %p965_p1 = pnand %p964_p3, %p958_p2 }
  0x2d   : > { %968 = shalt.err (!%p965_p1)
}
  0x2e   : > { %833 = dma.hbm_to_vmem [thread:$0]  (!%p1335_p6), %s1646_s1, 16, %s239_s11, [#allocation6]  }
  0x2f   : > { %s1648_s3 = sld [smem:[#allocation21_spill]] }
  0x35   : > { %s969_s21 = scalar_lea.hbm %s1648_s3, 256 }
  0x36   : > { %p970_p7 = scmp.ne.s32.totalorder %s1648_s3, %s969_s21  ;;  %p976_p1 = scmp.lt.u32.totalorder %s969_s21, %s1648_s3 }
  0x38   : > { %p972_p9 = pnand %p970_p7, %p1351_p8 }
  0x3a   : > { %p973_p4 = pneg %p972_p9 }
  0x3c   : > { %p978_p3 = pnand %p976_p1, %p973_p4 }
  0x3e   : > { %981 = shalt.err (!%p978_p3)
}
  0x3f   : > { %s982_s11 = scalar_lea.vmem %s1339_s13, 256  ;;  %p990_p13 = scmp.lt.s32.totalorder %s1339_s13, %s1339_s13 }
  0x40   : > { %p983_p10 = scmp.ne.s32.totalorder %s1339_s13, %s982_s11  ;;  %p991_p0 = scmp.lt.s32.totalorder %s982_s11, %s982_s11 }
  0x42   : > { %p985_p11 = pnand %p983_p10, %p1351_p8  ;;  %p992_p2 = por %p991_p0, %p990_p13 }
  0x44   : > { %p986_p12 = pneg %p985_p11 }
  0x46   : > { %p993_p5 = pnand %p992_p2, %p986_p12 }
  0x48   : > { %996 = shalt.err (!%p993_p5)
}
  0x49   : > { %s1238_s17 = smov 64   ;;  %s1239_s18 = smov 4  }
  0x4a   : > { %839 = dma.hbm_to_vmem [thread:$0]  (!%p1335_p6), %s1648_s3, 256, %s1339_s13, [#allocation9], %s1238_s17, %s1238_s17, %s1239_s18  }
  0x4b   : > { %s997_s10 = scalar_lea.hbm %s1633_s5, 512 }
  0x4c   : > { %p998_p7 = scmp.ne.s32.totalorder %s1633_s5, %s997_s10  ;;  %p1004_p1 = scmp.lt.u32.totalorder %s997_s10, %s1633_s5 }
  0x4e   : > { %p1000_p9 = pnand %p998_p7, %p1351_p8 }
  0x50   : > { %p1001_p4 = pneg %p1000_p9 }
  0x52   : > { %p1006_p3 = pnand %p1004_p1, %p1001_p4 }
  0x54   : > { %1009 = shalt.err (!%p1006_p3)
}
  0x55   : > { %s1010_s19 = scalar_lea.vmem %s284_s16, 512  ;;  %p1018_p13 = scmp.lt.s32.totalorder %s284_s16, %s284_s16 }
  0x56   : > { %p1011_p10 = scmp.ne.s32.totalorder %s284_s16, %s1010_s19  ;;  %p1019_p0 = scmp.lt.s32.totalorder %s1010_s19, %s1010_s19 }
  0x58   : > { %p1013_p11 = pnand %p1011_p10, %p1351_p8  ;;  %p1020_p2 = por %p1019_p0, %p1018_p13 }
  0x5a   : > { %p1014_p12 = pneg %p1013_p11 }
  0x5c   : > { %p1021_p5 = pnand %p1020_p2, %p1014_p12 }
  0x5e   : > { %1024 = shalt.err (!%p1021_p5)
}
  0x5f   : > { %845 = dma.hbm_to_vmem [thread:$0]  (!%p1335_p6), %s1633_s5, 512, %s284_s16, [#allocation12], %s1238_s17, %s1238_s17, %s1239_s18  }
  0x60   : > { %s1240_s30 = smov [#allocation7]   ;;  %s1241_s23 = smov [#allocation10]  }
  0x61   : > { %s249_s21 = sshll.u32 %s1240_s30, 4  ;;  %s273_s10 = sshll.u32 %s1241_s23, 4  ;;  %s250_s21 = int_to_ptr.vmem [resolvable:$true] %s249_s21  ;;  %s274_s10 = int_to_ptr.vmem [resolvable:$true] %s273_s10 }
  0x62   : > { %s1025_s11 = scalar_lea.hbm %s1630_s2, 16 }
  0x63   : > { %p1026_p7 = scmp.ne.s32.totalorder %s1630_s2, %s1025_s11  ;;  %p1032_p1 = scmp.lt.u32.totalorder %s1025_s11, %s1630_s2 }
  0x65   : > { %p1028_p9 = pnand %p1026_p7, %p1351_p8 }
  0x67   : > { %p1029_p4 = pneg %p1028_p9 }
  0x69   : > { %p1034_p3 = pnand %p1032_p1, %p1029_p4 }
  0x6b   : > { %1037 = shalt.err (!%p1034_p3)
}
  0x6c   : > { %s1038_s16 = scalar_lea.vmem %s250_s21, 16  ;;  %s1045_s17 = scalar_lea.vmem %s250_s21, 32 }
  0x6d   : > { %p1039_p10 = scmp.ne.s32.totalorder %s250_s21, %s1038_s16  ;;  %p1046_p13 = scmp.lt.s32.totalorder %s250_s21, %s250_s21 }
  0x6e   : > { %p1047_p0 = scmp.lt.s32.totalorder %s1045_s17, %s1038_s16 }
  0x6f   : > { %p1041_p11 = pnand %p1039_p10, %p1351_p8 }
  0x70   : > { %p1048_p2 = por %p1047_p0, %p1046_p13 }
  0x71   : > { %p1042_p12 = pneg %p1041_p11 }
  0x73   : > { %p1049_p5 = pnand %p1048_p2, %p1042_p12 }
  0x75   : > { %1052 = shalt.err (!%p1049_p5)
}
  0x76   : > { %836 = dma.hbm_to_vmem [thread:$0]  (!%p1335_p6), %s1630_s2, 16, %s250_s21, [#allocation6]  }
  0x77   : > { %s1053_s30 = scalar_lea.hbm %s1632_s4, 16 }
  0x78   : > { %p1054_p7 = scmp.ne.s32.totalorder %s1632_s4, %s1053_s30  ;;  %p1060_p1 = scmp.lt.u32.totalorder %s1053_s30, %s1632_s4 }
  0x7a   : > { %p1056_p9 = pnand %p1054_p7, %p1351_p8 }
  0x7c   : > { %p1057_p4 = pneg %p1056_p9 }
  0x7e   : > { %p1062_p3 = pnand %p1060_p1, %p1057_p4 }
  0x80   : > { %1065 = shalt.err (!%p1062_p3)
}
  0x81   : > { %s1066_s19 = scalar_lea.vmem %s274_s10, 16  ;;  %s1073_s21 = scalar_lea.vmem %s274_s10, 32 }
  0x82   : > { %p1067_p10 = scmp.ne.s32.totalorder %s274_s10, %s1066_s19  ;;  %p1074_p13 = scmp.lt.s32.totalorder %s274_s10, %s274_s10 }
  0x83   : > { %p1075_p0 = scmp.lt.s32.totalorder %s1073_s21, %s1066_s19 }
  0x84   : > { %p1069_p11 = pnand %p1067_p10, %p1351_p8 }
  0x85   : > { %p1076_p2 = por %p1075_p0, %p1074_p13 }
  0x86   : > { %p1070_p12 = pneg %p1069_p11 }
  0x88   : > { %p1077_p5 = pnand %p1076_p2, %p1070_p12 }
  0x8a   : > { %1080 = shalt.err (!%p1077_p5)
}
  0x8b   : > { %842 = dma.hbm_to_vmem [thread:$0]  (!%p1335_p6), %s1632_s4, 16, %s274_s10, [#allocation9]  }
  0x8c   : > { %s1242_s17 = smov [#allocation13]   ;;  %s1081_s20 = scalar_lea.hbm %s1634_s6, 16 }
  0x8d   : > { %s297_s1 = sshll.u32 %s1242_s17, 4  ;;  %p1082_p7 = scmp.ne.s32.totalorder %s1634_s6, %s1081_s20  ;;  %s298_s1 = int_to_ptr.vmem [resolvable:$true] %s297_s1 }
  0x8e   : > { %p1088_p1 = scmp.lt.u32.totalorder %s1081_s20, %s1634_s6 }
  0x8f   : > { %p1084_p9 = pnand %p1082_p7, %p1351_p8 }
  0x91   : > { %p1085_p4 = pneg %p1084_p9 }
  0x93   : > { %p1090_p3 = pnand %p1088_p1, %p1085_p4 }
  0x95   : > { %1093 = shalt.err (!%p1090_p3)
}
  0x96   : > { %s1094_s10 = scalar_lea.vmem %s298_s1, 16  ;;  %s1101_s11 = scalar_lea.vmem %s298_s1, 32 }
  0x97   : > { %p1095_p10 = scmp.ne.s32.totalorder %s298_s1, %s1094_s10  ;;  %p1102_p13 = scmp.lt.s32.totalorder %s298_s1, %s298_s1 }
  0x98   : > { %p1103_p0 = scmp.lt.s32.totalorder %s1101_s11, %s1094_s10 }
  0x99   : > { %p1097_p11 = pnand %p1095_p10, %p1351_p8 }
  0x9a   : > { %p1104_p2 = por %p1103_p0, %p1102_p13 }
  0x9b   : > { %p1098_p12 = pneg %p1097_p11 }
  0x9d   : > { %p1105_p5 = pnand %p1104_p2, %p1098_p12 }
  0x9f   : > { %1108 = shalt.err (!%p1105_p5)
}
  0xa0   : > { %848 = dma.hbm_to_vmem [thread:$0]  (!%p1335_p6), %s1634_s6, 16, %s298_s1, [#allocation12]  }
  0xa1   : > { %s737_s22 = sadd.s32 4294967294, %s1233_s29   ;;  %s38_s13 = sadd.s32 1, %s1229_s28 }
  0xa2   : > { %p40_p8 = scmp.ge.s32.totalorder %s38_s13, 2  ;;  %s47_s14 = sadd.s32 1, %s1221_s26 }
  0xa3   : > { %p54_p7 = scmp.ne.s32.totalorder %s1221_s26, %s1217_s25  ;;  %p55_p9 = scmp.eq.s32.totalorder %s1233_s29, 0 }
  0xa4   : > { %s1667_s13 = smov (%p40_p8, %s38_s13), 0  ;;  %p60_p1 = scmp.ne.s32.totalorder %s1217_s25, %s1213_s24 }
  0xa5   : > { %p1471_p4 = por %p55_p9, %p54_p7  ;;  %s42_s17 = ssub.s32 %s1229_s28, %s1667_s13 }
  0xa6   : > { %s1650_s1 = sadd.s32 4294967295, %s1233_s29   ;;  %p45_p3 = scmp.eq.s32.totalorder %s42_s17, 0 }
  0xa7   : > { %p212_p6 = scmp.eq.s32.totalorder %s1650_s1, 1  ;;  %p1651_p10 = scmp.ne.s32.totalorder %s1643_s8, 0 }
  0xa8   : > { %p218_p13 = scmp.eq.s32.totalorder %s737_s22, 1  ;;  %p863_p2 = scmp.lt.s32.totalorder %s1233_s29, 2 }
  0xa9   : > { %p1483_p11 = por %p1651_p10, %p60_p1  ;;  %p1487_p12 = por %p212_p6, %p54_p7 }
  0xaa   : > { %s1492_s20 = scalar_select %p45_p3, %s1221_s26, %s47_s14  }
  0xab   : > { %s1653_s3 = scalar_select %p1487_p12, 1, 0 }
  0xac   : > { %p1494_p0 = por %p218_p13, %p60_p1  ;;  %s308_s23 = sand.u32 1, %s1221_s26  }
  0xad   : > { %s747_s12 = sshll.u32 %s1229_s28, 7  ;;  %s746_s15 = sshll.u32 %s308_s23, 3 }
  0xae   : > { %s1654_s30 = scalar_select %p1494_p0, 1, 0 }
  0xaf   : > { %s1504_s19 = scalar_lea.hbm %s1628_s0, %s747_s12  ;;  %s312_s21 = scalar_lea.vmem [#allocation2], %s746_s15 }
  0xb0   : > { %s320_s22 = sshll.u32 %s312_s21, 4  ;;  %p1508_p5 = pnand %p863_p2, %p1471_p4  ;;  %s1512_s22 = int_to_ptr.vmem [resolvable:$true] %s320_s22 }
  0xb1   : > { %s309_s17 = scalar_lea.sflag [#allocation3], %s308_s23  ;;  %s1109_s1 = scalar_lea.hbm %s1504_s19, 128 }
  0xb2   : > { %p1110_p8 = scmp.ne.s32.totalorder %s1504_s19, %s1109_s1  ;;  %p1111_p7 = pneg %p1508_p5 }
  0xb3   : > { %s1114_s16 = scalar_lea.hbm %s1628_s0, 256  ;;  %p1115_p4 = scmp.lt.u32.totalorder %s1504_s19, %s1628_s0 }
  0xb4   : > { %p1112_p9 = pnand %p1111_p7, %p1110_p8  ;;  %p1116_p6 = scmp.lt.u32.totalorder %s1114_s16, %s1109_s1 }
  0xb5   : > { %p1118_p10 = scmp.lt.u32.totalorder %s1109_s1, %s1504_s19 }
  0xb6   : > { %p1113_p1 = pneg %p1112_p9  ;;  %p1117_p3 = por %p1116_p6, %p1115_p4 }
  0xb8   : > { %p1119_p13 = por %p1118_p10, %p1117_p3 }
  0xba   : > { %p1120_p2 = pnand %p1119_p13, %p1113_p1 }
  0xbc   : > { %1123 = shalt.err (!%p1120_p2)
}
  0xbd   : > { %s1124_s23 = scalar_lea.vmem %s1512_s22, 128  ;;  %s1243_s21 = smov [#allocation2]  }
  0xbe   : > { %p1125_p8 = scmp.ne.s32.totalorder %s1512_s22, %s1124_s23  ;;  %s1129_s12 = sshll.u32 %s1243_s21, 4  ;;  %s1130_s12 = int_to_ptr.vmem [resolvable:$false] %s1129_s12 }
  0xbf   : > { %s1131_s15 = scalar_lea.vmem %s1130_s12, 256  ;;  %p1132_p12 = scmp.lt.s32.totalorder %s1512_s22, %s1130_s12 }
  0xc0   : > { %p1127_p9 = pnand %p1125_p8, %p1111_p7  ;;  %p1133_p4 = scmp.lt.s32.totalorder %s1131_s15, %s1124_s23 }
  0xc2   : > { %p1128_p0 = pneg %p1127_p9  ;;  %p1134_p6 = por %p1133_p4, %p1132_p12 }
  0xc4   : > { %p1135_p3 = pnand %p1134_p6, %p1128_p0 }
  0xc6   : > { %1138 = shalt.err (!%p1135_p3)
}
  0xc7   : > { %852 = dma.hbm_to_vmem [thread:$0]  (!%p1508_p5), %s1504_s19, 128, %s1512_s22, %s309_s17  }
  0xc8   : > { %p1656_p1 = scmp.ne.s32.totalorder %s1644_s9, 0 }
  0xc9   : > { %s1542_s1 = sand.u32 (!%p1656_p1), 1, %s1217_s25  }
  0xca   : > { %329 = sbr.rel (%p1656_p1) target bundleno = 1009 (0x3f1), region = 48  ;;  %s749_s16 = sshll.u32 (!%p1656_p1), %s1542_s1, 3 }
  0xcb   : > { %s332_s10 = scalar_lea.sflag (!%p1656_p1), [#allocation3], %s1542_s1  ;;  %s335_s11 = scalar_lea.vmem (!%p1656_p1), [#allocation2], %s749_s16 }
  0xd1   : > { %1192 = dma.done.wait (%p1483_p11), %s332_s10, 128  }
  0xd2   : > { %1194 = vsyncadd (%p1483_p11), %s332_s10, 4294967168  ;;  %p1657_p12 = scmp.ne.s32.totalorder %s1643_s8, 0 }
  0xd4   : > { %1196 = dma.done.wait (%p1657_p12), [#allocation6], 32  }
  0xd5   : > { %1198 = vsyncadd (%p1657_p12), [#allocation6], 4294967264 }
  0xd6   : > { %1200 = dma.done.wait (%p1657_p12), [#allocation9], 272  }
  0xd7   : > { %1202 = vsyncadd (%p1657_p12), [#allocation9], 4294967024 }
  0xd8   : > { %1204 = dma.done.wait (%p1657_p12), [#allocation12], 528  }
  0xd9   : > { %1206 = vsyncadd (%p1657_p12), [#allocation12], 4294966768  ;;  %vm394_vm0 = vcmask 261120   ;;  %v1564_v0 = vld [vmem:[%s335_s11] sm:$0xff]  ;;  %v929_v7 = vld [vmem:[#allocation8] sm:$0xff]   ;;  %v1244_v8 = vmov 0.0  }
  0xda   : > { %v395_v1 = vsel %vm394_vm0, %v1564_v0, 0.0  ;;  %782 = vmatprep.subr.bf16.mxu0 %v1244_v8  ;;  %790 = vmatprep.subr.bf16.mxu1 %v1244_v8  ;;  %v930_v9 = vld [vmem:[#allocation8 + $0x8] sm:$0xff]   ;;  %vm1245_vm1 = vmmov 0   ;;  %v757_v14 = vld [vmem:[#allocation5] ss:$0 sm:$0xff]  ;;  %v931_v20 = vld [vmem:[#allocation11] sm:$0xff]  }
  0xdb   : > { %396 = vadd.xlane.f32.xlu0 %v395_v1  ;;  %783 = vmatpush3.bf16.msra.mxu0 %v929_v7  ;;  %v758_v16 = vld [vmem:[#allocation7] ss:$0 sm:$0xff]  ;;  %v933_v22 = vld [vmem:[#allocation11 + $0x10] sm:$0xff]   ;;  %v934_v23 = vld [vmem:[#allocation11 + $0x18] sm:$0xff]   ;;  %vm537_vm2 = vcmask 523264   ;;  %s771_s8 = sshll.u32 %s1225_s27, 7 }
  0xdc   : > { %786 = vmatprep.mubr.msk.bf16.mxu0 %vm1245_vm1, %v1244_v8  ;;  %784 = vmatprep.subr.bf16.mxu0 %v1244_v8  ;;  %v932_v21 = vld [vmem:[#allocation11 + $0x8] sm:$0xff]   ;;  %v759_v24 = vld [vmem:[#allocation10] ss:$0 sm:$0xff]  ;;  %v764_v36 = vld [vmem:[#allocation13] ss:$0 sm:$0xff]  ;;  %s389_s9 = scalar_lea.vmem [#allocation14], %s749_s16  ;;  %s1578_s14 = scalar_lea.hbm %s1635_s7, %s771_s8 }
  0xdd   : > { %798 = vmatprep.mubr.msk.bf16.mxu1 %vm1245_vm1, %v1244_v8  ;;  %791 = vmatpush3.bf16.msra.mxu1 %v931_v20  ;;  %s599_s18 = sshll.u32 %s389_s9, 4  ;;  %s585_s27 = scalar_lea.sflag [#allocation4], %s1542_s1  ;;  %s1580_s18 = int_to_ptr.vmem [resolvable:$true] %s599_s18 }
  0xde   : > { %792 = vmatprep.subr.bf16.mxu1 %v1244_v8  ;;  %s1139_s17 = scalar_lea.vmem %s1580_s18, 128  ;;  %p1658_p0 = scmp.ne.s32.totalorder %s1653_s3, 0 }
  0xdf   : > { %785 = vmatpush3.bf16.msra.mxu0 %v930_v9  ;;  %p1140_p11 = scmp.ne.s32.totalorder %s1580_s18, %s1139_s17  ;;  %s1246_s23 = smov [#allocation14]  }
  0xe0   : > { %s1143_s21 = sshll.u32 %s1246_s23, 4  ;;  %s1144_s21 = int_to_ptr.vmem [resolvable:$false] %s1143_s21 }
  0xe1   : > { %793 = vmatpush3.bf16.msra.mxu1 %v932_v21  ;;  %p1141_p5 = pnand %p1140_p11, %p1658_p0  ;;  %s1145_s12 = scalar_lea.vmem %s1144_s21, 256 }
  0xe2   : > { %794 = vmatprep.subr.bf16.mxu1 %v1244_v8  ;;  %p1146_p10 = scmp.lt.s32.totalorder %s1580_s18, %s1144_s21  ;;  %p1147_p13 = scmp.lt.s32.totalorder %s1145_s12, %s1139_s17 }
  0xe3   : > { %p1142_p7 = pneg %p1141_p5 }
  0xe4   : > { %p1148_p2 = por %p1147_p13, %p1146_p10 }
  0xe5   : > { %795 = vmatpush3.bf16.msra.mxu1 %v933_v22 }
  0xe6   : > { %796 = vmatprep.subr.bf16.mxu1 %v1244_v8  ;;  %p1149_p8 = pnand %p1148_p2, %p1142_p7 }
  0xe9   : > { %797 = vmatpush3.bf16.msra.mxu1 %v934_v23 }
 0x168   : > { %v397_v2 = vpop.xlane.xlu0 %396 }
 0x169   : > { %v399_v3 = vmul.f32 0.03125, %v397_v2 }
 0x16b   : > { %v400_v4 = vsub.f32 %v1564_v0, %v399_v3 }
 0x16d   : > { %v401_v5 = vmul.f32 %v400_v4, %v400_v4 }
 0x16f   : > { %v402_v6 = vsel %vm394_vm0, %v401_v5, 0.0 }
 0x170   : > { %403 = vadd.xlane.f32.xlu0 %v402_v6 }
 0x1fd   : > { %v404_v10 = vpop.xlane.xlu0 %403 }
 0x1fe   : > { %v405_v11 = vmul.f32 0.03125, %v404_v10 }
 0x200   : > { %v406_v12 = vadd.f32 1e-05, %v405_v11 }
 0x202   : > { %935 = vrsqrt.f32 %v406_v12 }
 0x20c   : > { %v936_v13 = vpop.eup %935 }
 0x20d   : > { %v408_v15 = vmul.f32 %v936_v13, %v400_v4 }
 0x20f   : > { %v415_v17 = vmul.f32 %v757_v14, %v408_v15 }
 0x211   : > { %v422_v18 = vadd.f32 %v758_v16, %v415_v17 }
 0x213   : > { %v423_v19 = vpack.c.bf16 %v422_v18, %v422_v18 }
 0x215   : > { %787 = vmatmul.mubr.msk.bf16.vlgmr.msra.gmra.mrb[0].mxu0 %vm394_vm0, %v423_v19 }
 0x2e8   : > { %v484_v25 = vpop.f32.mrb[0].mxu0 }
 0x2e9   : > { %v485_v26 = vadd.f32 %v759_v24, %v484_v25  ;;  %v788_v27 = vpop.f32.mrb[1].mxu0 }
 0x2ea   : > { %v487_v28 = vpop.f32.mrb[2].mxu0 }
 0x2eb   : > { %v763_v29 = vmul.f32 -1.442695, %v485_v26  ;;  %v789_v30 = vpop.f32.mrb[3].mxu0 }
 0x2ed   : > { %937 = vpow2.f32 %v763_v29 }
 0x2f7   : > { %v938_v31 = vpop.eup %937 }
 0x2f8   : > { %v493_v32 = vadd.f32 1.0, %v938_v31 }
 0x2fa   : > { %939 = vrcp.f32 %v493_v32 }
 0x304   : > { %v940_v33 = vpop.eup %939 }
 0x305   : > { %v496_v34 = vmul.f32 %v940_v33, %v485_v26 }
 0x307   : > { %v497_v35 = vpack.c.bf16 %v496_v34, %v496_v34 }
 0x309   : > { %799 = vmatmul.mubr.msk.bf16.vlgmr.msra.gmra.mrb[0].mxu1 %vm537_vm2, %v497_v35 }
 0x3dc   : > { %v575_v37 = vpop.f32.mrb[0].mxu1 }
 0x3dd   : > { %v576_v38 = vadd.f32 %v764_v36, %v575_v37  ;;  %v800_v39 = vpop.f32.mrb[1].mxu1 }
 0x3de   : > { %v578_v40 = vpop.f32.mrb[2].mxu1 }
 0x3df   : > { %v581_v41 = vmul.f32 0.5, %v576_v38  ;;  %v801_v42 = vpop.f32.mrb[3].mxu1 }
 0x3e1   : > { %v582_v43 = vadd.f32 %v581_v41, %v1564_v0 }
 0x3e3   : > { %583 = vst.msk [vmem:[%s389_s9] sm:$0xff] %vm394_vm0, %v582_v43 }
 0x3e4   : > { %1152 = shalt.err (!%p1149_p8)
}
 0x3e5   : > { %s1153_s15 = scalar_lea.hbm %s1578_s14, 128  ;;  %s1157_s10 = scalar_lea.hbm %s1635_s7, 256 }
 0x3e6   : > { %p1154_p9 = scmp.ne.s32.totalorder %s1578_s14, %s1153_s15  ;;  %p1158_p3 = scmp.lt.u32.totalorder %s1578_s14, %s1635_s7 }
 0x3e7   : > { %p1159_p1 = scmp.lt.u32.totalorder %s1157_s10, %s1153_s15  ;;  %p1161_p11 = scmp.lt.u32.totalorder %s1153_s15, %s1578_s14 }
 0x3e8   : > { %p1155_p4 = pnand %p1154_p9, %p1658_p0 }
 0x3e9   : > { %p1160_p12 = por %p1159_p1, %p1158_p3 }
 0x3ea   : > { %p1156_p6 = pneg %p1155_p4 }
 0x3eb   : > { %p1162_p5 = por %p1161_p11, %p1160_p12 }
 0x3ed   : > { %p1163_p7 = pnand %p1162_p5, %p1156_p6 }
 0x3ef   : > { %1166 = shalt.err (!%p1163_p7)
}
 0x3f0   : > { %828 = dma.vmem_to_hbm [thread:$0]  (%p1658_p0), %s1580_s18, 128, %s1578_s14, %s585_s27  }
 0x3f1 PF: > { %s611_s9 = sand.u32 1, %s1213_s24   ;;  %p1659_p10 = scmp.ne.s32.totalorder %s1654_s30, 0 }
 0x3f2   : > { %p1660_p13 = scmp.ge.s32.totalorder %s1233_s29, 2  ;;  %s612_s19 = scalar_lea.sflag [#allocation4], %s611_s9 }
 0x3f4   : > { %p854_p2 = pnand %p1660_p13, %p1659_p10 }
 0x3f6   : > { %1208 = dma.done.wait (!%p854_p2), %s612_s19, 128  }
 0x3f7   : > { %1210 = vsyncadd (!%p854_p2), %s612_s19, 4294967168  ;;  %s26_s29 = sadd.s32 1, %s1233_s29   ;;  %s1661_s24 = smov %s1217_s25 }
 0x3f8   : > { %p23_p8 = scmp.ge.s32.totalorder %s26_s29, 4   ;;  %s1662_s25 = smov %s1221_s26 }
 0x3f9   : > { %s1663_s26 = smov %s1492_s20  ;;  %s1664_s27 = smov %s1229_s28 }
 0x3fa   : > { %s1665_s28 = smov %s1667_s13  ;;  %25 = sbr.rel (!%p23_p8) target bundleno = 12 (0xc), region = 117 }
 0x401   :  { %617 = vsyncpa [#allocation3], 1 }
 0x402   :  { %619 = vsyncpa [#allocation3 + $0x1], 1 }
 0x403   :  { %620 = vsyncpa [#allocation6], 1 }
 0x404   :  { %621 = vsyncpa [#allocation9], 1 }
 0x405   :  { %622 = vsyncpa [#allocation12], 1 }
 0x406   :  { %623 = vsyncpa [#allocation4], 1 }
 0x407   :  { %625 = vsyncpa [#allocation4 + $0x1], 1 }

// kernel: _lambda_.9
= control target key start
LH: loop header
LB: loop body
LE: loop exit
PB: predicated region body
PF: predicated region fallthrough
CT: control target
= control target key end

     0   :  { %s1897_s0 = inlined_call_operand.hbm [shape: f32[2,8,32], index: 0, kind: input, shape index: {}]   ;;  %s1898_s1 = inlined_call_operand.hbm [shape: f32[1,32], index: 1, kind: input, shape index: {}, may-alias: {1,7}]   ;;  %s1899_s2 = inlined_call_operand.hbm [shape: f32[1,32], index: 2, kind: input, shape index: {}, may-alias: {2,8}]   ;;  %s1900_s3 = inlined_call_operand.hbm [shape: bf16[32,64], index: 3, kind: input, shape index: {}]   ;;  %s1901_s4 = inlined_call_operand.hbm [shape: f32[1,64], index: 4, kind: input, shape index: {}]   ;;  %s1902_s5 = inlined_call_operand.hbm [shape: bf16[64,32], index: 5, kind: input, shape index: {}]   ;;  %s1903_s6 = inlined_call_operand.hbm [shape: f32[1,32], index: 6, kind: input, shape index: {}]   ;;  %s1904_s7 = inlined_call_operand.hbm [shape: f32[1,32], index: 7, kind: input, shape index: {}, may-alias: {1,7}]   ;;  %s1905_s8 = inlined_call_operand.hbm [shape: f32[1,32], index: 8, kind: input, shape index: {}, may-alias: {2,8}]   ;;  %s1906_s9 = inlined_call_operand.hbm [shape: f32[2,8,32], index: 9, kind: output, shape index: {}]  }
   0x1   :  { %1913 = sst [smem:[#allocation25_spill]] %s1898_s1 }
   0x2   :  { %1914 = sst [smem:[#allocation26_spill]] %s1900_s3 }
   0x3   :  { %1915 = sst [smem:[#allocation27_spill]] %s1906_s9 }
   0x4   :  { %14 = vsyncpa [#allocation3], 0 }
   0x5   :  { %16 = vsyncpa [#allocation3 + $0x1], 0 }
   0x6   :  { %17 = vsyncpa [#allocation6], 0 }
   0x7   :  { %18 = vsyncpa [#allocation9], 0 }
   0x8   :  { %19 = vsyncpa [#allocation12], 0 }
   0x9   :  { %20 = vsyncpa [#allocation15], 0 }
   0xa   :  { %21 = vsyncpa [#allocation4], 0 }
   0xb   :  { %23 = vsyncpa [#allocation4 + $0x1], 0  ;;  %s1514_s30 = smov 0   ;;  %s1516_s10 = smov 0  }
   0xc   :  { %s1518_s11 = smov 0   ;;  %s1520_s12 = smov 0  }
   0xd   :  { %s1522_s13 = smov 0   ;;  %s1524_s14 = smov 0  }
   0xe LB: > { %1916 = sst [smem:[#allocation24_spill]] %s1440_s12  ;;  %s1910_s15 = sadd.s32 4294967295, %s1448_s14   ;;  %s1448_s14 = sphi %s1524_s14, %s29_s14   ;;  %s1444_s13 = sphi %s1522_s13, %s1941_s13   ;;  %s1440_s12 = sphi %s1520_s12, %s1940_s12   ;;  %s1436_s11 = sphi %s1518_s11, %s1939_s11   ;;  %s1432_s10 = sphi %s1516_s10, %s1938_s10   ;;  %s1428_s30 = sphi %s1514_s30, %s1937_s30  }
   0xf   : > { %p865_p0 = scmp.ge.s32.totalorder %s1448_s14, 1  ;;  %p1548_p1 = scmp.eq.s32.totalorder %s1910_s15, 0 }
  0x10   : > { %p270_p2 = scmp.lt.s32.totalorder %s1448_s14, 3  ;;  %s1450_s18 = smov [#allocation5]  }
  0x11   : > { %s1917_s16 = scalar_select %p1548_p1, 1, 0 }
  0x12   : > { %p1553_p3 = pnand %p865_p0, %p270_p2  ;;  %s283_s19 = sshll.u32 %s1450_s18, 4  ;;  %s284_s19 = int_to_ptr.vmem [resolvable:$true] %s283_s19 }
  0x13   : > { %s1451_s20 = smov [#allocation8]   ;;  %s1452_s23 = smov [#allocation11]  }
  0x14   : > { %s1918_s17 = scalar_select %p1553_p3, 1, 0 }
  0x15   : > { %p971_p5 = pneg %p1553_p3  ;;  %s304_s21 = sshll.u32 %s1451_s20, 4  ;;  %s1566_s21 = int_to_ptr.vmem [resolvable:$true] %s304_s21 }
  0x16   : > { %s1568_s24 = sshll.u32 %s1452_s23, 4  ;;  %s1920_s1 = sld [smem:[#allocation25_spill]]  ;;  %s329_s24 = int_to_ptr.vmem [resolvable:$true] %s1568_s24 }
  0x17   : > { %p1562_p6 = pnand %p971_p5, %p1548_p1 }
  0x19   : > { %p1578_p8 = pneg %p1562_p6 }
  0x1c   : > { %s1096_s27 = scalar_lea.hbm %s1920_s1, 16 }
  0x1d   : > { %p1097_p7 = scmp.ne.s32.totalorder %s1920_s1, %s1096_s27  ;;  %p1103_p11 = scmp.lt.u32.totalorder %s1096_s27, %s1920_s1 }
  0x1f   : > { %p1099_p9 = pnand %p1578_p8, %p1097_p7 }
  0x21   : > { %p1100_p10 = pneg %p1099_p9 }
  0x23   : > { %p1105_p12 = pnand %p1103_p11, %p1100_p10 }
  0x25   : > { %1108 = shalt.err (!%p1105_p12)
}
  0x26   : > { %s1109_s25 = scalar_lea.vmem %s284_s19, 16  ;;  %s1116_s26 = scalar_lea.vmem %s284_s19, 32 }
  0x27   : > { %p1110_p13 = scmp.ne.s32.totalorder %s284_s19, %s1109_s25  ;;  %p1117_p5 = scmp.lt.s32.totalorder %s284_s19, %s284_s19 }
  0x28   : > { %p1118_p4 = scmp.lt.s32.totalorder %s1116_s26, %s1109_s25 }
  0x29   : > { %p1112_p0 = pnand %p1110_p13, %p1578_p8 }
  0x2a   : > { %p1119_p3 = por %p1118_p4, %p1117_p5 }
  0x2b   : > { %p1113_p2 = pneg %p1112_p0 }
  0x2d   : > { %p1120_p1 = pnand %p1119_p3, %p1113_p2 }
  0x2f   : > { %1123 = shalt.err (!%p1120_p1)
}
  0x30   : > { %974 = dma.hbm_to_vmem [thread:$0]  (!%p1562_p6), %s1920_s1, 16, %s284_s19, [#allocation6]  }
  0x31   : > { %s1922_s3 = sld [smem:[#allocation26_spill]] }
  0x37   : > { %s1124_s23 = scalar_lea.hbm %s1922_s3, 256 }
  0x38   : > { %p1125_p7 = scmp.ne.s32.totalorder %s1922_s3, %s1124_s23  ;;  %p1131_p1 = scmp.lt.u32.totalorder %s1124_s23, %s1922_s3 }
  0x3a   : > { %p1127_p9 = pnand %p1125_p7, %p1578_p8 }
  0x3c   : > { %p1128_p4 = pneg %p1127_p9 }
  0x3e   : > { %p1133_p3 = pnand %p1131_p1, %p1128_p4 }
  0x40   : > { %1136 = shalt.err (!%p1133_p3)
}
  0x41   : > { %s1137_s19 = scalar_lea.vmem %s1566_s21, 256  ;;  %p1145_p13 = scmp.lt.s32.totalorder %s1566_s21, %s1566_s21 }
  0x42   : > { %p1138_p10 = scmp.ne.s32.totalorder %s1566_s21, %s1137_s19  ;;  %p1146_p0 = scmp.lt.s32.totalorder %s1137_s19, %s1137_s19 }
  0x44   : > { %p1140_p11 = pnand %p1138_p10, %p1578_p8  ;;  %p1147_p2 = por %p1146_p0, %p1145_p13 }
  0x46   : > { %p1141_p12 = pneg %p1140_p11 }
  0x48   : > { %p1148_p5 = pnand %p1147_p2, %p1141_p12 }
  0x4a   : > { %1151 = shalt.err (!%p1148_p5)
}
  0x4b   : > { %s1453_s9 = smov 64   ;;  %s1454_s15 = smov 4  }
  0x4c   : > { %980 = dma.hbm_to_vmem [thread:$0]  (!%p1562_p6), %s1922_s3, 256, %s1566_s21, [#allocation9], %s1453_s9, %s1453_s9, %s1454_s15  }
  0x4d   : > { %s1152_s23 = scalar_lea.hbm %s1902_s5, 512 }
  0x4e   : > { %p1153_p7 = scmp.ne.s32.totalorder %s1902_s5, %s1152_s23  ;;  %p1159_p1 = scmp.lt.u32.totalorder %s1152_s23, %s1902_s5 }
  0x50   : > { %p1155_p9 = pnand %p1153_p7, %p1578_p8 }
  0x52   : > { %p1156_p4 = pneg %p1155_p9 }
  0x54   : > { %p1161_p3 = pnand %p1159_p1, %p1156_p4 }
  0x56   : > { %1164 = shalt.err (!%p1161_p3)
}
  0x57   : > { %s1165_s28 = scalar_lea.vmem %s329_s24, 512  ;;  %p1173_p13 = scmp.lt.s32.totalorder %s329_s24, %s329_s24 }
  0x58   : > { %p1166_p10 = scmp.ne.s32.totalorder %s329_s24, %s1165_s28  ;;  %p1174_p0 = scmp.lt.s32.totalorder %s1165_s28, %s1165_s28 }
  0x5a   : > { %p1168_p11 = pnand %p1166_p10, %p1578_p8  ;;  %p1175_p2 = por %p1174_p0, %p1173_p13 }
  0x5c   : > { %p1169_p12 = pneg %p1168_p11 }
  0x5e   : > { %p1176_p5 = pnand %p1175_p2, %p1169_p12 }
  0x60   : > { %1179 = shalt.err (!%p1176_p5)
}
  0x61   : > { %986 = dma.hbm_to_vmem [thread:$0]  (!%p1562_p6), %s1902_s5, 512, %s329_s24, [#allocation12], %s1453_s9, %s1453_s9, %s1454_s15  }
  0x62   : > { %s1455_s1 = smov [#allocation14]   ;;  %s1456_s20 = smov [#allocation7]  }
  0x63   : > { %s353_s27 = sshll.u32 %s1455_s1, 4  ;;  %s294_s23 = sshll.u32 %s1456_s20, 4  ;;  %s354_s27 = int_to_ptr.vmem [resolvable:$true] %s353_s27  ;;  %s295_s23 = int_to_ptr.vmem [resolvable:$true] %s294_s23 }
  0x64   : > { %s1180_s19 = scalar_lea.hbm %s1904_s7, 16 }
  0x65   : > { %p1181_p7 = scmp.ne.s32.totalorder %s1904_s7, %s1180_s19  ;;  %p1187_p1 = scmp.lt.u32.totalorder %s1180_s19, %s1904_s7 }
  0x67   : > { %p1183_p9 = pnand %p1181_p7, %p1578_p8 }
  0x69   : > { %p1184_p4 = pneg %p1183_p9 }
  0x6b   : > { %p1189_p3 = pnand %p1187_p1, %p1184_p4 }
  0x6d   : > { %1192 = shalt.err (!%p1189_p3)
}
  0x6e   : > { %s1193_s24 = scalar_lea.vmem %s354_s27, 16  ;;  %s1200_s9 = scalar_lea.vmem %s354_s27, 32 }
  0x6f   : > { %p1194_p10 = scmp.ne.s32.totalorder %s354_s27, %s1193_s24  ;;  %p1201_p13 = scmp.lt.s32.totalorder %s354_s27, %s354_s27 }
  0x70   : > { %p1202_p0 = scmp.lt.s32.totalorder %s1200_s9, %s1193_s24 }
  0x71   : > { %p1196_p11 = pnand %p1194_p10, %p1578_p8 }
  0x72   : > { %p1203_p2 = por %p1202_p0, %p1201_p13 }
  0x73   : > { %p1197_p12 = pneg %p1196_p11 }
  0x75   : > { %p1204_p5 = pnand %p1203_p2, %p1197_p12 }
  0x77   : > { %1207 = shalt.err (!%p1204_p5)
}
  0x78   : > { %992 = dma.hbm_to_vmem [thread:$0]  (!%p1562_p6), %s1904_s7, 16, %s354_s27, [#allocation15]  }
  0x79   : > { %s1208_s1 = scalar_lea.hbm %s1899_s2, 16 }
  0x7a   : > { %p1209_p7 = scmp.ne.s32.totalorder %s1899_s2, %s1208_s1  ;;  %p1215_p1 = scmp.lt.u32.totalorder %s1208_s1, %s1899_s2 }
  0x7c   : > { %p1211_p9 = pnand %p1209_p7, %p1578_p8 }
  0x7e   : > { %p1212_p4 = pneg %p1211_p9 }
  0x80   : > { %p1217_p3 = pnand %p1215_p1, %p1212_p4 }
  0x82   : > { %1220 = shalt.err (!%p1217_p3)
}
  0x83   : > { %s1221_s28 = scalar_lea.vmem %s295_s23, 16  ;;  %s1228_s27 = scalar_lea.vmem %s295_s23, 32 }
  0x84   : > { %p1222_p10 = scmp.ne.s32.totalorder %s295_s23, %s1221_s28  ;;  %p1229_p13 = scmp.lt.s32.totalorder %s295_s23, %s295_s23 }
  0x85   : > { %p1230_p0 = scmp.lt.s32.totalorder %s1228_s27, %s1221_s28 }
  0x86   : > { %p1224_p11 = pnand %p1222_p10, %p1578_p8 }
  0x87   : > { %p1231_p2 = por %p1230_p0, %p1229_p13 }
  0x88   : > { %p1225_p12 = pneg %p1224_p11 }
  0x8a   : > { %p1232_p5 = pnand %p1231_p2, %p1225_p12 }
  0x8c   : > { %1235 = shalt.err (!%p1232_p5)
}
  0x8d   : > { %977 = dma.hbm_to_vmem [thread:$0]  (!%p1562_p6), %s1899_s2, 16, %s295_s23, [#allocation6]  }
  0x8e   : > { %s1457_s9 = smov [#allocation10]   ;;  %s1458_s15 = smov [#allocation13]  }
  0x8f   : > { %s318_s3 = sshll.u32 %s1457_s9, 4  ;;  %s342_s12 = sshll.u32 %s1458_s15, 4  ;;  %s319_s3 = int_to_ptr.vmem [resolvable:$true] %s318_s3  ;;  %s343_s12 = int_to_ptr.vmem [resolvable:$true] %s342_s12 }
  0x90   : > { %s1236_s20 = scalar_lea.hbm %s1901_s4, 16 }
  0x91   : > { %p1237_p7 = scmp.ne.s32.totalorder %s1901_s4, %s1236_s20  ;;  %p1243_p1 = scmp.lt.u32.totalorder %s1236_s20, %s1901_s4 }
  0x93   : > { %p1239_p9 = pnand %p1237_p7, %p1578_p8 }
  0x95   : > { %p1240_p4 = pneg %p1239_p9 }
  0x97   : > { %p1245_p3 = pnand %p1243_p1, %p1240_p4 }
  0x99   : > { %1248 = shalt.err (!%p1245_p3)
}
  0x9a   : > { %s1249_s23 = scalar_lea.vmem %s319_s3, 16  ;;  %s1256_s27 = scalar_lea.vmem %s319_s3, 32 }
  0x9b   : > { %p1250_p10 = scmp.ne.s32.totalorder %s319_s3, %s1249_s23  ;;  %p1257_p13 = scmp.lt.s32.totalorder %s319_s3, %s319_s3 }
  0x9c   : > { %p1258_p0 = scmp.lt.s32.totalorder %s1256_s27, %s1249_s23 }
  0x9d   : > { %p1252_p11 = pnand %p1250_p10, %p1578_p8 }
  0x9e   : > { %p1259_p2 = por %p1258_p0, %p1257_p13 }
  0x9f   : > { %p1253_p12 = pneg %p1252_p11 }
  0xa1   : > { %p1260_p5 = pnand %p1259_p2, %p1253_p12 }
  0xa3   : > { %1263 = shalt.err (!%p1260_p5)
}
  0xa4   : > { %983 = dma.hbm_to_vmem [thread:$0]  (!%p1562_p6), %s1901_s4, 16, %s319_s3, [#allocation9]  }
  0xa5   : > { %s1264_s29 = scalar_lea.hbm %s1903_s6, 16 }
  0xa6   : > { %p1265_p7 = scmp.ne.s32.totalorder %s1903_s6, %s1264_s29  ;;  %p1271_p1 = scmp.lt.u32.totalorder %s1264_s29, %s1903_s6 }
  0xa8   : > { %p1267_p9 = pnand %p1265_p7, %p1578_p8 }
  0xaa   : > { %p1268_p4 = pneg %p1267_p9 }
  0xac   : > { %p1273_p3 = pnand %p1271_p1, %p1268_p4 }
  0xae   : > { %1276 = shalt.err (!%p1273_p3)
}
  0xaf   : > { %s1277_s19 = scalar_lea.vmem %s343_s12, 16  ;;  %s1284_s3 = scalar_lea.vmem %s343_s12, 32 }
  0xb0   : > { %p1278_p10 = scmp.ne.s32.totalorder %s343_s12, %s1277_s19  ;;  %p1285_p13 = scmp.lt.s32.totalorder %s343_s12, %s343_s12 }
  0xb1   : > { %p1286_p0 = scmp.lt.s32.totalorder %s1284_s3, %s1277_s19 }
  0xb2   : > { %p1280_p11 = pnand %p1278_p10, %p1578_p8 }
  0xb3   : > { %p1287_p2 = por %p1286_p0, %p1285_p13 }
  0xb4   : > { %p1281_p12 = pneg %p1280_p11 }
  0xb6   : > { %p1288_p5 = pnand %p1287_p2, %p1281_p12 }
  0xb8   : > { %1291 = shalt.err (!%p1288_p5)
}
  0xb9   : > { %989 = dma.hbm_to_vmem [thread:$0]  (!%p1562_p6), %s1903_s6, 16, %s343_s12, [#allocation12]  }
  0xba   : > { %s1459_s27 = smov [#allocation16]   ;;  %s1292_s15 = scalar_lea.hbm %s1905_s8, 16 }
  0xbb   : > { %s364_s21 = sshll.u32 %s1459_s27, 4  ;;  %p1293_p7 = scmp.ne.s32.totalorder %s1905_s8, %s1292_s15  ;;  %s365_s21 = int_to_ptr.vmem [resolvable:$true] %s364_s21 }
  0xbc   : > { %p1299_p1 = scmp.lt.u32.totalorder %s1292_s15, %s1905_s8 }
  0xbd   : > { %p1295_p9 = pnand %p1293_p7, %p1578_p8 }
  0xbf   : > { %p1296_p4 = pneg %p1295_p9 }
  0xc1   : > { %p1301_p3 = pnand %p1299_p1, %p1296_p4 }
  0xc3   : > { %1304 = shalt.err (!%p1301_p3)
}
  0xc4   : > { %s1305_s12 = scalar_lea.vmem %s365_s21, 16  ;;  %s1312_s26 = scalar_lea.vmem %s365_s21, 32 }
  0xc5   : > { %p1306_p10 = scmp.ne.s32.totalorder %s365_s21, %s1305_s12  ;;  %p1313_p13 = scmp.lt.s32.totalorder %s365_s21, %s365_s21 }
  0xc6   : > { %p1314_p0 = scmp.lt.s32.totalorder %s1312_s26, %s1305_s12 }
  0xc7   : > { %p1308_p11 = pnand %p1306_p10, %p1578_p8 }
  0xc8   : > { %p1315_p2 = por %p1314_p0, %p1313_p13 }
  0xc9   : > { %p1309_p12 = pneg %p1308_p11 }
  0xcb   : > { %p1316_p5 = pnand %p1315_p2, %p1309_p12 }
  0xcd   : > { %1319 = shalt.err (!%p1316_p5)
}
  0xce   : > { %995 = dma.hbm_to_vmem [thread:$0]  (!%p1562_p6), %s1905_s8, 16, %s365_s21, [#allocation15]  }
  0xcf   : > { %s864_s18 = sadd.s32 4294967294, %s1448_s14   ;;  %s41_s28 = sadd.s32 1, %s1444_s13 }
  0xd0   : > { %p43_p8 = scmp.ge.s32.totalorder %s41_s28, 2  ;;  %s50_s22 = sadd.s32 1, %s1436_s11 }
  0xd1   : > { %p57_p7 = scmp.ne.s32.totalorder %s1436_s11, %s1432_s10  ;;  %p58_p9 = scmp.eq.s32.totalorder %s1448_s14, 0 }
  0xd2   : > { %s1943_s28 = smov (%p43_p8, %s41_s28), 0  ;;  %p63_p1 = scmp.ne.s32.totalorder %s1432_s10, %s1428_s30 }
  0xd3   : > { %p1734_p4 = por %p58_p9, %p57_p7  ;;  %s45_s27 = ssub.s32 %s1444_s13, %s1943_s28 }
  0xd4   : > { %s1924_s21 = sadd.s32 4294967295, %s1448_s14   ;;  %p48_p3 = scmp.eq.s32.totalorder %s45_s27, 0 }
  0xd5   : > { %p257_p6 = scmp.eq.s32.totalorder %s1924_s21, 1  ;;  %p1925_p10 = scmp.ne.s32.totalorder %s1917_s16, 0 }
  0xd6   : > { %p263_p13 = scmp.eq.s32.totalorder %s864_s18, 1  ;;  %p1012_p2 = scmp.lt.s32.totalorder %s1448_s14, 2 }
  0xd7   : > { %p1746_p11 = por %p1925_p10, %p63_p1  ;;  %p1750_p12 = por %p257_p6, %p57_p7 }
  0xd8   : > { %s1755_s15 = scalar_select %p48_p3, %s1436_s11, %s50_s22  }
  0xd9   : > { %s1927_s9 = scalar_select %p1750_p12, 1, 0 }
  0xda   : > { %p1757_p0 = por %p263_p13, %p63_p1  ;;  %s375_s1 = sand.u32 1, %s1436_s11  }
  0xdb   : > { %s876_s20 = sshll.u32 %s1444_s13, 7  ;;  %s875_s25 = sshll.u32 %s375_s1, 3 }
  0xdc   : > { %s1928_s29 = scalar_select %p1757_p0, 1, 0 }
  0xdd   : > { %s1767_s19 = scalar_lea.hbm %s1897_s0, %s876_s20  ;;  %s379_s3 = scalar_lea.vmem [#allocation2], %s875_s25 }
  0xde   : > { %s387_s18 = sshll.u32 %s379_s3, 4  ;;  %p1771_p5 = pnand %p1012_p2, %p1734_p4  ;;  %s1775_s18 = int_to_ptr.vmem [resolvable:$true] %s387_s18 }
  0xdf   : > { %s376_s27 = scalar_lea.sflag [#allocation3], %s375_s1  ;;  %s1320_s21 = scalar_lea.hbm %s1767_s19, 128 }
  0xe0   : > { %p1321_p8 = scmp.ne.s32.totalorder %s1767_s19, %s1320_s21  ;;  %p1322_p7 = pneg %p1771_p5 }
  0xe1   : > { %s1325_s23 = scalar_lea.hbm %s1897_s0, 256  ;;  %p1326_p4 = scmp.lt.u32.totalorder %s1767_s19, %s1897_s0 }
  0xe2   : > { %p1323_p9 = pnand %p1322_p7, %p1321_p8  ;;  %p1327_p6 = scmp.lt.u32.totalorder %s1325_s23, %s1320_s21 }
  0xe3   : > { %p1329_p10 = scmp.lt.u32.totalorder %s1320_s21, %s1767_s19 }
  0xe4   : > { %p1324_p1 = pneg %p1323_p9  ;;  %p1328_p3 = por %p1327_p6, %p1326_p4 }
  0xe6   : > { %p1330_p13 = por %p1329_p10, %p1328_p3 }
  0xe8   : > { %p1331_p2 = pnand %p1330_p13, %p1324_p1 }
  0xea   : > { %1334 = shalt.err (!%p1331_p2)
}
  0xeb   : > { %s1335_s1 = scalar_lea.vmem %s1775_s18, 128  ;;  %s1460_s3 = smov [#allocation2]  }
  0xec   : > { %p1336_p8 = scmp.ne.s32.totalorder %s1775_s18, %s1335_s1  ;;  %s1340_s20 = sshll.u32 %s1460_s3, 4  ;;  %s1341_s20 = int_to_ptr.vmem [resolvable:$false] %s1340_s20 }
  0xed   : > { %s1342_s25 = scalar_lea.vmem %s1341_s20, 256  ;;  %p1343_p12 = scmp.lt.s32.totalorder %s1775_s18, %s1341_s20 }
  0xee   : > { %p1338_p9 = pnand %p1336_p8, %p1322_p7  ;;  %p1344_p4 = scmp.lt.s32.totalorder %s1342_s25, %s1335_s1 }
  0xf0   : > { %p1339_p0 = pneg %p1338_p9  ;;  %p1345_p6 = por %p1344_p4, %p1343_p12 }
  0xf2   : > { %p1346_p3 = pnand %p1345_p6, %p1339_p0 }
  0xf4   : > { %1349 = shalt.err (!%p1346_p3)
}
  0xf5   : > { %999 = dma.hbm_to_vmem [thread:$0]  (!%p1771_p5), %s1767_s19, 128, %s1775_s18, %s376_s27  }
  0xf6   : > { %p1930_p1 = scmp.ne.s32.totalorder %s1918_s17, 0 }
  0xf7   : > { %s1805_s21 = sand.u32 (!%p1930_p1), 1, %s1432_s10  }
  0xf8   : > { %396 = sbr.rel (%p1930_p1) target bundleno = 1370 (0x55a), region = 56  ;;  %s878_s23 = sshll.u32 (!%p1930_p1), %s1805_s21, 3 }
  0xf9   : > { %s399_s12 = scalar_lea.sflag (!%p1930_p1), [#allocation3], %s1805_s21  ;;  %s402_s26 = scalar_lea.vmem (!%p1930_p1), [#allocation2], %s878_s23 }
  0xff   : > { %1403 = dma.done.wait (%p1746_p11), %s399_s12, 128  }
 0x100   : > { %1405 = vsyncadd (%p1746_p11), %s399_s12, 4294967168  ;;  %p1931_p12 = scmp.ne.s32.totalorder %s1917_s16, 0 }
 0x102   : > { %1407 = dma.done.wait (%p1931_p12), [#allocation6], 32  }
 0x103   : > { %1409 = vsyncadd (%p1931_p12), [#allocation6], 4294967264 }
 0x104   : > { %1411 = dma.done.wait (%p1931_p12), [#allocation9], 272  }
 0x105   : > { %1413 = vsyncadd (%p1931_p12), [#allocation9], 4294967024 }
 0x106   : > { %1415 = dma.done.wait (%p1931_p12), [#allocation12], 528  }
 0x107   : > { %1417 = vsyncadd (%p1931_p12), [#allocation12], 4294966768 }
 0x108   : > { %1419 = dma.done.wait (%p1931_p12), [#allocation15], 32  }
 0x109   : > { %1421 = vsyncadd (%p1931_p12), [#allocation15], 4294967264  ;;  %vm473_vm0 = vcmask 261120   ;;  %v1831_v0 = vld [vmem:[%s402_s26] sm:$0xff]  ;;  %v1082_v7 = vld [vmem:[#allocation8] sm:$0xff]   ;;  %v1461_v8 = vmov 0.0  }
 0x10a   : > { %v474_v1 = vsel %vm473_vm0, %v1831_v0, 0.0  ;;  %915 = vmatprep.subr.bf16.mxu0 %v1461_v8  ;;  %923 = vmatprep.subr.bf16.mxu1 %v1461_v8  ;;  %v1083_v9 = vld [vmem:[#allocation8 + $0x8] sm:$0xff]   ;;  %vm1462_vm1 = vmmov 0   ;;  %v888_v14 = vld [vmem:[#allocation5] ss:$0 sm:$0xff]  ;;  %v1084_v20 = vld [vmem:[#allocation11] sm:$0xff]  }
 0x10b   : > { %475 = vadd.xlane.f32.xlu0 %v474_v1  ;;  %916 = vmatpush3.bf16.msra.mxu0 %v1082_v7  ;;  %v889_v16 = vld [vmem:[#allocation7] ss:$0 sm:$0xff]  ;;  %v1086_v22 = vld [vmem:[#allocation11 + $0x10] sm:$0xff]   ;;  %v1087_v23 = vld [vmem:[#allocation11 + $0x18] sm:$0xff]   ;;  %vm616_vm2 = vcmask 523264   ;;  %s1932_s16 = sld [smem:[#allocation24_spill]] }
 0x10c   : > { %919 = vmatprep.mubr.msk.bf16.mxu0 %vm1462_vm1, %v1461_v8  ;;  %917 = vmatprep.subr.bf16.mxu0 %v1461_v8  ;;  %v1085_v21 = vld [vmem:[#allocation11 + $0x8] sm:$0xff]   ;;  %v890_v24 = vld [vmem:[#allocation10] ss:$0 sm:$0xff]  ;;  %v895_v36 = vld [vmem:[#allocation13] ss:$0 sm:$0xff]  ;;  %s468_s24 = scalar_lea.vmem [#allocation17], %s878_s23 }
 0x10d   : > { %931 = vmatprep.mubr.msk.bf16.mxu1 %vm1462_vm1, %v1461_v8  ;;  %924 = vmatpush3.bf16.msra.mxu1 %v1084_v20  ;;  %v901_v54 = vld [vmem:[#allocation14] ss:$0 sm:$0xff]  ;;  %v902_v56 = vld [vmem:[#allocation16] ss:$0 sm:$0xff]  ;;  %s707_s19 = sshll.u32 %s468_s24, 4  ;;  %s1933_s27 = sld [smem:[#allocation27_spill]]  ;;  %s1849_s19 = int_to_ptr.vmem [resolvable:$true] %s707_s19 }
 0x10e   : > { %925 = vmatprep.subr.bf16.mxu1 %v1461_v8  ;;  %s693_s3 = scalar_lea.sflag [#allocation4], %s1805_s21  ;;  %s1350_s20 = scalar_lea.vmem %s1849_s19, 128 }
 0x10f   : > { %918 = vmatpush3.bf16.msra.mxu0 %v1083_v9  ;;  %p1351_p11 = scmp.ne.s32.totalorder %s1849_s19, %s1350_s20  ;;  %p1934_p0 = scmp.ne.s32.totalorder %s1927_s9, 0 }
 0x110   : > { %s1463_s25 = smov [#allocation17]  }
 0x111   : > { %926 = vmatpush3.bf16.msra.mxu1 %v1085_v21  ;;  %s904_s17 = sshll.u32 %s1932_s16, 7  ;;  %p1352_p5 = pnand %p1351_p11, %p1934_p0 }
 0x112   : > { %927 = vmatprep.subr.bf16.mxu1 %v1461_v8  ;;  %s1354_s23 = sshll.u32 %s1463_s25, 4  ;;  %s1355_s23 = int_to_ptr.vmem [resolvable:$false] %s1354_s23 }
 0x113   : > { %s1847_s1 = scalar_lea.hbm %s1933_s27, %s904_s17  ;;  %p1353_p7 = pneg %p1352_p5 }
 0x114   : > { %s1356_s12 = scalar_lea.vmem %s1355_s23, 256  ;;  %p1357_p10 = scmp.lt.s32.totalorder %s1849_s19, %s1355_s23 }
 0x115   : > { %928 = vmatpush3.bf16.msra.mxu1 %v1086_v22  ;;  %p1358_p13 = scmp.lt.s32.totalorder %s1356_s12, %s1350_s20 }
 0x116   : > { %929 = vmatprep.subr.bf16.mxu1 %v1461_v8 }
 0x117   : > { %p1359_p2 = por %p1358_p13, %p1357_p10 }
 0x119   : > { %930 = vmatpush3.bf16.msra.mxu1 %v1087_v23  ;;  %p1360_p8 = pnand %p1359_p2, %p1353_p7 }
 0x198   : > { %v476_v2 = vpop.xlane.xlu0 %475 }
 0x199   : > { %v478_v3 = vmul.f32 0.03125, %v476_v2 }
 0x19b   : > { %v479_v4 = vsub.f32 %v1831_v0, %v478_v3 }
 0x19d   : > { %v480_v5 = vmul.f32 %v479_v4, %v479_v4 }
 0x19f   : > { %v481_v6 = vsel %vm473_vm0, %v480_v5, 0.0 }
 0x1a0   : > { %482 = vadd.xlane.f32.xlu0 %v481_v6 }
 0x22d   : > { %v483_v10 = vpop.xlane.xlu0 %482 }
 0x22e   : > { %v484_v11 = vmul.f32 0.03125, %v483_v10 }
 0x230   : > { %v485_v12 = vadd.f32 1e-05, %v484_v11 }
 0x232   : > { %1088 = vrsqrt.f32 %v485_v12 }
 0x23c   : > { %v1089_v13 = vpop.eup %1088 }
 0x23d   : > { %v487_v15 = vmul.f32 %v1089_v13, %v479_v4 }
 0x23f   : > { %v494_v17 = vmul.f32 %v888_v14, %v487_v15 }
 0x241   : > { %v501_v18 = vadd.f32 %v889_v16, %v494_v17 }
 0x243   : > { %v502_v19 = vpack.c.bf16 %v501_v18, %v501_v18 }
 0x245   : > { %920 = vmatmul.mubr.msk.bf16.vlgmr.msra.gmra.mrb[0].mxu0 %vm473_vm0, %v502_v19 }
 0x318   : > { %v563_v25 = vpop.f32.mrb[0].mxu0 }
 0x319   : > { %v564_v26 = vadd.f32 %v890_v24, %v563_v25  ;;  %v921_v27 = vpop.f32.mrb[1].mxu0 }
 0x31a   : > { %v566_v28 = vpop.f32.mrb[2].mxu0 }
 0x31b   : > { %v894_v29 = vmul.f32 -1.442695, %v564_v26  ;;  %v922_v30 = vpop.f32.mrb[3].mxu0 }
 0x31d   : > { %1090 = vpow2.f32 %v894_v29 }
 0x327   : > { %v1091_v31 = vpop.eup %1090 }
 0x328   : > { %v572_v32 = vadd.f32 1.0, %v1091_v31 }
 0x32a   : > { %1092 = vrcp.f32 %v572_v32 }
 0x334   : > { %v1093_v33 = vpop.eup %1092 }
 0x335   : > { %v575_v34 = vmul.f32 %v1093_v33, %v564_v26 }
 0x337   : > { %v576_v35 = vpack.c.bf16 %v575_v34, %v575_v34 }
 0x339   : > { %932 = vmatmul.mubr.msk.bf16.vlgmr.msra.gmra.mrb[0].mxu1 %vm616_vm2, %v576_v35 }
 0x40c   : > { %v654_v37 = vpop.f32.mrb[0].mxu1 }
 0x40d   : > { %v655_v38 = vadd.f32 %v895_v36, %v654_v37  ;;  %v933_v39 = vpop.f32.mrb[1].mxu1 }
 0x40e   : > { %v657_v40 = vpop.f32.mrb[2].mxu1 }
 0x40f   : > { %v660_v41 = vmul.f32 0.5, %v655_v38  ;;  %v934_v42 = vpop.f32.mrb[3].mxu1 }
 0x411   : > { %v661_v43 = vadd.f32 %v660_v41, %v1831_v0 }
 0x413   : > { %v664_v44 = vsel %vm473_vm0, %v661_v43, 0.0 }
 0x414   : > { %665 = vadd.xlane.f32.xlu1 %v664_v44 }
 0x4a1   : > { %v666_v45 = vpop.xlane.xlu1 %665 }
 0x4a2   : > { %v667_v46 = vmul.f32 0.03125, %v666_v45 }
 0x4a4   : > { %v668_v47 = vsub.f32 %v661_v43, %v667_v46 }
 0x4a6   : > { %v669_v48 = vmul.f32 %v668_v47, %v668_v47 }
 0x4a8   : > { %v670_v49 = vsel %vm473_vm0, %v669_v48, 0.0 }
 0x4a9   : > { %671 = vadd.xlane.f32.xlu1 %v670_v49 }
 0x536   : > { %v672_v50 = vpop.xlane.xlu1 %671 }
 0x537   : > { %v673_v51 = vmul.f32 0.03125, %v672_v50 }
 0x539   : > { %v674_v52 = vadd.f32 1e-05, %v673_v51 }
 0x53b   : > { %1094 = vrsqrt.f32 %v674_v52 }
 0x545   : > { %v1095_v53 = vpop.eup %1094 }
 0x546   : > { %v676_v55 = vmul.f32 %v1095_v53, %v668_v47 }
 0x548   : > { %v683_v57 = vmul.f32 %v901_v54, %v676_v55 }
 0x54a   : > { %v690_v58 = vadd.f32 %v902_v56, %v683_v57 }
 0x54c   : > { %691 = vst.msk [vmem:[%s468_s24] sm:$0xff] %vm473_vm0, %v690_v58 }
 0x54d   : > { %1363 = shalt.err (!%p1360_p8)
}
 0x54e   : > { %s1364_s21 = scalar_lea.hbm %s1847_s1, 128  ;;  %s1368_s17 = scalar_lea.hbm %s1933_s27, 256 }
 0x54f   : > { %p1365_p9 = scmp.ne.s32.totalorder %s1847_s1, %s1364_s21  ;;  %p1369_p3 = scmp.lt.u32.totalorder %s1847_s1, %s1933_s27 }
 0x550   : > { %p1370_p1 = scmp.lt.u32.totalorder %s1368_s17, %s1364_s21  ;;  %p1372_p11 = scmp.lt.u32.totalorder %s1364_s21, %s1847_s1 }
 0x551   : > { %p1366_p4 = pnand %p1365_p9, %p1934_p0 }
 0x552   : > { %p1371_p12 = por %p1370_p1, %p1369_p3 }
 0x553   : > { %p1367_p6 = pneg %p1366_p4 }
 0x554   : > { %p1373_p5 = por %p1372_p11, %p1371_p12 }
 0x556   : > { %p1374_p7 = pnand %p1373_p5, %p1367_p6 }
 0x558   : > { %1377 = shalt.err (!%p1374_p7)
}
 0x559   : > { %969 = dma.vmem_to_hbm [thread:$0]  (%p1934_p0), %s1849_s19, 128, %s1847_s1, %s693_s3  }
 0x55a PF: > { %s719_s22 = sand.u32 1, %s1428_s30   ;;  %p1935_p10 = scmp.ne.s32.totalorder %s1928_s29, 0 }
 0x55b   : > { %p1936_p13 = scmp.ge.s32.totalorder %s1448_s14, 2  ;;  %s720_s20 = scalar_lea.sflag [#allocation4], %s719_s22 }
 0x55d   : > { %p1001_p2 = pnand %p1936_p13, %p1935_p10 }
 0x55f   : > { %1423 = dma.done.wait (!%p1001_p2), %s720_s20, 128  }
 0x560   : > { %1425 = vsyncadd (!%p1001_p2), %s720_s20, 4294967168  ;;  %s29_s14 = sadd.s32 1, %s1448_s14   ;;  %s1937_s30 = smov %s1432_s10 }
 0x561   : > { %p26_p8 = scmp.ge.s32.totalorder %s29_s14, 4   ;;  %s1938_s10 = smov %s1436_s11 }
 0x562   : > { %s1939_s11 = smov %s1755_s15  ;;  %s1940_s12 = smov %s1444_s13 }
 0x563   : > { %s1941_s13 = smov %s1943_s28  ;;  %28 = sbr.rel (!%p26_p8) target bundleno = 14 (0xe), region = 133 }
 0x56a   :  { %725 = vsyncpa [#allocation3], 1 }
 0x56b   :  { %727 = vsyncpa [#allocation3 + $0x1], 1 }
 0x56c   :  { %728 = vsyncpa [#allocation6], 1 }
 0x56d   :  { %729 = vsyncpa [#allocation9], 1 }
 0x56e   :  { %730 = vsyncpa [#allocation12], 1 }
 0x56f   :  { %731 = vsyncpa [#allocation15], 1 }
 0x570   :  { %732 = vsyncpa [#allocation4], 1 }
 0x571   :  { %734 = vsyncpa [#allocation4 + $0x1], 1 }

// kernel: _lambda_.8
= control target key start
LH: loop header
LB: loop body
LE: loop exit
PB: predicated region body
PF: predicated region fallthrough
CT: control target
= control target key end

     0   :  { %s2345_s0 = inlined_call_operand.hbm [shape: f32[2,8,32], index: 0, kind: input, shape index: {}]   ;;  %s2346_s1 = inlined_call_operand.hbm [shape: f32[1,32], index: 1, kind: input, shape index: {}]   ;;  %s2347_s2 = inlined_call_operand.hbm [shape: f32[1,32], index: 2, kind: input, shape index: {}, may-alias: {2,8}]   ;;  %s2348_s3 = inlined_call_operand.hbm [shape: bf16[32,64], index: 3, kind: input, shape index: {}]   ;;  %s2349_s4 = inlined_call_operand.hbm [shape: f32[1,64], index: 4, kind: input, shape index: {}]   ;;  %s2350_s5 = inlined_call_operand.hbm [shape: f32[31,32], index: 5, kind: input, shape index: {}]   ;;  %s2351_s6 = inlined_call_operand.hbm [shape: f32[1,32], index: 6, kind: input, shape index: {}]   ;;  %s2352_s7 = inlined_call_operand.hbm [shape: f32[1,32], index: 7, kind: input, shape index: {}]   ;;  %s2353_s8 = inlined_call_operand.hbm [shape: f32[1,32], index: 8, kind: input, shape index: {}, may-alias: {2,8}]   ;;  %s2354_s9 = inlined_call_operand.hbm [shape: bf16[32,32], index: 9, kind: input, shape index: {}]   ;;  %s2355_s10 = inlined_call_operand.hbm [shape: f32[1,32], index: 10, kind: input, shape index: {}]   ;;  %s2356_s11 = inlined_call_operand.hbm [shape: f32[2,8,32], index: 11, kind: output, shape index: {}]  }
   0x1   :  { %2365 = sst [smem:[#allocation30_spill]] %s2345_s0 }
   0x2   :  { %2366 = sst [smem:[#allocation31_spill]] %s2346_s1 }
   0x3   :  { %2367 = sst [smem:[#allocation32_spill]] %s2348_s3 }
   0x4   :  { %2368 = sst [smem:[#allocation33_spill]] %s2356_s11 }
   0x5   :  { %16 = vsyncpa [#allocation4], 0 }
   0x6   :  { %18 = vsyncpa [#allocation4 + $0x1], 0 }
   0x7   :  { %19 = vsyncpa [#allocation7], 0 }
   0x8   :  { %20 = vsyncpa [#allocation10], 0 }
   0x9   :  { %21 = vsyncpa [#allocation13], 0 }
   0xa   :  { %22 = vsyncpa [#allocation16], 0 }
   0xb   :  { %23 = vsyncpa [#allocation19], 0 }
   0xc   :  { %24 = vsyncpa [#allocation5], 0 }
   0xd   :  { %26 = vsyncpa [#allocation5 + $0x1], 0  ;;  %s1921_s17 = smov 0   ;;  %s1923_s18 = smov 0  }
   0xe   :  { %s1925_s19 = smov 0   ;;  %s1927_s20 = smov 0  }
   0xf LB: > { %s1842_s21 = smov [#allocation6]   ;;  %s1942_s23 = sadd.s32 4294967295, %s1840_s20   ;;  %s1840_s20 = sphi %s1927_s20, %s2403_s20   ;;  %s1836_s19 = sphi %s1925_s19, %s2402_s19   ;;  %s1832_s18 = sphi %s1923_s18, %s2401_s18   ;;  %s1828_s17 = sphi %s1921_s17, %s2400_s17  }
  0x10   : > { %s312_s22 = sshll.u32 %s1842_s21, 4  ;;  %p1177_p0 = scmp.ge.s32.totalorder %s1840_s20, 1  ;;  %s1947_s22 = int_to_ptr.vmem [resolvable:$true] %s312_s22 }
  0x11   : > { %p2362_p1 = scmp.eq.s32.totalorder %s1942_s23, 0  ;;  %p299_p2 = scmp.lt.s32.totalorder %s1840_s20, 3 }
  0x12   : > { %s1843_s25 = smov [#allocation9]   ;;  %s1844_s28 = smov [#allocation12]  }
  0x13   : > { %p1949_p3 = pnand %p1177_p0, %p299_p2  ;;  %s333_s26 = sshll.u32 %s1843_s25, 4  ;;  %s1956_s26 = int_to_ptr.vmem [resolvable:$true] %s333_s26 }
  0x14   : > { %s357_s29 = sshll.u32 %s1844_s28, 4  ;;  %s2372_s1 = sld [smem:[#allocation31_spill]]  ;;  %s1964_s29 = int_to_ptr.vmem [resolvable:$true] %s357_s29 }
  0x15   : > { %s2369_s24 = scalar_select %p1949_p3, 1, 0 }
  0x16   : > { %p1320_p5 = pneg %p1949_p3 }
  0x17   : > { %2370 = sst [smem:[#allocation29_spill]] %s2369_s24 }
  0x18   : > { %p1960_p6 = pnand %p1320_p5, %p2362_p1 }
  0x1a   : > { %s1444_s13 = scalar_lea.hbm %s2372_s1, 16  ;;  %p1974_p8 = pneg %p1960_p6 }
  0x1b   : > { %p1445_p7 = scmp.ne.s32.totalorder %s2372_s1, %s1444_s13  ;;  %p1451_p11 = scmp.lt.u32.totalorder %s1444_s13, %s2372_s1 }
  0x1d   : > { %p1447_p9 = pnand %p1974_p8, %p1445_p7 }
  0x1f   : > { %p1448_p10 = pneg %p1447_p9 }
  0x21   : > { %p1453_p12 = pnand %p1451_p11, %p1448_p10 }
  0x23   : > { %1456 = shalt.err (!%p1453_p12)
}
  0x24   : > { %s1457_s28 = scalar_lea.vmem %s1947_s22, 16  ;;  %s1464_s30 = scalar_lea.vmem %s1947_s22, 32 }
  0x25   : > { %p1458_p13 = scmp.ne.s32.totalorder %s1947_s22, %s1457_s28  ;;  %p1465_p5 = scmp.lt.s32.totalorder %s1947_s22, %s1947_s22 }
  0x26   : > { %p1466_p7 = scmp.lt.s32.totalorder %s1464_s30, %s1457_s28 }
  0x27   : > { %p1460_p0 = pnand %p1458_p13, %p1974_p8 }
  0x28   : > { %p1467_p9 = por %p1466_p7, %p1465_p5 }
  0x29   : > { %p1461_p2 = pneg %p1460_p0 }
  0x2b   : > { %p1468_p4 = pnand %p1467_p9, %p1461_p2 }
  0x2d   : > { %1471 = shalt.err (!%p1468_p4)
}
  0x2e   : > { %1323 = dma.hbm_to_vmem [thread:$0]  (!%p1960_p6), %s2372_s1, 16, %s1947_s22, [#allocation7]  }
  0x2f   : > { %s2374_s3 = sld [smem:[#allocation32_spill]] }
  0x35   : > { %s1472_s21 = scalar_lea.hbm %s2374_s3, 256 }
  0x36   : > { %p1473_p10 = scmp.ne.s32.totalorder %s2374_s3, %s1472_s21  ;;  %p1479_p4 = scmp.lt.u32.totalorder %s1472_s21, %s2374_s3 }
  0x38   : > { %p1475_p11 = pnand %p1473_p10, %p1974_p8 }
  0x3a   : > { %p1476_p12 = pneg %p1475_p11 }
  0x3c   : > { %p1481_p13 = pnand %p1479_p4, %p1476_p12 }
  0x3e   : > { %1484 = shalt.err (!%p1481_p13)
}
  0x3f   : > { %s1485_s22 = scalar_lea.vmem %s1956_s26, 256  ;;  %p1493_p7 = scmp.lt.s32.totalorder %s1956_s26, %s1956_s26 }
  0x40   : > { %p1486_p0 = scmp.ne.s32.totalorder %s1956_s26, %s1485_s22  ;;  %p1494_p9 = scmp.lt.s32.totalorder %s1485_s22, %s1485_s22 }
  0x42   : > { %p1488_p2 = pnand %p1486_p0, %p1974_p8  ;;  %p1495_p10 = por %p1494_p9, %p1493_p7 }
  0x44   : > { %p1489_p5 = pneg %p1488_p2 }
  0x46   : > { %p1496_p11 = pnand %p1495_p10, %p1489_p5 }
  0x48   : > { %1499 = shalt.err (!%p1496_p11)
}
  0x49   : > { %s2358_s11 = smov 64   ;;  %s2359_s12 = smov 4  }
  0x4a   : > { %1329 = dma.hbm_to_vmem [thread:$0]  (!%p1960_p6), %s2374_s3, 256, %s1956_s26, [#allocation10], %s2358_s11, %s2358_s11, %s2359_s12  }
  0x4b   : > { %s1500_s25 = scalar_lea.hbm %s2350_s5, 512 }
  0x4c   : > { %p1501_p12 = scmp.ne.s32.totalorder %s2350_s5, %s1500_s25  ;;  %p1507_p0 = scmp.lt.u32.totalorder %s1500_s25, %s2350_s5 }
  0x4e   : > { %p1503_p4 = pnand %p1501_p12, %p1974_p8 }
  0x50   : > { %p1504_p13 = pneg %p1503_p4 }
  0x52   : > { %p1509_p2 = pnand %p1507_p0, %p1504_p13 }
  0x54   : > { %1512 = shalt.err (!%p1509_p2)
}
  0x55   : > { %s1513_s26 = scalar_lea.vmem %s1964_s29, 512  ;;  %p1521_p10 = scmp.lt.s32.totalorder %s1964_s29, %s1964_s29 }
  0x56   : > { %p1514_p5 = scmp.ne.s32.totalorder %s1964_s29, %s1513_s26  ;;  %p1522_p11 = scmp.lt.s32.totalorder %s1513_s26, %s1513_s26 }
  0x58   : > { %p1516_p7 = pnand %p1514_p5, %p1974_p8  ;;  %p1523_p12 = por %p1522_p11, %p1521_p10 }
  0x5a   : > { %p1517_p9 = pneg %p1516_p7 }
  0x5c   : > { %p1524_p4 = pnand %p1523_p12, %p1517_p9 }
  0x5e   : > { %1527 = shalt.err (!%p1524_p4)
}
  0x5f   : > { %s1847_s13 = smov 128   ;;  %s1848_s1 = smov 8  }
  0x60   : > { %1335 = dma.hbm_to_vmem [thread:$0]  (!%p1960_p6), %s2350_s5, 512, %s1964_s29, [#allocation13], %s1847_s13, %s1847_s13, %s1848_s1  }
  0x61   : > { %s1849_s21 = smov [#allocation15]   ;;  %s1850_s28 = smov [#allocation18]  }
  0x62   : > { %s382_s25 = sshll.u32 %s1849_s21, 4  ;;  %s403_s30 = sshll.u32 %s1850_s28, 4  ;;  %s383_s25 = int_to_ptr.vmem [resolvable:$true] %s382_s25  ;;  %s404_s30 = int_to_ptr.vmem [resolvable:$true] %s403_s30 }
  0x63   : > { %s1528_s11 = scalar_lea.hbm %s2352_s7, 16 }
  0x64   : > { %p1529_p13 = scmp.ne.s32.totalorder %s2352_s7, %s1528_s11  ;;  %p1535_p5 = scmp.lt.u32.totalorder %s1528_s11, %s2352_s7 }
  0x66   : > { %p1531_p0 = pnand %p1529_p13, %p1974_p8 }
  0x68   : > { %p1532_p2 = pneg %p1531_p0 }
  0x6a   : > { %p1537_p7 = pnand %p1535_p5, %p1532_p2 }
  0x6c   : > { %1540 = shalt.err (!%p1537_p7)
}
  0x6d   : > { %s1541_s29 = scalar_lea.vmem %s383_s25, 16  ;;  %s1548_s13 = scalar_lea.vmem %s383_s25, 32 }
  0x6e   : > { %p1542_p9 = scmp.ne.s32.totalorder %s383_s25, %s1541_s29  ;;  %p1549_p12 = scmp.lt.s32.totalorder %s383_s25, %s383_s25 }
  0x6f   : > { %p1550_p4 = scmp.lt.s32.totalorder %s1548_s13, %s1541_s29 }
  0x70   : > { %p1544_p10 = pnand %p1542_p9, %p1974_p8 }
  0x71   : > { %p1551_p1 = por %p1550_p4, %p1549_p12 }
  0x72   : > { %p1545_p11 = pneg %p1544_p10 }
  0x74   : > { %p1552_p3 = pnand %p1551_p1, %p1545_p11 }
  0x76   : > { %1555 = shalt.err (!%p1552_p3)
}
  0x77   : > { %1341 = dma.hbm_to_vmem [thread:$0]  (!%p1960_p6), %s2352_s7, 16, %s383_s25, [#allocation16]  }
  0x78   : > { %s1556_s11 = scalar_lea.hbm %s2354_s9, 256 }
  0x79   : > { %p1557_p13 = scmp.ne.s32.totalorder %s2354_s9, %s1556_s11  ;;  %p1563_p3 = scmp.lt.u32.totalorder %s1556_s11, %s2354_s9 }
  0x7b   : > { %p1559_p0 = pnand %p1557_p13, %p1974_p8 }
  0x7d   : > { %p1560_p1 = pneg %p1559_p0 }
  0x7f   : > { %p1565_p2 = pnand %p1563_p3, %p1560_p1 }
  0x81   : > { %1568 = shalt.err (!%p1565_p2)
}
  0x82   : > { %s1569_s28 = scalar_lea.vmem %s404_s30, 256  ;;  %p1577_p10 = scmp.lt.s32.totalorder %s404_s30, %s404_s30 }
  0x83   : > { %p1570_p5 = scmp.ne.s32.totalorder %s404_s30, %s1569_s28  ;;  %p1578_p11 = scmp.lt.s32.totalorder %s1569_s28, %s1569_s28 }
  0x85   : > { %p1572_p7 = pnand %p1570_p5, %p1974_p8  ;;  %p1579_p12 = por %p1578_p11, %p1577_p10 }
  0x87   : > { %p1573_p9 = pneg %p1572_p7 }
  0x89   : > { %p1580_p4 = pnand %p1579_p12, %p1573_p9 }
  0x8b   : > { %1583 = shalt.err (!%p1580_p4)
}
  0x8c   : > { %s2375_s25 = smov 4   ;;  %s2376_s22 = smov 64  }
  0x8d   : > { %1347 = dma.hbm_to_vmem [thread:$0]  (!%p1960_p6), %s2354_s9, 256, %s404_s30, [#allocation19], %s2376_s22, %s2376_s22, %s2375_s25  }
  0x8e   : > { %s1851_s13 = smov [#allocation8]   ;;  %s1852_s12 = smov [#allocation11]  }
  0x8f   : > { %s323_s3 = sshll.u32 %s1851_s13, 4  ;;  %s347_s0 = sshll.u32 %s1852_s12, 4  ;;  %s324_s3 = int_to_ptr.vmem [resolvable:$true] %s323_s3  ;;  %s348_s0 = int_to_ptr.vmem [resolvable:$true] %s347_s0 }
  0x90   : > { %s1584_s1 = scalar_lea.hbm %s2347_s2, 16 }
  0x91   : > { %p1585_p13 = scmp.ne.s32.totalorder %s2347_s2, %s1584_s1  ;;  %p1591_p3 = scmp.lt.u32.totalorder %s1584_s1, %s2347_s2 }
  0x93   : > { %p1587_p0 = pnand %p1585_p13, %p1974_p8 }
  0x95   : > { %p1588_p1 = pneg %p1587_p0 }
  0x97   : > { %p1593_p2 = pnand %p1591_p3, %p1588_p1 }
  0x99   : > { %1596 = shalt.err (!%p1593_p2)
}
  0x9a   : > { %s1597_s30 = scalar_lea.vmem %s324_s3, 16  ;;  %s1604_s25 = scalar_lea.vmem %s324_s3, 32 }
  0x9b   : > { %p1598_p5 = scmp.ne.s32.totalorder %s324_s3, %s1597_s30  ;;  %p1605_p10 = scmp.lt.s32.totalorder %s324_s3, %s324_s3 }
  0x9c   : > { %p1606_p11 = scmp.lt.s32.totalorder %s1604_s25, %s1597_s30 }
  0x9d   : > { %p1600_p7 = pnand %p1598_p5, %p1974_p8 }
  0x9e   : > { %p1607_p12 = por %p1606_p11, %p1605_p10 }
  0x9f   : > { %p1601_p9 = pneg %p1600_p7 }
  0xa1   : > { %p1608_p4 = pnand %p1607_p12, %p1601_p9 }
  0xa3   : > { %1611 = shalt.err (!%p1608_p4)
}
  0xa4   : > { %1326 = dma.hbm_to_vmem [thread:$0]  (!%p1960_p6), %s2347_s2, 16, %s324_s3, [#allocation7]  }
  0xa5   : > { %s1612_s12 = scalar_lea.hbm %s2349_s4, 16 }
  0xa6   : > { %p1613_p13 = scmp.ne.s32.totalorder %s2349_s4, %s1612_s12  ;;  %p1619_p3 = scmp.lt.u32.totalorder %s1612_s12, %s2349_s4 }
  0xa8   : > { %p1615_p0 = pnand %p1613_p13, %p1974_p8 }
  0xaa   : > { %p1616_p1 = pneg %p1615_p0 }
  0xac   : > { %p1621_p2 = pnand %p1619_p3, %p1616_p1 }
  0xae   : > { %1624 = shalt.err (!%p1621_p2)
}
  0xaf   : > { %s1625_s15 = scalar_lea.vmem %s348_s0, 16  ;;  %s1632_s3 = scalar_lea.vmem %s348_s0, 32 }
  0xb0   : > { %p1626_p5 = scmp.ne.s32.totalorder %s348_s0, %s1625_s15  ;;  %p1633_p10 = scmp.lt.s32.totalorder %s348_s0, %s348_s0 }
  0xb1   : > { %p1634_p11 = scmp.lt.s32.totalorder %s1632_s3, %s1625_s15 }
  0xb2   : > { %p1628_p7 = pnand %p1626_p5, %p1974_p8 }
  0xb3   : > { %p1635_p12 = por %p1634_p11, %p1633_p10 }
  0xb4   : > { %p1629_p9 = pneg %p1628_p7 }
  0xb6   : > { %p1636_p4 = pnand %p1635_p12, %p1629_p9 }
  0xb8   : > { %1639 = shalt.err (!%p1636_p4)
}
  0xb9   : > { %1332 = dma.hbm_to_vmem [thread:$0]  (!%p1960_p6), %s2349_s4, 16, %s348_s0, [#allocation10]  }
  0xba   : > { %s1853_s30 = smov [#allocation14]   ;;  %s1854_s22 = smov [#allocation17]  }
  0xbb   : > { %s371_s25 = sshll.u32 %s1853_s30, 4  ;;  %s393_s26 = sshll.u32 %s1854_s22, 4  ;;  %s372_s25 = int_to_ptr.vmem [resolvable:$true] %s371_s25  ;;  %s394_s26 = int_to_ptr.vmem [resolvable:$true] %s393_s26 }
  0xbc   : > { %s1640_s12 = scalar_lea.hbm %s2351_s6, 16 }
  0xbd   : > { %p1641_p13 = scmp.ne.s32.totalorder %s2351_s6, %s1640_s12  ;;  %p1647_p3 = scmp.lt.u32.totalorder %s1640_s12, %s2351_s6 }
  0xbf   : > { %p1643_p0 = pnand %p1641_p13, %p1974_p8 }
  0xc1   : > { %p1644_p1 = pneg %p1643_p0 }
  0xc3   : > { %p1649_p2 = pnand %p1647_p3, %p1644_p1 }
  0xc5   : > { %1652 = shalt.err (!%p1649_p2)
}
  0xc6   : > { %s1653_s0 = scalar_lea.vmem %s372_s25, 16  ;;  %s1660_s15 = scalar_lea.vmem %s372_s25, 32 }
  0xc7   : > { %p1654_p5 = scmp.ne.s32.totalorder %s372_s25, %s1653_s0  ;;  %p1661_p10 = scmp.lt.s32.totalorder %s372_s25, %s372_s25 }
  0xc8   : > { %p1662_p11 = scmp.lt.s32.totalorder %s1660_s15, %s1653_s0 }
  0xc9   : > { %p1656_p7 = pnand %p1654_p5, %p1974_p8 }
  0xca   : > { %p1663_p12 = por %p1662_p11, %p1661_p10 }
  0xcb   : > { %p1657_p9 = pneg %p1656_p7 }
  0xcd   : > { %p1664_p4 = pnand %p1663_p12, %p1657_p9 }
  0xcf   : > { %1667 = shalt.err (!%p1664_p4)
}
  0xd0   : > { %1338 = dma.hbm_to_vmem [thread:$0]  (!%p1960_p6), %s2351_s6, 16, %s372_s25, [#allocation13]  }
  0xd1   : > { %s1668_s22 = scalar_lea.hbm %s2353_s8, 16 }
  0xd2   : > { %p1669_p13 = scmp.ne.s32.totalorder %s2353_s8, %s1668_s22  ;;  %p1675_p3 = scmp.lt.u32.totalorder %s1668_s22, %s2353_s8 }
  0xd4   : > { %p1671_p0 = pnand %p1669_p13, %p1974_p8 }
  0xd6   : > { %p1672_p1 = pneg %p1671_p0 }
  0xd8   : > { %p1677_p2 = pnand %p1675_p3, %p1672_p1 }
  0xda   : > { %1680 = shalt.err (!%p1677_p2)
}
  0xdb   : > { %s1681_s11 = scalar_lea.vmem %s394_s26, 16  ;;  %s1688_s25 = scalar_lea.vmem %s394_s26, 32 }
  0xdc   : > { %p1682_p5 = scmp.ne.s32.totalorder %s394_s26, %s1681_s11  ;;  %p1689_p10 = scmp.lt.s32.totalorder %s394_s26, %s394_s26 }
  0xdd   : > { %p1690_p11 = scmp.lt.s32.totalorder %s1688_s25, %s1681_s11 }
  0xde   : > { %p1684_p7 = pnand %p1682_p5, %p1974_p8 }
  0xdf   : > { %p1691_p12 = por %p1690_p11, %p1689_p10 }
  0xe0   : > { %p1685_p9 = pneg %p1684_p7 }
  0xe2   : > { %p1692_p4 = pnand %p1691_p12, %p1685_p9 }
  0xe4   : > { %1695 = shalt.err (!%p1692_p4)
}
  0xe5   : > { %1344 = dma.hbm_to_vmem [thread:$0]  (!%p1960_p6), %s2353_s8, 16, %s394_s26, [#allocation16]  }
  0xe6   : > { %s1855_s0 = smov [#allocation20]   ;;  %s1696_s28 = scalar_lea.hbm %s2355_s10, 16 }
  0xe7   : > { %s417_s15 = sshll.u32 %s1855_s0, 4  ;;  %p1697_p13 = scmp.ne.s32.totalorder %s2355_s10, %s1696_s28  ;;  %s418_s15 = int_to_ptr.vmem [resolvable:$true] %s417_s15 }
  0xe8   : > { %p1703_p3 = scmp.lt.u32.totalorder %s1696_s28, %s2355_s10 }
  0xe9   : > { %p1699_p0 = pnand %p1697_p13, %p1974_p8 }
  0xeb   : > { %p1700_p1 = pneg %p1699_p0 }
  0xed   : > { %p1705_p2 = pnand %p1703_p3, %p1700_p1 }
  0xef   : > { %1708 = shalt.err (!%p1705_p2)
}
  0xf0   : > { %s1709_s26 = scalar_lea.vmem %s418_s15, 16  ;;  %s1716_s12 = scalar_lea.vmem %s418_s15, 32 }
  0xf1   : > { %p1710_p5 = scmp.ne.s32.totalorder %s418_s15, %s1709_s26  ;;  %p1717_p10 = scmp.lt.s32.totalorder %s418_s15, %s418_s15 }
  0xf2   : > { %p1718_p11 = scmp.lt.s32.totalorder %s1716_s12, %s1709_s26 }
  0xf3   : > { %p1712_p7 = pnand %p1710_p5, %p1974_p8 }
  0xf4   : > { %p1719_p12 = por %p1718_p11, %p1717_p10 }
  0xf5   : > { %p1713_p9 = pneg %p1712_p7 }
  0xf7   : > { %p1720_p4 = pnand %p1719_p12, %p1713_p9 }
  0xf9   : > { %1723 = shalt.err (!%p1720_p4)
}
  0xfa   : > { %1350 = dma.hbm_to_vmem [thread:$0]  (!%p1960_p6), %s2355_s10, 16, %s418_s15, [#allocation19]  }
  0xfb   : > { %s1176_s16 = sadd.s32 4294967294, %s1840_s20   ;;  %s2176_s27 = sadd.s32 1, %s1840_s20  }
  0xfc   : > { %s36_s25 = ssub.s32 %s1840_s20, %s2176_s27  ;;  %s39_s1 = sadd.s32 1, %s1836_s19 }
  0xfd   : > { %p37_p8 = scmp.eq.s32.totalorder %s36_s25, 0  ;;  %p46_p13 = scmp.ne.s32.totalorder %s1836_s19, %s1832_s18 }
  0xfe   : > { %p47_p0 = scmp.eq.s32.totalorder %s1840_s20, 0  ;;  %p52_p1 = scmp.ne.s32.totalorder %s1832_s18, %s1828_s17 }
  0xff   : > { %s2187_s14 = scalar_select %p37_p8, %s1836_s19, %s39_s1  }
 0x100   : > { %p2189_p3 = por %p47_p0, %p46_p13  ;;  %p2378_p2 = scmp.eq.s32.totalorder %s1942_s23, 0 }
 0x101   : > { %p286_p5 = scmp.eq.s32.totalorder %s1942_s23, 1  ;;  %p292_p7 = scmp.eq.s32.totalorder %s1176_s16, 1 }
 0x102   : > { %p2195_p6 = por %p2378_p2, %p52_p1  ;;  %p1369_p9 = scmp.lt.s32.totalorder %s1840_s20, 2 }
 0x103   : > { %s428_s3 = sand.u32 1, %s1836_s19   ;;  %p2202_p10 = por %p286_p5, %p46_p13 }
 0x104   : > { %p2206_p11 = por %p292_p7, %p52_p1  ;;  %s1189_s30 = sshll.u32 %s428_s3, 3 }
 0x105   : > { %s2380_s21 = scalar_select %p2202_p10, 1, 0 }
 0x106   : > { %s2381_s28 = scalar_select %p2206_p11, 1, 0 }
 0x107   : > { %s1190_s22 = sshll.u32 %s1840_s20, 7  ;;  %s2382_s26 = sld [smem:[#allocation30_spill]] }
 0x108   : > { %s432_s24 = scalar_lea.vmem [#allocation3], %s1189_s30  ;;  %p2220_p12 = pnand %p1369_p9, %p2189_p3 }
 0x109   : > { %s439_s11 = sshll.u32 %s432_s24, 4  ;;  %s429_s25 = scalar_lea.sflag [#allocation4], %s428_s3  ;;  %s2216_s11 = int_to_ptr.vmem [resolvable:$true] %s439_s11 }
 0x10a   : > { %p1726_p8 = pneg %p2220_p12 }
 0x10d   : > { %s2214_s12 = scalar_lea.hbm %s2382_s26, %s1190_s22  ;;  %s1729_s29 = scalar_lea.hbm %s2382_s26, 256 }
 0x10e   : > { %s1724_s1 = scalar_lea.hbm %s2214_s12, 128  ;;  %p1730_p1 = scmp.lt.u32.totalorder %s2214_s12, %s2382_s26 }
 0x10f   : > { %p1725_p4 = scmp.ne.s32.totalorder %s2214_s12, %s1724_s1  ;;  %p1731_p3 = scmp.lt.u32.totalorder %s1729_s29, %s1724_s1 }
 0x110   : > { %p1733_p5 = scmp.lt.u32.totalorder %s1724_s1, %s2214_s12 }
 0x111   : > { %p1727_p13 = pnand %p1726_p8, %p1725_p4  ;;  %p1732_p2 = por %p1731_p3, %p1730_p1 }
 0x113   : > { %p1728_p0 = pneg %p1727_p13  ;;  %p1734_p7 = por %p1733_p5, %p1732_p2 }
 0x115   : > { %p1735_p9 = pnand %p1734_p7, %p1728_p0 }
 0x117   : > { %1738 = shalt.err (!%p1735_p9)
}
 0x118   : > { %s1739_s3 = scalar_lea.vmem %s2216_s11, 128  ;;  %s1856_s24 = smov [#allocation3]  }
 0x119   : > { %p1740_p4 = scmp.ne.s32.totalorder %s2216_s11, %s1739_s3  ;;  %s1744_s30 = sshll.u32 %s1856_s24, 4  ;;  %s1745_s30 = int_to_ptr.vmem [resolvable:$false] %s1744_s30 }
 0x11a   : > { %s1746_s22 = scalar_lea.vmem %s1745_s30, 256  ;;  %p1747_p10 = scmp.lt.s32.totalorder %s2216_s11, %s1745_s30 }
 0x11b   : > { %p1742_p13 = pnand %p1740_p4, %p1726_p8  ;;  %p1748_p1 = scmp.lt.s32.totalorder %s1746_s22, %s1739_s3 }
 0x11d   : > { %p1743_p11 = pneg %p1742_p13  ;;  %p1749_p3 = por %p1748_p1, %p1747_p10 }
 0x11f   : > { %p1750_p2 = pnand %p1749_p3, %p1743_p11 }
 0x121   : > { %1753 = shalt.err (!%p1750_p2)
}
 0x122   : > { %1354 = dma.hbm_to_vmem [thread:$0]  (!%p2220_p12), %s2214_s12, 128, %s2216_s11, %s429_s25  }
 0x123   : > { %s2384_s1 = sld [smem:[#allocation29_spill]] }
 0x129   : > { %p2385_p0 = scmp.ne.s32.totalorder %s2384_s1, 0 }
 0x12a   : > { %s2252_s29 = sand.u32 (!%p2385_p0), 1, %s1832_s18  }
 0x12b   : > { %448 = sbr.rel (%p2385_p0) target bundleno = 1316 (0x524), region = 64  ;;  %s1192_s0 = sshll.u32 (!%p2385_p0), %s2252_s29, 3 }
 0x12c   : > { %s451_s13 = scalar_lea.sflag (!%p2385_p0), [#allocation4], %s2252_s29  ;;  %s454_s3 = scalar_lea.vmem (!%p2385_p0), [#allocation3], %s1192_s0 }
 0x132   : > { %1799 = dma.done.wait (%p2195_p6), %s451_s13, 128  }
 0x133   : > { %1801 = vsyncadd (%p2195_p6), %s451_s13, 4294967168  ;;  %p2386_p10 = scmp.eq.s32.totalorder %s1942_s23, 0 }
 0x135   : > { %1803 = dma.done.wait (%p2386_p10), [#allocation7], 32   ;;  %p2387_p11 = pmov %p2386_p10 }
 0x136   : > { %p2388_p12 = pmov %p2386_p10 }
 0x137   : > { %1805 = vsyncadd (%p2387_p11), [#allocation7], 4294967264 }
 0x138   : > { %1807 = dma.done.wait (%p2388_p12), [#allocation10], 272   ;;  %p2389_p8 = pmov %p2386_p10 }
 0x13a   : > { %1809 = vsyncadd (%p2389_p8), [#allocation10], 4294967024  ;;  %p2390_p5 = pmov %p2389_p8 }
 0x13c   : > { %1811 = dma.done.wait (%p2390_p5), [#allocation13], 528   ;;  %p2391_p7 = pmov %p2390_p5 }
 0x13d   : > { %p2392_p6 = pmov %p2390_p5 }
 0x13e   : > { %1813 = vsyncadd (%p2391_p7), [#allocation13], 4294966768 }
 0x13f   : > { %1815 = dma.done.wait (%p2392_p6), [#allocation16], 32   ;;  %p2393_p9 = pmov %p2390_p5 }
 0x140   : > { %p2394_p4 = pmov %p2390_p5 }
 0x141   : > { %1817 = vsyncadd (%p2393_p9), [#allocation16], 4294967264 }
 0x142   : > { %1819 = dma.done.wait (%p2394_p4), [#allocation19], 272   ;;  %p2395_p13 = pmov %p2394_p4 }
 0x143   : > { %vm542_vm0 = vcmask 261120   ;;  %v2282_v0 = vld [vmem:[%s454_s3] sm:$0xff]  ;;  %v1430_v7 = vld [vmem:[#allocation9] sm:$0xff]   ;;  %v1857_v8 = vmov 0.0   ;;  %vm645_vm1 = vcmask 260096   ;;  %vm1858_vm2 = vmmov 0  }
 0x144   : > { %1821 = vsyncadd (%p2395_p13), [#allocation19], 4294967024  ;;  %v543_v1 = vsel %vm542_vm0, %v2282_v0, 0.0  ;;  %1260 = vmatprep.subr.bf16.mxu0 %v1857_v8  ;;  %644 = vst.msk [vmem:[#allocation2 + $0x1] sm:$0xff] %vm542_vm0, %v1857_v8  ;;  %1268 = vmatprep.subr.bf16.mxu1 %v1857_v8  ;;  %v1431_v9 = vld [vmem:[#allocation9 + $0x8] sm:$0xff]   ;;  %s1859_s15 = smov 96  }
 0x145   : > { %544 = vadd.xlane.f32.xlu0 %v543_v1  ;;  %647 = vst.msk [vmem:[#allocation2 + $0x18] sm:$0xff] %vm542_vm0, %v1857_v8  ;;  %1261 = vmatpush3.bf16.msra.mxu0 %v1430_v7  ;;  %v1204_v14 = vld [vmem:[#allocation6] ss:$0 sm:$0xff]  ;;  %v1205_v16 = vld [vmem:[#allocation8] ss:$0 sm:$0xff]  ;;  %v1433_v31 = vld [vmem:[#allocation18 + $0x8] sm:$0xff]  }
 0x146   : > { %646 = vst.msk [vmem:[#allocation2 + $0x9] sm:$0x7f] %vm645_vm1, %v1857_v8  ;;  %648 = vst.msk [vmem:[#allocation2 + $0x20] sm:$0x7f] %vm645_vm1, %v1857_v8  ;;  %1264 = vmatprep.mubr.msk.bf16.mxu0 %vm1858_vm2, %v1857_v8  ;;  %1262 = vmatprep.subr.bf16.mxu0 %v1857_v8  ;;  %v1206_v20 = vld [vmem:[#allocation11] ss:$0 sm:$0xff] }
 0x147   : > { %1272 = vmatprep.mubr.msk.bf16.mxu1 %vm1858_vm2, %v1857_v8  ;;  %v1432_v30 = vld [vmem:[#allocation18] sm:$0xff]   ;;  %v1212_v33 = vld [vmem:[#allocation12] ss:$0 sm:$0xff]  ;;  %v1213_v37 = vld [vmem:[#allocation12 + $0x1] ss:$0 sm:$0xff]  ;;  %s1251_s12 = sshll.u32 %s1942_s23, 7 }
 0x148   : > { %1269 = vmatpush3.bf16.msra.mxu1 %v1432_v30  ;;  %v1211_v35 = vld [vmem:[#allocation14] ss:$0 sm:$0xff]  ;;  %v1214_v41 = vld [vmem:[#allocation12 + $0x2] ss:$0 sm:$0xff]  ;;  %v1215_v45 = vld [vmem:[#allocation12 + $0x3] ss:$0 sm:$0xff] }
 0x149   : > { %1263 = vmatpush3.bf16.msra.mxu0 %v1431_v9  ;;  %1270 = vmatprep.subr.bf16.mxu1 %v1857_v8  ;;  %v1216_v49 = vld [vmem:[#allocation12 + $0x4] ss:$0 sm:$0xff]  ;;  %v1217_v53 = vld [vmem:[#allocation12 + $0x5] ss:$0 sm:$0xff]  ;;  %v1218_v57 = vld [vmem:[#allocation12 + $0x6] ss:$0 sm:$0xff] }
 0x14a   : > { %v1219_v63 = vld [vmem:[#allocation12 + $0x7] ss:$0 sm:$0xff]  ;;  %v1222_v9 = vld [vmem:[#allocation12 + $0xa] ss:$0 sm:$0xff]  ;;  %s532_s11 = scalar_lea.vmem [#allocation21], %s1192_s0  ;;  %s2396_s30 = sld [smem:[#allocation33_spill]] }
 0x14b   : > { %v657_v32 = vld [vmem:[#allocation2 + $0x1] sm:$0xff]  ;;  %s1011_s16 = sshll.u32 %s532_s11, 4  ;;  %s998_s23 = scalar_lea.sflag [#allocation5], %s2252_s29  ;;  %s2302_s16 = int_to_ptr.vmem [resolvable:$true] %s1011_s16 }
 0x14c   : > { %1271 = vmatpush3.bf16.msra.mxu1 %v1433_v31  ;;  %v663_v34 = vmul.f32 %v1212_v33, %v657_v32  ;;  %s1754_s1 = scalar_lea.vmem %s2302_s16, 128  ;;  %p2397_p3 = scmp.ne.s32.totalorder %s2380_s21, 0 }
 0x14d   : > { %v665_v36 = vld [vmem:[#allocation2 + $0x2] sm:$0xff]  ;;  %p1755_p1 = scmp.ne.s32.totalorder %s2302_s16, %s1754_s1  ;;  %s1860_s0 = smov [#allocation21]  }
 0x14e   : > { %v664_v38 = vadd.f32 %v1211_v35, %v663_v34  ;;  %v671_v39 = vmul.f32 %v1213_v37, %v665_v36  ;;  %v673_v40 = vld [vmem:[#allocation2 + $0x3] sm:$0xff]  ;;  %v1228_v34 = vld [vmem:[#allocation12 + $0x10] ss:$0 sm:$0xff]  ;;  %s1758_s13 = sshll.u32 %s1860_s0, 4  ;;  %s1759_s13 = int_to_ptr.vmem [resolvable:$false] %s1758_s13 }
 0x14f   : > { %v679_v43 = vmul.f32 %v1214_v41, %v673_v40  ;;  %v681_v44 = vld [vmem:[#allocation2 + $0x4] sm:$0xff]  ;;  %p1756_p2 = pnand %p1755_p1, %p2397_p3  ;;  %s1760_s3 = scalar_lea.vmem %s1759_s13, 256 }
 0x150   : > { %v672_v42 = vadd.f32 %v671_v39, %v664_v38  ;;  %v687_v47 = vmul.f32 %v1215_v45, %v681_v44  ;;  %v689_v48 = vld [vmem:[#allocation2 + $0x5] sm:$0xff]  ;;  %v1229_v38 = vld [vmem:[#allocation12 + $0x11] ss:$0 sm:$0xff]  ;;  %s2300_s22 = scalar_lea.hbm %s2396_s30, %s1251_s12  ;;  %p1761_p10 = scmp.lt.s32.totalorder %s2302_s16, %s1759_s13 }
 0x151   : > { %v695_v51 = vmul.f32 %v1216_v49, %v689_v48  ;;  %v697_v52 = vld [vmem:[#allocation2 + $0x6] sm:$0xff]  ;;  %p1757_p0 = pneg %p1756_p2  ;;  %p1762_p11 = scmp.lt.s32.totalorder %s1760_s3, %s1754_s1 }
 0x152   : > { %v680_v46 = vadd.f32 %v679_v43, %v672_v42  ;;  %v703_v55 = vmul.f32 %v1217_v53, %v697_v52  ;;  %v705_v56 = vld [vmem:[#allocation2 + $0x7] sm:$0xff]  ;;  %v1230_v42 = vld [vmem:[#allocation12 + $0x12] ss:$0 sm:$0xff] }
 0x153   : > { %v711_v60 = vmul.f32 %v1218_v57, %v705_v56  ;;  %v713_v62 = vld [vmem:[#allocation2 + $0x8] sm:$0xff]  ;;  %v1234_v57 = vld [vmem:[#allocation12 + $0x16] ss:$0 sm:$0xff]  ;;  %p1763_p12 = por %p1762_p11, %p1761_p10 }
 0x154   : > { %v688_v50 = vadd.f32 %v687_v47, %v680_v46  ;;  %v1231_v46 = vld [vmem:[#allocation12 + $0x13] ss:$0 sm:$0xff] }
 0x155   : > { %p1764_p8 = pnand %p1763_p12, %p1757_p0 }
 0x156   : > { %v696_v54 = vadd.f32 %v695_v51, %v688_v50  ;;  %v1232_v50 = vld [vmem:[#allocation12 + $0x14] ss:$0 sm:$0xff] }
 0x158   : > { %v704_v59 = vadd.f32 %v703_v55, %v696_v54  ;;  %v1233_v54 = vld [vmem:[#allocation12 + $0x15] ss:$0 sm:$0xff] }
 0x15a   : > { %v712_v1 = vadd.f32 %v711_v60, %v704_v59  ;;  %v841_v59 = vld [vmem:[#allocation2 + $0x18] sm:$0xff]  ;;  %v1235_v60 = vld [vmem:[#allocation12 + $0x17] ss:$0 sm:$0xff] }
 0x1d2   : > { %v545_v2 = vpop.xlane.xlu0 %544 }
 0x1d3   : > { %v547_v3 = vmul.f32 0.03125, %v545_v2  ;;  %v719_v2 = vmul.f32 %v1219_v63, %v713_v62  ;;  %v849_v63 = vld [vmem:[#allocation2 + $0x19] sm:$0xff] }
 0x1d5   : > { %v548_v4 = vsub.f32 %v2282_v0, %v547_v3  ;;  %v1220_v3 = vld [vmem:[#allocation12 + $0x8] ss:$0 sm:$0xff] }
 0x1d7   : > { %v549_v5 = vmul.f32 %v548_v4, %v548_v4 }
 0x1d9   : > { %v550_v6 = vsel %vm542_vm0, %v549_v5, 0.0  ;;  %v1221_v5 = vld [vmem:[#allocation12 + $0x9] ss:$0 sm:$0xff] }
 0x1da   : > { %551 = vadd.xlane.f32.xlu0 %v550_v6 }
 0x267   : > { %v552_v10 = vpop.xlane.xlu0 %551 }
 0x268   : > { %v553_v11 = vmul.f32 0.03125, %v552_v10 }
 0x26a   : > { %v554_v12 = vadd.f32 1e-05, %v553_v11 }
 0x26c   : > { %1434 = vrsqrt.f32 %v554_v12 }
 0x276   : > { %v1435_v13 = vpop.eup %1434 }
 0x277   : > { %v556_v15 = vmul.f32 %v1435_v13, %v548_v4  ;;  %v720_v4 = vadd.f32 %v719_v2, %v712_v1  ;;  %v1223_v13 = vld [vmem:[#allocation12 + $0xb] ss:$0 sm:$0xff]  ;;  %v1236_v1 = vld [vmem:[#allocation12 + $0x18] ss:$0 sm:$0xff] }
 0x279   : > { %v563_v17 = vmul.f32 %v1204_v14, %v556_v15 }
 0x27b   : > { %v570_v18 = vadd.f32 %v1205_v16, %v563_v17  ;;  %v1224_v17 = vld [vmem:[#allocation12 + $0xc] ss:$0 sm:$0xff] }
 0x27d   : > { %v571_v19 = vpack.c.bf16 %v570_v18, %v570_v18 }
 0x27f   : > { %1265 = vmatmul.mubr.msk.bf16.vlgmr.msra.gmra.mrb[0].mxu0 %vm542_vm0, %v571_v19 }
 0x352   : > { %v627_v21 = vpop.f32.mrb[0].mxu0 }
 0x353   : > { %v628_v22 = vadd.f32 %v1206_v20, %v627_v21  ;;  %v1266_v23 = vpop.f32.mrb[1].mxu0  ;;  %v1225_v21 = vld [vmem:[#allocation12 + $0xd] ss:$0 sm:$0xff] }
 0x354   : > { %v630_v24 = vpop.f32.mrb[2].mxu0 }
 0x355   : > { %v1210_v25 = vmul.f32 -1.442695, %v628_v22  ;;  %v1267_v26 = vpop.f32.mrb[3].mxu0 }
 0x357   : > { %1436 = vpow2.f32 %v1210_v25  ;;  %v1226_v25 = vld [vmem:[#allocation12 + $0xe] ss:$0 sm:$0xff] }
 0x361   : > { %v1437_v27 = vpop.eup %1436 }
 0x362   : > { %v636_v28 = vadd.f32 1.0, %v1437_v27 }
 0x364   : > { %1438 = vrcp.f32 %v636_v28 }
 0x36e   : > { %v1439_v29 = vpop.eup %1438 }
 0x36f   : > { %640 = vrot.lane.b32.xlu1 %v1439_v29, %s1859_s15  ;;  %v1227_v29 = vld [vmem:[#allocation12 + $0xf] ss:$0 sm:$0xff] }
 0x3e1   : > { %v641_v58 = vpop.permute.xlu1 %640 }
 0x3e2   : > { %v643_v61 = vmul.f32 %v641_v58, %v628_v22 }
 0x3e4   : > { %649 = vst.msk [vmem:[#allocation2 + $0x10] sm:$0xff] %vm542_vm0, %v643_v61 }
 0x3eb   : > { %v721_v6 = vld [vmem:[#allocation2 + $0x9] sm:$0xff]  ;;  %v785_v33 = vld [vmem:[#allocation2 + $0x11] sm:$0xff] }
 0x3ec   : > { %v729_v7 = vld [vmem:[#allocation2 + $0xa] sm:$0xff]  ;;  %v727_v8 = vmul.f32 %v1220_v3, %v721_v6  ;;  %v793_v37 = vld [vmem:[#allocation2 + $0x12] sm:$0xff]  ;;  %v791_v40 = vmul.f32 %v1228_v34, %v785_v33  ;;  %v1237_v6 = vld [vmem:[#allocation12 + $0x19] ss:$0 sm:$0xff] }
 0x3ed   : > { %v737_v10 = vld [vmem:[#allocation2 + $0xb] sm:$0xff]  ;;  %v735_v12 = vmul.f32 %v1221_v5, %v729_v7  ;;  %v801_v41 = vld [vmem:[#allocation2 + $0x13] sm:$0xff]  ;;  %v799_v44 = vmul.f32 %v1229_v38, %v793_v37 }
 0x3ee   : > { %v728_v11 = vadd.f32 %v727_v8, %v720_v4  ;;  %v745_v14 = vld [vmem:[#allocation2 + $0xc] sm:$0xff]  ;;  %v743_v16 = vmul.f32 %v1222_v9, %v737_v10  ;;  %v809_v45 = vld [vmem:[#allocation2 + $0x14] sm:$0xff]  ;;  %v807_v48 = vmul.f32 %v1230_v42, %v801_v41  ;;  %v847_v4 = vmul.f32 %v1235_v60, %v841_v59  ;;  %v1238_v10 = vld [vmem:[#allocation12 + $0x1a] ss:$0 sm:$0xff] }
 0x3ef   : > { %v753_v18 = vld [vmem:[#allocation2 + $0xd] sm:$0xff]  ;;  %v751_v20 = vmul.f32 %v1223_v13, %v745_v14  ;;  %v817_v49 = vld [vmem:[#allocation2 + $0x15] sm:$0xff]  ;;  %v815_v52 = vmul.f32 %v1231_v46, %v809_v45  ;;  %v855_v8 = vmul.f32 %v1236_v1, %v849_v63  ;;  %v1239_v14 = vld [vmem:[#allocation12 + $0x1b] ss:$0 sm:$0xff] }
 0x3f0   : > { %v736_v15 = vadd.f32 %v735_v12, %v728_v11  ;;  %v761_v22 = vld [vmem:[#allocation2 + $0xe] sm:$0xff]  ;;  %v759_v24 = vmul.f32 %v1224_v17, %v753_v18  ;;  %v825_v53 = vld [vmem:[#allocation2 + $0x16] sm:$0xff]  ;;  %v823_v56 = vmul.f32 %v1232_v50, %v817_v49  ;;  %v1240_v18 = vld [vmem:[#allocation12 + $0x1c] ss:$0 sm:$0xff] }
 0x3f1   : > { %v769_v26 = vld [vmem:[#allocation2 + $0xf] sm:$0xff]  ;;  %v767_v28 = vmul.f32 %v1225_v21, %v761_v22  ;;  %v833_v58 = vld [vmem:[#allocation2 + $0x17] sm:$0xff]  ;;  %v831_v62 = vmul.f32 %v1233_v54, %v825_v53  ;;  %v1241_v22 = vld [vmem:[#allocation12 + $0x1d] ss:$0 sm:$0xff] }
 0x3f2   : > { %v744_v19 = vadd.f32 %v743_v16, %v736_v15  ;;  %v777_v30 = vld [vmem:[#allocation2 + $0x10] sm:$0xff]  ;;  %v775_v32 = vmul.f32 %v1226_v25, %v769_v26  ;;  %v839_v3 = vmul.f32 %v1234_v57, %v833_v58  ;;  %v857_v5 = vld [vmem:[#allocation2 + $0x1a] sm:$0xff]  ;;  %v1242_v26 = vld [vmem:[#allocation12 + $0x1e] ss:$0 sm:$0xff] }
 0x3f3   : > { %v783_v36 = vmul.f32 %v1227_v29, %v777_v30  ;;  %v865_v9 = vld [vmem:[#allocation2 + $0x1b] sm:$0xff]  ;;  %v863_v12 = vmul.f32 %v1237_v6, %v857_v5  ;;  %v1244_v34 = vld [vmem:[#allocation17] ss:$0 sm:$0xff] }
 0x3f4   : > { %v752_v23 = vadd.f32 %v751_v20, %v744_v19  ;;  %v873_v13 = vld [vmem:[#allocation2 + $0x1c] sm:$0xff]  ;;  %v871_v16 = vmul.f32 %v1238_v10, %v865_v9 }
 0x3f5   : > { %v881_v17 = vld [vmem:[#allocation2 + $0x1d] sm:$0xff]  ;;  %v879_v20 = vmul.f32 %v1239_v14, %v873_v13 }
 0x3f6   : > { %v760_v27 = vadd.f32 %v759_v24, %v752_v23  ;;  %v889_v21 = vld [vmem:[#allocation2 + $0x1e] sm:$0xff]  ;;  %v887_v24 = vmul.f32 %v1240_v18, %v881_v17 }
 0x3f7   : > { %v897_v25 = vld [vmem:[#allocation2 + $0x1f] sm:$0xff] }
 0x3f8   : > { %v768_v31 = vadd.f32 %v767_v28, %v760_v27  ;;  %v895_v28 = vmul.f32 %v1241_v22, %v889_v21  ;;  %v903_v30 = vmul.f32 %v1242_v26, %v897_v25 }
 0x3fa   : > { %v776_v35 = vadd.f32 %v775_v32, %v768_v31  ;;  %v1243_v32 = vld [vmem:[#allocation15] ss:$0 sm:$0xff] }
 0x3fc   : > { %v784_v39 = vadd.f32 %v783_v36, %v776_v35 }
 0x3fe   : > { %v792_v43 = vadd.f32 %v791_v40, %v784_v39 }
 0x400   : > { %v800_v47 = vadd.f32 %v799_v44, %v792_v43  ;;  %v1246_v43 = vld [vmem:[#allocation20] ss:$0 sm:$0xff] }
 0x402   : > { %v808_v51 = vadd.f32 %v807_v48, %v800_v47 }
 0x404   : > { %v816_v55 = vadd.f32 %v815_v52, %v808_v51 }
 0x406   : > { %v824_v61 = vadd.f32 %v823_v56, %v816_v55 }
 0x408   : > { %v832_v2 = vadd.f32 %v831_v62, %v824_v61 }
 0x40a   : > { %v840_v7 = vadd.f32 %v839_v3, %v832_v2 }
 0x40c   : > { %v848_v11 = vadd.f32 %v847_v4, %v840_v7 }
 0x40e   : > { %v856_v15 = vadd.f32 %v855_v8, %v848_v11 }
 0x410   : > { %v864_v19 = vadd.f32 %v863_v12, %v856_v15 }
 0x412   : > { %v872_v23 = vadd.f32 %v871_v16, %v864_v19 }
 0x414   : > { %v880_v27 = vadd.f32 %v879_v20, %v872_v23 }
 0x416   : > { %v888_v29 = vadd.f32 %v887_v24, %v880_v27 }
 0x418   : > { %v896_v31 = vadd.f32 %v895_v28, %v888_v29 }
 0x41a   : > { %v904_v33 = vadd.f32 %v903_v30, %v896_v31 }
 0x41c   : > { %v912_v35 = vmul.f32 %v1243_v32, %v904_v33 }
 0x41e   : > { %v920_v36 = vadd.f32 %v1244_v34, %v912_v35 }
 0x420   : > { %v1245_v37 = vmul.f32 -1.442695, %v920_v36 }
 0x422   : > { %1440 = vpow2.f32 %v1245_v37 }
 0x42c   : > { %v1441_v38 = vpop.eup %1440 }
 0x42d   : > { %v924_v39 = vadd.f32 1.0, %v1441_v38 }
 0x42f   : > { %1442 = vrcp.f32 %v924_v39 }
 0x439   : > { %v1443_v40 = vpop.eup %1442 }
 0x43a   : > { %v927_v41 = vmul.f32 %v1443_v40, %v920_v36 }
 0x43c   : > { %v928_v42 = vpack.c.bf16 %v927_v41, %v927_v41 }
 0x43e   : > { %1273 = vmatmul.mubr.msk.bf16.vlgmr.msra.gmra.mrb[0].mxu1 %vm542_vm0, %v928_v42 }
 0x511   : > { %v989_v44 = vpop.f32.mrb[0].mxu1 }
 0x512   : > { %v990_v45 = vadd.f32 %v1246_v43, %v989_v44  ;;  %v1274_v46 = vpop.f32.mrb[1].mxu1 }
 0x513   : > { %v992_v47 = vpop.f32.mrb[2].mxu1 }
 0x514   : > { %v995_v48 = vadd.f32 %v990_v45, %v2282_v0  ;;  %v1275_v49 = vpop.f32.mrb[3].mxu1 }
 0x516   : > { %996 = vst.msk [vmem:[%s532_s11] sm:$0xff] %vm542_vm0, %v995_v48 }
 0x517   : > { %1767 = shalt.err (!%p1764_p8)
}
 0x518   : > { %s1768_s29 = scalar_lea.hbm %s2300_s22, 128  ;;  %s1772_s11 = scalar_lea.hbm %s2396_s30, 256 }
 0x519   : > { %p1769_p5 = scmp.ne.s32.totalorder %s2300_s22, %s1768_s29  ;;  %p1773_p9 = scmp.lt.u32.totalorder %s2300_s22, %s2396_s30 }
 0x51a   : > { %p1774_p4 = scmp.lt.u32.totalorder %s1772_s11, %s1768_s29  ;;  %p1776_p1 = scmp.lt.u32.totalorder %s1768_s29, %s2300_s22 }
 0x51b   : > { %p1770_p7 = pnand %p1769_p5, %p2397_p3 }
 0x51c   : > { %p1775_p13 = por %p1774_p4, %p1773_p9 }
 0x51d   : > { %p1771_p6 = pneg %p1770_p7 }
 0x51e   : > { %p1777_p2 = por %p1776_p1, %p1775_p13 }
 0x520   : > { %p1778_p0 = pnand %p1777_p2, %p1771_p6 }
 0x522   : > { %1781 = shalt.err (!%p1778_p0)
}
 0x523   : > { %1318 = dma.vmem_to_hbm [thread:$0]  (%p2397_p3), %s2302_s16, 128, %s2300_s22, %s998_s23  }
 0x524 PF: > { %s1023_s1 = sand.u32 1, %s1828_s17   ;;  %p2398_p10 = scmp.ne.s32.totalorder %s2381_s28, 0 }
 0x525   : > { %p2399_p11 = scmp.ge.s32.totalorder %s1840_s20, 2  ;;  %s1024_s0 = scalar_lea.sflag [#allocation5], %s1023_s1 }
 0x527   : > { %p1356_p12 = pnand %p2399_p11, %p2398_p10 }
 0x529   : > { %1823 = dma.done.wait (!%p1356_p12), %s1024_s0, 128  }
 0x52a   : > { %1825 = vsyncadd (!%p1356_p12), %s1024_s0, 4294967168  ;;  %p29_p8 = scmp.ge.s32.totalorder %s2176_s27, 4   ;;  %s2400_s17 = smov %s1832_s18 }
 0x52b   : > { %s2401_s18 = smov %s1836_s19  ;;  %s2402_s19 = smov %s2187_s14 }
 0x52c   : > { %s2403_s20 = smov %s2176_s27  ;;  %31 = sbr.rel (!%p29_p8) target bundleno = 15 (0xf), region = 149 }
 0x533   :  { %1029 = vsyncpa [#allocation4], 1 }
 0x534   :  { %1031 = vsyncpa [#allocation4 + $0x1], 1 }
 0x535   :  { %1032 = vsyncpa [#allocation7], 1 }
 0x536   :  { %1033 = vsyncpa [#allocation10], 1 }
 0x537   :  { %1034 = vsyncpa [#allocation13], 1 }
 0x538   :  { %1035 = vsyncpa [#allocation16], 1 }
 0x539   :  { %1036 = vsyncpa [#allocation19], 1 }
 0x53a   :  { %1037 = vsyncpa [#allocation5], 1 }
 0x53b   :  { %1039 = vsyncpa [#allocation5 + $0x1], 1 }

// kernel: _lambda_.7
= control target key start
LH: loop header
LB: loop body
LE: loop exit
PB: predicated region body
PF: predicated region fallthrough
CT: control target
= control target key end

     0   :  { %s3550_s0 = inlined_call_operand.hbm [shape: bf16[2,8,32], index: 0, kind: input, shape index: {}]   ;;  %s3551_s1 = inlined_call_operand.hbm [shape: bf16[2,8,32], index: 1, kind: input, shape index: {}]   ;;  %s3552_s2 = inlined_call_operand.hbm [shape: bf16[2,8,32], index: 2, kind: input, shape index: {}]   ;;  %s3553_s3 = inlined_call_operand.hbm [shape: bf16[4,128,8], index: 3, kind: input, shape index: {}]   ;;  %s3554_s4 = inlined_call_operand.hbm [shape: f32[1,32], index: 4, kind: input, shape index: {}]   ;;  %s3555_s5 = inlined_call_operand.hbm [shape: f32[1,32], index: 5, kind: input, shape index: {}]   ;;  %s3556_s6 = inlined_call_operand.hbm [shape: f32[2,8,32], index: 6, kind: input, shape index: {}]   ;;  %s3557_s7 = inlined_call_operand.hbm [shape: bf16[32,32], index: 7, kind: input, shape index: {}]   ;;  %s3558_s8 = inlined_call_operand.hbm [shape: f32[1,32], index: 8, kind: input, shape index: {}]   ;;  %s3559_s9 = inlined_call_operand.hbm [shape: f32[2,8,32], index: 9, kind: output, shape index: {0}]   ;;  %s3560_s10 = inlined_call_operand.hbm [shape: bf16[2,4,8,8], index: 10, kind: output, shape index: {1}]  }
   0x1   :  { %3583 = sst [smem:[#allocation35_spill]] %s3550_s0 }
   0x2   :  { %3584 = sst [smem:[#allocation36_spill]] %s3551_s1 }
   0x3   :  { %3585 = sst [smem:[#allocation37_spill]] %s3553_s3 }
   0x4   :  { %3586 = sst [smem:[#allocation38_spill]] %s3554_s4 }
   0x5   :  { %3587 = sst [smem:[#allocation39_spill]] %s3557_s7 }
   0x6   :  { %3588 = sst [smem:[#allocation40_spill]] %s3559_s9 }
   0x7   :  { %3589 = sst [smem:[#allocation41_spill]] %s3560_s10 }
   0x8   :  { %16 = vsyncpa [#allocation3], 0 }
   0x9   :  { %18 = vsyncpa [#allocation3 + $0x1], 0 }
   0xa   :  { %19 = vsyncpa [#allocation6], 0 }
   0xb   :  { %21 = vsyncpa [#allocation6 + $0x1], 0 }
   0xc   :  { %22 = vsyncpa [#allocation9], 0 }
   0xd   :  { %23 = vsyncpa [#allocation12], 0 }
   0xe   :  { %24 = vsyncpa [#allocation4], 0 }
   0xf   :  { %26 = vsyncpa [#allocation4 + $0x1], 0 }
  0x10   :  { %27 = vsyncpa [#allocation18], 0 }
  0x11   :  { %29 = vsyncpa [#allocation18 + $0x1], 0  ;;  %s2883_s13 = smov 0   ;;  %s2885_s14 = smov 0  }
  0x12   :  { %s2887_s15 = smov 0   ;;  %s2889_s16 = smov 0  }
  0x13   :  { %s2891_s17 = smov 0   ;;  %s2893_s18 = smov 0  }
  0x14 LB: > { %3590 = sst [smem:[#allocation28_spill]] %s2782_s13  ;;  %s2914_s19 = sadd.s32 4294967295, %s2802_s18   ;;  %s2802_s18 = sphi %s2893_s18, %s35_s18   ;;  %s2798_s17 = sphi %s2891_s17, %s3647_s17   ;;  %s2794_s16 = sphi %s2889_s16, %s3646_s16   ;;  %s2790_s15 = sphi %s2887_s15, %s3645_s15   ;;  %s2786_s14 = sphi %s2885_s14, %s3644_s14   ;;  %s2782_s13 = sphi %s2883_s13, %s3643_s13  }
  0x15   : > { %3591 = sst [smem:[#allocation29_spill]] %s2794_s16  ;;  %p1926_p0 = scmp.ge.s32.totalorder %s2802_s18, 1 }
  0x16   : > { %3592 = sst [smem:[#allocation30_spill]] %s2802_s18  ;;  %p3565_p1 = scmp.eq.s32.totalorder %s2914_s19, 0 }
  0x17   : > { %p321_p2 = scmp.lt.s32.totalorder %s2802_s18, 3  ;;  %s2804_s21 = smov [#allocation8]  }
  0x18   : > { %s333_s22 = sshll.u32 %s2804_s21, 4  ;;  %s2805_s24 = smov [#allocation14]   ;;  %s2923_s22 = int_to_ptr.vmem [resolvable:$true] %s333_s22 }
  0x19   : > { %p2919_p3 = pnand %p1926_p0, %p321_p2  ;;  %s368_s25 = sshll.u32 %s2805_s24, 4  ;;  %s2934_s25 = int_to_ptr.vmem [resolvable:$true] %s368_s25 }
  0x1a   : > { %s2806_s26 = smov [#allocation10]   ;;  %s3596_s3 = sld [smem:[#allocation37_spill]] }
  0x1b   : > { %s3593_s20 = scalar_select %p2919_p3, 1, 0 }
  0x1c   : > { %p2239_p4 = pneg %p2919_p3  ;;  %s2936_s27 = sshll.u32 %s2806_s26, 4  ;;  %s348_s27 = int_to_ptr.vmem [resolvable:$true] %s2936_s27 }
  0x1d   : > { %3594 = sst [smem:[#allocation31_spill]] %s3593_s20 }
  0x1e   : > { %p2930_p6 = pnand %p2239_p4, %p3565_p1 }
  0x20   : > { %s3595_s23 = scalar_select %p2930_p6, 1, 0 }
  0x21   : > { %s2404_s30 = scalar_lea.hbm %s3596_s3, 4096  ;;  %p2946_p8 = pneg %p2930_p6 }
  0x22   : > { %p2405_p7 = scmp.ne.s32.totalorder %s3596_s3, %s2404_s30  ;;  %p2411_p11 = scmp.lt.u32.totalorder %s2404_s30, %s3596_s3 }
  0x23   : > { %s3597_s21 = scalar_select %p2946_p8, 1, 0 }
  0x24   : > { %p2407_p9 = pnand %p2946_p8, %p2405_p7 }
  0x26   : > { %p2408_p10 = pneg %p2407_p9 }
  0x28   : > { %p2413_p12 = pnand %p2411_p11, %p2408_p10 }
  0x2a   : > { %2416 = shalt.err (!%p2413_p12)
}
  0x2b   : > { %s2417_s28 = scalar_lea.vmem %s2923_s22, 4096  ;;  %p2425_p4 = scmp.lt.s32.totalorder %s2923_s22, %s2923_s22 }
  0x2c   : > { %p2418_p13 = scmp.ne.s32.totalorder %s2923_s22, %s2417_s28  ;;  %p2426_p5 = scmp.lt.s32.totalorder %s2417_s28, %s2417_s28 }
  0x2e   : > { %p2420_p0 = pnand %p2418_p13, %p2946_p8  ;;  %p2427_p7 = por %p2426_p5, %p2425_p4 }
  0x30   : > { %p2421_p2 = pneg %p2420_p0 }
  0x32   : > { %p2428_p9 = pnand %p2427_p7, %p2421_p2 }
  0x34   : > { %2431 = shalt.err (!%p2428_p9)
}
  0x35   : > { %s2807_s29 = smov 64   ;;  %s2808_s30 = smov 4  }
  0x36   : > { %2242 = dma.hbm_to_vmem [thread:$0]  (!%p2930_p6), %s3596_s3, 4096, %s2923_s22, [#allocation9], %s2807_s29, %s2807_s29, %s2808_s30  }
  0x37   : > { %s3598_s7 = sld [smem:[#allocation39_spill]] }
  0x3d   : > { %s2432_s9 = scalar_lea.hbm %s3598_s7, 256 }
  0x3e   : > { %p2433_p5 = scmp.ne.s32.totalorder %s3598_s7, %s2432_s9  ;;  %p2439_p12 = scmp.lt.u32.totalorder %s2432_s9, %s3598_s7 }
  0x40   : > { %p2435_p10 = pnand %p2433_p5, %p2946_p8 }
  0x42   : > { %p2436_p11 = pneg %p2435_p10 }
  0x44   : > { %p2441_p13 = pnand %p2439_p12, %p2436_p11 }
  0x46   : > { %2444 = shalt.err (!%p2441_p13)
}
  0x47   : > { %s2445_s22 = scalar_lea.vmem %s2934_s25, 256  ;;  %p2453_p7 = scmp.lt.s32.totalorder %s2934_s25, %s2934_s25 }
  0x48   : > { %p2446_p0 = scmp.ne.s32.totalorder %s2934_s25, %s2445_s22  ;;  %p2454_p9 = scmp.lt.s32.totalorder %s2445_s22, %s2445_s22 }
  0x4a   : > { %p2448_p2 = pnand %p2446_p0, %p2946_p8  ;;  %p2455_p5 = por %p2454_p9, %p2453_p7 }
  0x4c   : > { %p2449_p4 = pneg %p2448_p2 }
  0x4e   : > { %p2456_p10 = pnand %p2455_p5, %p2449_p4 }
  0x50   : > { %2459 = shalt.err (!%p2456_p10)
}
  0x51   : > { %2251 = dma.hbm_to_vmem [thread:$0]  (!%p2930_p6), %s3598_s7, 256, %s2934_s25, [#allocation6], %s2807_s29, %s2807_s29, %s2808_s30  }
  0x52   : > { %s3599_s4 = sld [smem:[#allocation38_spill]] }
  0x58   : > { %s2460_s11 = scalar_lea.hbm %s3599_s4, 16 }
  0x59   : > { %p2461_p11 = scmp.ne.s32.totalorder %s3599_s4, %s2460_s11  ;;  %p2467_p0 = scmp.lt.u32.totalorder %s2460_s11, %s3599_s4 }
  0x5b   : > { %p2463_p12 = pnand %p2461_p11, %p2946_p8 }
  0x5d   : > { %p2464_p13 = pneg %p2463_p12 }
  0x5f   : > { %p2469_p2 = pnand %p2467_p0, %p2464_p13 }
  0x61   : > { %2472 = shalt.err (!%p2469_p2)
}
  0x62   : > { %s2473_s22 = scalar_lea.vmem %s348_s27, 16  ;;  %s2480_s25 = scalar_lea.vmem %s348_s27, 32 }
  0x63   : > { %p2474_p4 = scmp.ne.s32.totalorder %s348_s27, %s2473_s22  ;;  %p2481_p5 = scmp.lt.s32.totalorder %s348_s27, %s348_s27 }
  0x64   : > { %p2482_p10 = scmp.lt.s32.totalorder %s2480_s25, %s2473_s22 }
  0x65   : > { %p2476_p7 = pnand %p2474_p4, %p2946_p8 }
  0x66   : > { %p2483_p1 = por %p2482_p10, %p2481_p5 }
  0x67   : > { %p2477_p9 = pneg %p2476_p7 }
  0x69   : > { %p2484_p3 = pnand %p2483_p1, %p2477_p9 }
  0x6b   : > { %2487 = shalt.err (!%p2484_p3)
}
  0x6c   : > { %2245 = dma.hbm_to_vmem [thread:$0]  (!%p2930_p6), %s3599_s4, 16, %s348_s27, [#allocation9]  }
  0x6d   : > { %s1925_s9 = sadd.s32 4294967294, %s2802_s18   ;;  %s47_s10 = sadd.s32 1, %s2798_s17 }
  0x6e   : > { %s56_s16 = sadd.s32 1, %s2790_s15  ;;  %p49_p1 = scmp.ge.s32.totalorder %s47_s10, 2 }
  0x6f   : > { %p63_p3 = scmp.ne.s32.totalorder %s2790_s15, %s2786_s14  ;;  %p64_p11 = scmp.eq.s32.totalorder %s2802_s18, 0 }
  0x70   : > { %p69_p12 = scmp.ne.s32.totalorder %s2786_s14, %s2782_s13  ;;  %s3649_s10 = smov (%p49_p1, %s47_s10), 0 }
  0x71   : > { %3600 = sst [smem:[#allocation32_spill]] %s3649_s10  ;;  %p3019_p13 = por %p64_p11, %p63_p3 }
  0x72   : > { %p3602_p0 = scmp.eq.s32.totalorder %s2914_s19, 0  ;;  %s51_s11 = ssub.s32 %s2798_s17, %s3649_s10 }
  0x73   : > { %p280_p4 = scmp.eq.s32.totalorder %s2914_s19, 1  ;;  %p54_p7 = scmp.eq.s32.totalorder %s51_s11, 0 }
  0x74   : > { %p3025_p2 = por %p3602_p0, %p69_p12  ;;  %p286_p9 = scmp.eq.s32.totalorder %s1925_s9, 1 }
  0x75   : > { %p3032_p5 = por %p280_p4, %p63_p3  ;;  %p2280_p10 = scmp.lt.s32.totalorder %s2802_s18, 2 }
  0x76   : > { %s3603_s27 = scalar_select %p3025_p2, 1, 0 }
  0x77   : > { %s3604_s12 = scalar_select %p3032_p5, 1, 0 }
  0x78   : > { %s3038_s24 = scalar_select %p54_p7, %s2790_s15, %s56_s16  }
  0x79   : > { %p3040_p1 = por %p286_p9, %p69_p12  ;;  %s3567_s22 = sand.u32 1, %s2790_s15  }
  0x7a   : > { %3605 = sst [smem:[#allocation33_spill]] %s3038_s24  ;;  %s3048_s25 = sshll.u32 %s3567_s22, 2 }
  0x7b   : > { %s3606_s26 = scalar_select %p3040_p1, 1, 0 }
  0x7c   : > { %s3051_s29 = sshll.u32 %s2798_s17, 6  ;;  %s3608_s0 = sld [smem:[#allocation35_spill]] }
  0x7d   : > { %3607 = sst [smem:[#allocation34_spill]] %s3606_s26  ;;  %s397_s16 = scalar_lea.vmem [#allocation2], %s3048_s25 }
  0x7e   : > { %s405_s3 = sshll.u32 %s397_s16, 4  ;;  %p3062_p3 = pnand %p2280_p10, %p3019_p13  ;;  %s3066_s3 = int_to_ptr.vmem [resolvable:$true] %s405_s3 }
  0x7f   : > { %s3610_s22 = sand.u32 1, %s2802_s18  }
  0x80   : > { %s3609_s28 = scalar_select %p3062_p3, 1, 0 }
  0x81   : > { %s3070_s4 = scalar_lea.sflag [#allocation3], %s3610_s22  ;;  %p3076_p12 = pneg %p3062_p3 }
  0x82   : > { %s3057_s11 = scalar_lea.hbm %s3608_s0, %s3051_s29  ;;  %s2493_s7 = scalar_lea.hbm %s3608_s0, 128 }
  0x83   : > { %s2488_s30 = scalar_lea.hbm %s3057_s11, 64  ;;  %p2494_p4 = scmp.lt.u32.totalorder %s3057_s11, %s3608_s0 }
  0x84   : > { %p2489_p11 = scmp.ne.s32.totalorder %s3057_s11, %s2488_s30  ;;  %p2495_p7 = scmp.lt.u32.totalorder %s2493_s7, %s2488_s30 }
  0x85   : > { %s3611_s9 = scalar_select %p3076_p12, 1, 0 }
  0x86   : > { %p2491_p0 = pnand %p3076_p12, %p2489_p11  ;;  %p2496_p9 = por %p2495_p7, %p2494_p4 }
  0x87   : > { %p2497_p10 = scmp.lt.u32.totalorder %s2488_s30, %s3057_s11 }
  0x88   : > { %p2492_p13 = pneg %p2491_p0 }
  0x89   : > { %p2498_p1 = por %p2497_p10, %p2496_p9 }
  0x8b   : > { %p2499_p5 = pnand %p2498_p1, %p2492_p13 }
  0x8d   : > { %2502 = shalt.err (!%p2499_p5)
}
  0x8e   : > { %s2503_s22 = scalar_lea.vmem %s3066_s3, 64  ;;  %s2809_s20 = smov [#allocation2]  }
  0x8f   : > { %p2504_p11 = scmp.ne.s32.totalorder %s3066_s3, %s2503_s22  ;;  %s2508_s16 = sshll.u32 %s2809_s20, 4  ;;  %s2509_s16 = int_to_ptr.vmem [resolvable:$false] %s2508_s16 }
  0x90   : > { %s2510_s10 = scalar_lea.vmem %s2509_s16, 128  ;;  %p2511_p6 = scmp.lt.s32.totalorder %s3066_s3, %s2509_s16 }
  0x91   : > { %p2506_p0 = pnand %p2504_p11, %p3076_p12  ;;  %p2512_p8 = scmp.lt.s32.totalorder %s2510_s10, %s2503_s22 }
  0x93   : > { %p2507_p2 = pneg %p2506_p0  ;;  %p2513_p4 = por %p2512_p8, %p2511_p6 }
  0x95   : > { %p2514_p7 = pnand %p2513_p4, %p2507_p2 }
  0x97   : > { %2517 = shalt.err (!%p2514_p7)
}
  0x98   : > { %2258 = dma.hbm_to_vmem [thread:$0]  (!%p3062_p3), %s3057_s11, 64, %s3066_s3, %s3070_s4  }
  0x99   : > { %s3612_s1 = sld [smem:[#allocation36_spill]]  ;;  %s416_s22 = scalar_lea.vmem [#allocation5], %s3048_s25 }
  0x9a   : > { %s423_s20 = sshll.u32 %s416_s22, 4  ;;  %s3613_s16 = sand.u32 1, %s2802_s18   ;;  %s424_s20 = int_to_ptr.vmem [resolvable:$true] %s423_s20 }
  0x9b   : > { %s3109_s10 = scalar_lea.sflag [#allocation6], %s3613_s16 }
  0x9f   : > { %s3104_s30 = scalar_lea.hbm %s3612_s1, %s3051_s29  ;;  %s2523_s7 = scalar_lea.hbm %s3612_s1, 128 }
  0xa0   : > { %s2518_s0 = scalar_lea.hbm %s3104_s30, 64  ;;  %p2524_p5 = scmp.lt.u32.totalorder %s3104_s30, %s3612_s1 }
  0xa1   : > { %p2519_p6 = scmp.ne.s32.totalorder %s3104_s30, %s2518_s0  ;;  %p2525_p1 = scmp.lt.u32.totalorder %s2523_s7, %s2518_s0 }
  0xa2   : > { %p2527_p9 = scmp.lt.u32.totalorder %s2518_s0, %s3104_s30 }
  0xa3   : > { %p2521_p8 = pnand %p2519_p6, %p3076_p12  ;;  %p2526_p13 = por %p2525_p1, %p2524_p5 }
  0xa5   : > { %p2522_p2 = pneg %p2521_p8  ;;  %p2528_p10 = por %p2527_p9, %p2526_p13 }
  0xa7   : > { %p2529_p11 = pnand %p2528_p10, %p2522_p2 }
  0xa9   : > { %2532 = shalt.err (!%p2529_p11)
}
  0xaa   : > { %s2533_s22 = scalar_lea.vmem %s424_s20, 64  ;;  %s2810_s16 = smov [#allocation5]  }
  0xab   : > { %p2534_p0 = scmp.ne.s32.totalorder %s424_s20, %s2533_s22  ;;  %s2538_s18 = sshll.u32 %s2810_s16, 4  ;;  %s2539_s18 = int_to_ptr.vmem [resolvable:$false] %s2538_s18 }
  0xac   : > { %s2540_s3 = scalar_lea.vmem %s2539_s18, 128  ;;  %p2541_p6 = scmp.lt.s32.totalorder %s424_s20, %s2539_s18 }
  0xad   : > { %p2536_p4 = pnand %p2534_p0, %p3076_p12  ;;  %p2542_p8 = scmp.lt.s32.totalorder %s2540_s3, %s2533_s22 }
  0xaf   : > { %p2537_p7 = pneg %p2536_p4  ;;  %p2543_p3 = por %p2542_p8, %p2541_p6 }
  0xb1   : > { %p2544_p1 = pnand %p2543_p3, %p2537_p7 }
  0xb3   : > { %2547 = shalt.err (!%p2544_p1)
}
  0xb4   : > { %p3614_p5 = scmp.ne.s32.totalorder %s3609_s28, 0  ;;  %s2811_s0 = smov [#allocation11]  }
  0xb5   : > { %s358_s26 = sshll.u32 %s2811_s0, 4  ;;  %s2812_s11 = smov [#allocation15]   ;;  %s359_s26 = int_to_ptr.vmem [resolvable:$true] %s358_s26 }
  0xb6   : > { %2261 = dma.hbm_to_vmem [thread:$0]  (!%p3614_p5), %s3104_s30, 64, %s424_s20, %s3109_s10  }
  0xb7   : > { %s382_s7 = sshll.u32 %s2812_s11, 4  ;;  %s2548_s1 = scalar_lea.hbm %s3555_s5, 16  ;;  %s383_s7 = int_to_ptr.vmem [resolvable:$true] %s382_s7 }
  0xb8   : > { %p2549_p3 = scmp.ne.s32.totalorder %s3555_s5, %s2548_s1  ;;  %p3615_p2 = scmp.ne.s32.totalorder %s3597_s21, 0 }
  0xb9   : > { %p2555_p10 = scmp.lt.u32.totalorder %s2548_s1, %s3555_s5 }
  0xba   : > { %p2551_p13 = pnand %p2549_p3, %p3615_p2 }
  0xbc   : > { %p2552_p9 = pneg %p2551_p13 }
  0xbe   : > { %p2557_p11 = pnand %p2555_p10, %p2552_p9 }
  0xc0   : > { %2560 = shalt.err (!%p2557_p11)
}
  0xc1   : > { %s2561_s30 = scalar_lea.vmem %s359_s26, 16  ;;  %s2568_s20 = scalar_lea.vmem %s359_s26, 32 }
  0xc2   : > { %p2562_p0 = scmp.ne.s32.totalorder %s359_s26, %s2561_s30  ;;  %p2569_p6 = scmp.lt.s32.totalorder %s359_s26, %s359_s26 }
  0xc3   : > { %p2570_p8 = scmp.lt.s32.totalorder %s2568_s20, %s2561_s30 }
  0xc4   : > { %p2564_p4 = pnand %p2562_p0, %p3615_p2 }
  0xc5   : > { %p2571_p1 = por %p2570_p8, %p2569_p6 }
  0xc6   : > { %p2565_p7 = pneg %p2564_p4 }
  0xc8   : > { %p2572_p5 = pnand %p2571_p1, %p2565_p7 }
  0xca   : > { %2575 = shalt.err (!%p2572_p5)
}
  0xcb   : > { %p3616_p3 = scmp.ne.s32.totalorder %s3595_s23, 0  ;;  %s2576_s24 = scalar_lea.hbm %s3558_s8, 16 }
  0xcc   : > { %p2577_p13 = scmp.ne.s32.totalorder %s3558_s8, %s2576_s24  ;;  %p2583_p5 = scmp.lt.u32.totalorder %s2576_s24, %s3558_s8 }
  0xcd   : > { %2248 = dma.hbm_to_vmem [thread:$0]  (!%p3616_p3), %s3555_s5, 16, %s359_s26, [#allocation12]  }
  0xce   : > { %p2579_p9 = pnand %p2577_p13, %p3615_p2 }
  0xd0   : > { %p2580_p10 = pneg %p2579_p9 }
  0xd2   : > { %p2585_p11 = pnand %p2583_p5, %p2580_p10 }
  0xd4   : > { %2588 = shalt.err (!%p2585_p11)
}
  0xd5   : > { %s2589_s30 = scalar_lea.vmem %s383_s7, 16  ;;  %s2596_s26 = scalar_lea.vmem %s383_s7, 32 }
  0xd6   : > { %p2590_p0 = scmp.ne.s32.totalorder %s383_s7, %s2589_s30  ;;  %p2597_p6 = scmp.lt.s32.totalorder %s383_s7, %s383_s7 }
  0xd7   : > { %p2598_p8 = scmp.lt.s32.totalorder %s2596_s26, %s2589_s30 }
  0xd8   : > { %p2592_p4 = pnand %p2590_p0, %p3615_p2 }
  0xd9   : > { %p2599_p1 = por %p2598_p8, %p2597_p6 }
  0xda   : > { %p2593_p7 = pneg %p2592_p4 }
  0xdc   : > { %p2600_p12 = pnand %p2599_p1, %p2593_p7 }
  0xde   : > { %2603 = shalt.err (!%p2600_p12)
}
  0xdf   : > { %2254 = dma.hbm_to_vmem [thread:$0]  (!%p3616_p3), %s3558_s8, 16, %s383_s7, [#allocation9]  }
  0xe0   : > { %s3169_s1 = scalar_lea.hbm %s3552_s2, %s3051_s29  ;;  %s434_s13 = scalar_lea.vmem [#allocation7], %s3048_s25 }
  0xe1   : > { %s441_s24 = sshll.u32 %s434_s13, 4  ;;  %s3617_s23 = sand.u32 1, %s2790_s15   ;;  %s442_s24 = int_to_ptr.vmem [resolvable:$true] %s441_s24 }
  0xe2   : > { %s3174_s16 = sshll.u32 %s3617_s23, 3  ;;  %s2604_s18 = scalar_lea.hbm %s3169_s1, 64 }
  0xe3   : > { %p2605_p12 = scmp.ne.s32.totalorder %s3169_s1, %s2604_s18  ;;  %p3618_p2 = scmp.ne.s32.totalorder %s3611_s9, 0 }
  0xe4   : > { %s2609_s29 = scalar_lea.hbm %s3552_s2, 128  ;;  %p2610_p9 = scmp.lt.u32.totalorder %s3169_s1, %s3552_s2 }
  0xe5   : > { %p2607_p13 = pnand %p2605_p12, %p3618_p2  ;;  %p2611_p10 = scmp.lt.u32.totalorder %s2609_s29, %s2604_s18 }
  0xe6   : > { %p2613_p11 = scmp.lt.u32.totalorder %s2604_s18, %s3169_s1 }
  0xe7   : > { %p2608_p3 = pneg %p2607_p13  ;;  %p2612_p5 = por %p2611_p10, %p2610_p9 }
  0xe9   : > { %p2614_p0 = por %p2613_p11, %p2612_p5 }
  0xeb   : > { %p2615_p4 = pnand %p2614_p0, %p2608_p3 }
  0xed   : > { %2618 = shalt.err (!%p2615_p4)
}
  0xee   : > { %s2619_s25 = scalar_lea.vmem %s442_s24, 64  ;;  %s2813_s26 = smov [#allocation7]  }
  0xef   : > { %p2620_p7 = scmp.ne.s32.totalorder %s442_s24, %s2619_s25  ;;  %s2624_s20 = sshll.u32 %s2813_s26, 4  ;;  %s2625_s20 = int_to_ptr.vmem [resolvable:$false] %s2624_s20 }
  0xf0   : > { %s2626_s0 = scalar_lea.vmem %s2625_s20, 128  ;;  %p2627_p1 = scmp.lt.s32.totalorder %s442_s24, %s2625_s20 }
  0xf1   : > { %p2622_p6 = pnand %p2620_p7, %p3618_p2  ;;  %p2628_p12 = scmp.lt.s32.totalorder %s2626_s0, %s2619_s25 }
  0xf3   : > { %p2623_p8 = pneg %p2622_p6  ;;  %p2629_p13 = por %p2628_p12, %p2627_p1 }
  0xf5   : > { %p2630_p9 = pnand %p2629_p13, %p2623_p8 }
  0xf7   : > { %2633 = shalt.err (!%p2630_p9)
}
  0xf8   : > { %p3619_p10 = scmp.ne.s32.totalorder %s3609_s28, 0  ;;  %s1940_s11 = sshll.u32 %s2798_s17, 7 }
  0xf9   : > { %s3198_s23 = scalar_lea.hbm %s3556_s6, %s1940_s11  ;;  %s452_s18 = scalar_lea.vmem [#allocation13], %s3174_s16 }
  0xfa   : > { %2264 = dma.hbm_to_vmem [thread:$0]  (!%p3619_p10), %s3169_s1, 64, %s442_s24, %s3109_s10  }
  0xfb   : > { %s460_s7 = sshll.u32 %s452_s18, 4  ;;  %s2634_s22 = scalar_lea.hbm %s3198_s23, 128  ;;  %s461_s7 = int_to_ptr.vmem [resolvable:$true] %s460_s7 }
  0xfc   : > { %p2635_p3 = scmp.ne.s32.totalorder %s3198_s23, %s2634_s22  ;;  %s2639_s1 = scalar_lea.hbm %s3556_s6, 256 }
  0xfd   : > { %p2640_p0 = scmp.lt.u32.totalorder %s3198_s23, %s3556_s6  ;;  %p2641_p4 = scmp.lt.u32.totalorder %s2639_s1, %s2634_s22 }
  0xfe   : > { %p2637_p5 = pnand %p2635_p3, %p3618_p2  ;;  %p2643_p6 = scmp.lt.u32.totalorder %s2634_s22, %s3198_s23 }
  0xff   : > { %p2642_p7 = por %p2641_p4, %p2640_p0 }
 0x100   : > { %p2638_p11 = pneg %p2637_p5 }
 0x101   : > { %p2644_p8 = por %p2643_p6, %p2642_p7 }
 0x103   : > { %p2645_p1 = pnand %p2644_p8, %p2638_p11 }
 0x105   : > { %2648 = shalt.err (!%p2645_p1)
}
 0x106   : > { %s2649_s16 = scalar_lea.vmem %s461_s7, 128  ;;  %s2814_s30 = smov [#allocation13]  }
 0x107   : > { %p2650_p12 = scmp.ne.s32.totalorder %s461_s7, %s2649_s16  ;;  %s2654_s25 = sshll.u32 %s2814_s30, 4  ;;  %s2655_s25 = int_to_ptr.vmem [resolvable:$false] %s2654_s25 }
 0x108   : > { %s2656_s26 = scalar_lea.vmem %s2655_s25, 256  ;;  %p2657_p3 = scmp.lt.s32.totalorder %s461_s7, %s2655_s25 }
 0x109   : > { %p2652_p13 = pnand %p2650_p12, %p3618_p2  ;;  %p2658_p5 = scmp.lt.s32.totalorder %s2656_s26, %s2649_s16 }
 0x10b   : > { %p2653_p9 = pneg %p2652_p13  ;;  %p2659_p10 = por %p2658_p5, %p2657_p3 }
 0x10d   : > { %p2660_p0 = pnand %p2659_p10, %p2653_p9 }
 0x10f   : > { %2663 = shalt.err (!%p2660_p0)
}
 0x110   : > { %p3620_p4 = scmp.ne.s32.totalorder %s3609_s28, 0  ;;  %s3621_s20 = sld [smem:[#allocation31_spill]] }
 0x112   : > { %2267 = dma.hbm_to_vmem [thread:$0]  (!%p3620_p4), %s3198_s23, 128, %s461_s7, %s3070_s4  }
 0x116   : > { %p3622_p11 = scmp.ne.s32.totalorder %s3621_s20, 0 }
 0x117   : > { %s471_s9 = sand.u32 (!%p3622_p11), 1, %s2914_s19   ;;  %s3223_s0 = sand.u32 (!%p3622_p11), 1, %s2786_s14  }
 0x118   : > { %469 = sbr.rel (%p3622_p11) target bundleno = 3702 (0xe76), region = 56  ;;  %s3226_s11 = sshll.u32 (!%p3622_p11), %s3223_s0, 2 }
 0x119   : > { %s472_s21 = scalar_lea.sflag (!%p3622_p11), [#allocation3], %s471_s9  ;;  %s475_s13 = scalar_lea.vmem (!%p3622_p11), [#allocation2], %s3226_s11 }
 0x11a   : > { %p3623_p2 = scmp.ne.s32.totalorder (!%p3622_p11), %s3603_s27, 0 }
 0x11f   : > { %2745 = dma.done.wait (%p3623_p2), %s472_s21, 64  }
 0x120   : > { %2747 = vsyncadd (%p3623_p2), %s472_s21, 4294967232  ;;  %s481_s4 = scalar_lea.sflag [#allocation6], %s471_s9  ;;  %s484_s28 = scalar_lea.vmem [#allocation5], %s3226_s11 }
 0x121   : > { %2749 = dma.done.wait (%p3623_p2), %s481_s4, 128  }
 0x122   : > { %2751 = vsyncadd (%p3623_p2), %s481_s4, 4294967168  ;;  %s493_s23 = scalar_lea.vmem [#allocation7], %s3226_s11  ;;  %p3624_p10 = scmp.eq.s32.totalorder %s2914_s19, 0 }
 0x124   : > { %2753 = dma.done.wait (%p3624_p10), [#allocation9], 4112   ;;  %p3625_p7 = pmov %p3624_p10 }
 0x126   : > { %2755 = vsyncadd (%p3625_p7), [#allocation9], 4294963184  ;;  %p3626_p6 = pmov %p3625_p7 }
 0x128   : > { %2757 = dma.done.wait (%p3626_p6), [#allocation12], 16   ;;  %p3627_p8 = pmov %p3626_p6 }
 0x129   : > { %s1948_s18 = sshll.u32 %s3223_s0, 3 }
 0x12a   : > { %2759 = vsyncadd (%p3627_p8), [#allocation12], 4294967280  ;;  %s3250_s7 = scalar_lea.vmem [#allocation13], %s1948_s18 }
 0x12b   : > { %2761 = dma.done.wait (%p3623_p2), %s472_s21, 128  }
 0x12c   : > { %2763 = vsyncadd (%p3623_p2), %s472_s21, 4294967168  ;;  %p3628_p1 = pmov %p3626_p6 }
 0x12e   : > { %2765 = dma.done.wait (%p3628_p1), [#allocation6], 256   ;;  %p3629_p12 = pmov %p3628_p1 }
 0x12f   : > { %p3630_p13 = pmov %p3628_p1 }
 0x130   : > { %2767 = vsyncadd (%p3629_p12), [#allocation6], 4294967040 }
 0x131   : > { %2769 = dma.done.wait (%p3630_p13), [#allocation9], 16   ;;  %p3631_p9 = pmov %p3628_p1 }
 0x132   : > { %v2815_v0 = vmov 0.0   ;;  %vm2816_vm0 = vmmov 0   ;;  %vm660_vm1 = vcmask 64512   ;;  %v2353_v1 = vld [vmem:[#allocation8] sm:$0xff]   ;;  %v2354_v3 = vld [vmem:[#allocation8 + $0x8] sm:$0xff]   ;;  %v2355_v5 = vld [vmem:[#allocation8 + $0x10] sm:$0xff]  }
 0x133   : > { %2771 = vsyncadd (%p3631_p9), [#allocation9], 4294967280  ;;  %2071 = vmatprep.subr.bf16.mxu0 %v2815_v0  ;;  %2087 = vmatprep.mubr.msk.bf16.mxu0 %vm2816_vm0, %v2815_v0  ;;  %v665_v2 = vsel %vm660_vm1, %v2353_v1, 0  ;;  %v668_v4 = vsel %vm660_vm1, %v2354_v3, 0  ;;  %v580_v6 = vld [vmem:[%s475_s13] sm:$0xf] }
 0x134   : > { %2091 = vmatprep.subr.bf16.mxu1 %v2815_v0  ;;  %2093 = vmatprep.mubr.msk.bf16.mxu1 %vm2816_vm0, %v2815_v0  ;;  %v2356_v7 = vld [vmem:[#allocation8 + $0x18] sm:$0xff]   ;;  %v581_v8 = vunpack.c.l.bf16 %v580_v6  ;;  %v602_v9 = vld [vmem:[%s484_s28] sm:$0xf]  ;;  %v1953_v10 = vld [vmem:[#allocation10] ss:$0 sm:$0xff]  ;;  %v671_v13 = vsel %vm660_vm1, %v2355_v5, 0 }
 0x135   : > { %2072 = vmatpush3.bf16.xpose.msra.mxu0 %v665_v2  ;;  %v736_v11 = vsel %vm660_vm1, %v602_v9, 0  ;;  %v674_v14 = vsel %vm660_vm1, %v2356_v7, 0  ;;  %v2357_v17 = vld [vmem:[#allocation8 + $0x20] sm:$0xff]   ;;  %v2358_v19 = vld [vmem:[#allocation8 + $0x28] sm:$0xff]   ;;  %v2359_v21 = vld [vmem:[#allocation8 + $0x30] sm:$0xff]   ;;  %s2817_s19 = smov 376   ;;  %v3307_v45 = vcombine.low %v602_v9, %v602_v9 }
 0x136   : > { %2073 = vmatprep.subr.bf16.mxu0 %v2815_v0  ;;  %2092 = vmatpush3.bf16.xpose.msra.mxu1 %v736_v11  ;;  %v589_v12 = vadd.f32 %v1953_v10, %v581_v8  ;;  %v677_v18 = vsel %vm660_vm1, %v2357_v17, 0  ;;  %v680_v20 = vsel %vm660_vm1, %v2358_v19, 0  ;;  %v683_v22 = vsel %vm660_vm1, %v2359_v21, 0  ;;  %v1954_v23 = vld [vmem:[#allocation11] ss:$0 sm:$0xff]  ;;  %v2360_v24 = vld [vmem:[#allocation8 + $0x38] sm:$0xff]  }
 0x137   : > { %2097 = vmatprep.subr.bf16.mxu1 %v2815_v0  ;;  %v599_v25 = vadd.f32 %v1954_v23, %v581_v8  ;;  %v686_v26 = vsel %vm660_vm1, %v2360_v24, 0  ;;  %s2818_s27 = smov 120   ;;  %v3313_v46 = vld [vmem:[%s493_s23] sm:$0xf]  ;;  %vm795_vm2 = vcmask 1043456   ;;  %s1952_s22 = sshll.u32 %s3223_s0, 4 }
 0x138   : > { %v590_v15 = vmul.f32 0.17677669, %v589_v12  ;;  %v797_v47 = vsel %vm795_vm2, %v3313_v46, 0  ;;  %v2362_v52 = vld [vmem:[#allocation8 + $0x40] sm:$0xff]   ;;  %vm790_vm3 = vcmask 60416   ;;  %s3326_s29 = scalar_lea.vmem [#allocation17], %s1952_s22 }
 0x139   : > { %v600_v27 = vmul.f32 0.17677669, %v599_v25  ;;  %v903_v56 = vsel %vm660_vm1, %v2362_v52, 0  ;;  %v2363_v58 = vld [vmem:[#allocation8 + $0x48] sm:$0xff]   ;;  %v2364_v60 = vld [vmem:[#allocation8 + $0x50] sm:$0xff]   ;;  %v2365_v62 = vld [vmem:[#allocation8 + $0x58] sm:$0xff]  }
 0x13a   : > { %v3282_v16 = vpack.c.bf16 %v590_v15, %v590_v15  ;;  %v906_v59 = vsel %vm660_vm1, %v2363_v58, 0  ;;  %v909_v61 = vsel %vm660_vm1, %v2364_v60, 0  ;;  %v912_v63 = vsel %vm660_vm1, %v2365_v62, 0  ;;  %v2366_v1 = vld [vmem:[#allocation8 + $0x60] sm:$0xff]   ;;  %v2367_v3 = vld [vmem:[#allocation8 + $0x68] sm:$0xff]   ;;  %v2368_v5 = vld [vmem:[#allocation8 + $0x70] sm:$0xff]  }
 0x13b   : > { %v3298_v28 = vpack.c.bf16 %v600_v27, %v600_v27  ;;  %v915_v2 = vsel %vm660_vm1, %v2366_v1, 0  ;;  %v921_v6 = vsel %vm660_vm1, %v2368_v5, 0  ;;  %v2369_v7 = vld [vmem:[#allocation8 + $0x78] sm:$0xff]   ;;  %s2819_s10 = smov 112   ;;  %s2820_s1 = smov 104   ;;  %vm1586_vm4 = vcmask 130048  }
 0x13c   : > { %v924_v8 = vsel %vm660_vm1, %v2369_v7, 0  ;;  %s2821_s24 = smov 16   ;;  %s2822_s3 = smov 8   ;;  %vm1588_vm5 = vcmask 195584   ;;  %vm1616_vm6 = vcmask 261120  }
 0x13d   : > { %2074 = vmatpush3.bf16.xpose.msra.mxu0 %v668_v4  ;;  %2094 = vmatmul.mubr.msk.bf16.vlgmr.msra.gmra.mrb[0].mxu1 %vm660_vm1, %v3282_v16  ;;  %v918_v4 = vsel %vm660_vm1, %v2367_v3, 0  ;;  %s2823_s16 = smov 24   ;;  %s3632_s30 = sld [smem:[#allocation29_spill]] }
 0x13e   : > { %2075 = vmatprep.subr.bf16.mxu0 %v2815_v0  ;;  %2099 = vmatprep.mubr.msk.bf16.mxu1 %vm2816_vm0, %v2815_v0  ;;  %s1696_s26 = sshll.u32 %s3326_s29, 4  ;;  %s3633_s11 = sld [smem:[#allocation41_spill]]  ;;  %s3467_s26 = int_to_ptr.vmem [resolvable:$true] %s1696_s26 }
 0x13f   : > { %2098 = vmatpush3.bf16.msra.mxu1 %v797_v47  ;;  %v2372_v47 = vld [vmem:[#allocation8 + $0x90] sm:$0xff]   ;;  %s1668_s13 = scalar_lea.sflag [#allocation18], %s3223_s0  ;;  %s2664_s4 = scalar_lea.vmem %s3467_s26, 256 }
 0x140   : > { %2103 = vmatprep.subr.bf16.mxu1 %v2815_v0  ;;  %p2665_p3 = scmp.ne.s32.totalorder %s3467_s26, %s2664_s4  ;;  %p3634_p5 = scmp.ne.s32.totalorder %s3604_s12, 0 }
 0x141   : > { %s2824_s28 = smov [#allocation17]  }
 0x142   : > { %p2666_p0 = pnand %p2665_p3, %p3634_p5  ;;  %s2668_s23 = sshll.u32 %s2824_s28, 4  ;;  %s2669_s23 = int_to_ptr.vmem [resolvable:$false] %s2668_s23 }
 0x143   : > { %s2015_s25 = sshll.u32 %s3632_s30, 8  ;;  %p2671_p11 = scmp.lt.s32.totalorder %s3467_s26, %s2669_s23 }
 0x144   : > { %s3465_s21 = scalar_lea.hbm %s3633_s11, %s2015_s25  ;;  %p2667_p4 = pneg %p2666_p0 }
 0x145   : > { %2076 = vmatpush3.bf16.xpose.msra.mxu0 %v671_v13 }
 0x146   : > { %2077 = vmatprep.subr.bf16.mxu0 %v2815_v0 }
 0x14d   : > { %2078 = vmatpush3.bf16.xpose.msra.mxu0 %v674_v14 }
 0x14e   : > { %2079 = vmatprep.subr.bf16.mxu0 %v2815_v0 }
 0x155   : > { %2080 = vmatpush3.bf16.xpose.msra.mxu0 %v677_v18 }
 0x156   : > { %2081 = vmatprep.subr.bf16.mxu0 %v2815_v0 }
 0x15d   : > { %2082 = vmatpush3.bf16.xpose.msra.mxu0 %v680_v20 }
 0x15e   : > { %2083 = vmatprep.subr.bf16.mxu0 %v2815_v0 }
 0x165   : > { %2084 = vmatpush3.bf16.xpose.msra.mxu0 %v683_v22 }
 0x166   : > { %2085 = vmatprep.subr.bf16.mxu0 %v2815_v0 }
 0x16d   : > { %2086 = vmatpush3.bf16.xpose.msra.mxu0 %v686_v26 }
 0x16e   : > { %2123 = vmatprep.subr.bf16.mxu0 %v2815_v0 }
 0x174   : > { %2088 = vmatmul.mubr.msk.bf16.vlgmr.msra.gmra.mrb[0].mxu0 %vm660_vm1, %v3298_v28 }
 0x175   : > { %2125 = vmatprep.mubr.msk.bf16.mxu0 %vm2816_vm0, %v2815_v0 }
 0x210   : > { %v772_v29 = vpop.f32.mrb[0].mxu1 }
 0x211   : > { %v2095_v30 = vpop.f32.mrb[1].mxu1 }
 0x212   : > { %v775_v31 = vpop.f32.mrb[2].mxu1 }
 0x213   : > { %v2096_v32 = vpop.f32.mrb[3].mxu1  ;;  %v3361_v31 = vcombine.low %v3313_v46, %v3313_v46 }
 0x247   : > { %v722_v33 = vpop.f32.mrb[0].mxu0 }
 0x248   : > { %730 = vrot.lane.b32.xlu0 %v722_v33, %s2817_s19  ;;  %v2089_v34 = vpop.f32.mrb[1].mxu0 }
 0x249   : > { %v725_v35 = vpop.f32.mrb[2].mxu0 }
 0x24a   : > { %v2090_v36 = vpop.f32.mrb[3].mxu0 }
 0x24b   : > { %v2370_v36 = vld [vmem:[#allocation8 + $0x80] sm:$0xff]  }
 0x2ba   : > { %v731_v37 = vpop.permute.xlu0 %730 }
 0x2bb   : > { %v773_v38 = vadd.f32 %v772_v29, %v731_v37 }
 0x2bd   : > { %v778_v39 = vsel %vm660_vm1, %v773_v38, -inf }
 0x2be   : > { %779 = vmax.xlane.f32.xlu0 %v778_v39 }
 0x34b   : > { %v780_v40 = vpop.xlane.xlu0 %779 }
 0x34c   : > { %v781_v41 = vsub.f32 %v773_v38, %v780_v40 }
 0x34e   : > { %v782_v42 = vmul.f32 1.442695, %v781_v41 }
 0x350   : > { %2388 = vpow2.f32 %v782_v42  ;;  %v1152_v42 = vsel %vm660_vm1, %v2370_v36, 0  ;;  %v2383_v36 = vld [vmem:[#allocation8 + $0xe8] sm:$0xff]  }
 0x35a   : > { %v2389_v43 = vpop.eup %2388 }
 0x35b   : > { %v784_v44 = vsel %vm660_vm1, %v2389_v43, 0.0 }
 0x35c   : > { %785 = vadd.xlane.f32.xlu1 %v784_v44 }
 0x36d   : > { %857 = vrot.lane.b32.xlu1 %v3298_v28, %s2818_s27 }
 0x371   : > { %976 = vrot.lane.b32.xlu1 %v3307_v45, %s2818_s27 }
 0x375   : > { %971 = vrot.lane.b32.xlu1 %v3282_v16, %s2818_s27 }
 0x3e9   : > { %v786_v48 = vpop.xlane.xlu1 %785 }
 0x3ea   : > { %2390 = vrcp.f32 %v786_v48  ;;  %v1158_v48 = vsel %vm660_vm1, %v2372_v47, 0 }
 0x3ed   : > { %v858_v49 = vpop.permute.xlu1 %857 }
 0x3f1   : > { %v977_v50 = vpop.permute.xlu1 %976 }
 0x3f2   : > { %v982_v51 = vsel %vm660_vm1, %v977_v50, 0 }
 0x3f3   : > { %2124 = vmatpush3.bf16.xpose.msra.mxu0 %v982_v51  ;;  %v2374_v51 = vld [vmem:[#allocation8 + $0xa0] sm:$0xff]  }
 0x3f4   : > { %v2391_v53 = vpop.eup %2390  ;;  %2129 = vmatprep.subr.bf16.mxu0 %v2815_v0  ;;  %v1164_v52 = vsel %vm660_vm1, %v2374_v51, 0 }
 0x3f5   : > { %v788_v54 = vmul.f32 %v2391_v53, %v2389_v43  ;;  %v972_v57 = vpop.permute.xlu1 %971  ;;  %v2371_v43 = vld [vmem:[#allocation8 + $0x88] sm:$0xff]  }
 0x3f6   : > { %v1155_v46 = vsel %vm660_vm1, %v2371_v43, 0  ;;  %v2375_v53 = vld [vmem:[#allocation8 + $0xa8] sm:$0xff]  }
 0x3f7   : > { %v789_v55 = vpack.c.bf16 %v788_v54, %v788_v54  ;;  %v1167_v54 = vsel %vm660_vm1, %v2375_v53, 0 }
 0x3f9   : > { %791 = vst.msk [vmem:[%s3326_s29] sm:$0xf] %vm790_vm3, %v789_v55  ;;  %2100 = vmatmul.mubr.msk.bf16.vlgmr.msra.gmra.mrb[4].mxu1 %vm660_vm1, %v789_v55  ;;  %v2376_v55 = vld [vmem:[#allocation8 + $0xb0] sm:$0xff]  }
 0x3fa   : > { %2104 = vmatpush3.bf16.xpose.msra.mxu1 %v903_v56  ;;  %2119 = vmatprep.mubr.msk.bf16.mxu1 %vm2816_vm0, %v2815_v0  ;;  %v1170_v56 = vsel %vm660_vm1, %v2376_v55, 0 }
 0x3fb   : > { %2105 = vmatprep.subr.bf16.mxu1 %v2815_v0  ;;  %2126 = vmatmul.mubr.msk.bf16.vlgmr.msra.gmra.mrb[4].mxu0 %vm660_vm1, %v972_v57  ;;  %v2377_v57 = vld [vmem:[#allocation8 + $0xb8] sm:$0xff]  }
 0x3fc   : > { %2131 = vmatprep.mubr.msk.bf16.mxu0 %vm2816_vm0, %v2815_v0  ;;  %v1173_v58 = vsel %vm660_vm1, %v2377_v57, 0 }
 0x402   : > { %2106 = vmatpush3.bf16.xpose.msra.mxu1 %v906_v59 }
 0x403   : > { %2107 = vmatprep.subr.bf16.mxu1 %v2815_v0 }
 0x40a   : > { %2108 = vmatpush3.bf16.xpose.msra.mxu1 %v909_v61 }
 0x40b   : > { %2109 = vmatprep.subr.bf16.mxu1 %v2815_v0 }
 0x412   : > { %2110 = vmatpush3.bf16.xpose.msra.mxu1 %v912_v63 }
 0x413   : > { %2111 = vmatprep.subr.bf16.mxu1 %v2815_v0 }
 0x41a   : > { %2112 = vmatpush3.bf16.xpose.msra.mxu1 %v915_v2 }
 0x41b   : > { %2113 = vmatprep.subr.bf16.mxu1 %v2815_v0 }
 0x422   : > { %2114 = vmatpush3.bf16.xpose.msra.mxu1 %v918_v4 }
 0x423   : > { %2115 = vmatprep.subr.bf16.mxu1 %v2815_v0 }
 0x42a   : > { %2116 = vmatpush3.bf16.xpose.msra.mxu1 %v921_v6 }
 0x42b   : > { %2117 = vmatprep.subr.bf16.mxu1 %v2815_v0 }
 0x432   : > { %2118 = vmatpush3.bf16.xpose.msra.mxu1 %v924_v8 }
 0x433   : > { %2155 = vmatprep.subr.bf16.mxu1 %v2815_v0 }
 0x439   : > { %2120 = vmatmul.mubr.msk.bf16.vlgmr.msra.gmra.mrb[8].mxu1 %vm660_vm1, %v858_v49  ;;  %v2373_v49 = vld [vmem:[#allocation8 + $0x98] sm:$0xff]  }
 0x43a   : > { %2157 = vmatprep.mubr.msk.bf16.mxu1 %vm2816_vm0, %v2815_v0  ;;  %v1161_v50 = vsel %vm660_vm1, %v2373_v49, 0 }
 0x4cc   : > { %v3354_v9 = vpop.f32.mrb[4].mxu1 }
 0x4cd   : > { %v2101_v10 = vpop.f32.mrb[5].mxu1 }
 0x4ce   : > { %v836_v11 = vpop.f32.mrb[6].mxu1  ;;  %v1018_v12 = vpop.f32.mrb[4].mxu0 }
 0x4cf   : > { %v2102_v13 = vpop.f32.mrb[7].mxu1  ;;  %v2127_v14 = vpop.f32.mrb[5].mxu0 }
 0x4d0   : > { %v1021_v15 = vpop.f32.mrb[6].mxu0 }
 0x4d1   : > { %v2128_v17 = vpop.f32.mrb[7].mxu0 }
 0x50c   : > { %v960_v18 = vpop.f32.mrb[8].mxu1 }
 0x50d   : > { %968 = vrot.lane.b32.xlu1 %v960_v18, %s2817_s19  ;;  %v2121_v19 = vpop.f32.mrb[9].mxu1 }
 0x50e   : > { %v963_v20 = vpop.f32.mrb[10].mxu1 }
 0x50f   : > { %v2122_v21 = vpop.f32.mrb[11].mxu1 }
 0x510   : > { %v2378_v21 = vld [vmem:[#allocation8 + $0xc0] sm:$0xff]  }
 0x57f   : > { %v969_v22 = vpop.permute.xlu1 %968 }
 0x580   : > { %v1019_v23 = vadd.f32 %v1018_v12, %v969_v22 }
 0x582   : > { %v1024_v24 = vsel %vm660_vm1, %v1019_v23, -inf }
 0x583   : > { %1025 = vmax.xlane.f32.xlu1 %v1024_v24 }
 0x610   : > { %v1026_v25 = vpop.xlane.xlu1 %1025 }
 0x611   : > { %v1027_v26 = vsub.f32 %v1019_v23, %v1026_v25  ;;  %v1394_v25 = vsel %vm660_vm1, %v2378_v21, 0 }
 0x613   : > { %v1028_v27 = vmul.f32 1.442695, %v1027_v26  ;;  %v2379_v26 = vld [vmem:[#allocation8 + $0xc8] sm:$0xff]  }
 0x615   : > { %2392 = vpow2.f32 %v1028_v27  ;;  %v1397_v27 = vsel %vm660_vm1, %v2379_v26, 0 }
 0x61f   : > { %v2393_v29 = vpop.eup %2392 }
 0x620   : > { %v1030_v30 = vsel %vm660_vm1, %v2393_v29, 0.0 }
 0x621   : > { %1031 = vadd.xlane.f32.xlu0 %v1030_v30 }
 0x637   : > { %1041 = vrot.lane.b32.xlu0 %v3361_v31, %s2818_s27 }
 0x63b   : > { %1106 = vrot.lane.b32.xlu0 %v3298_v28, %s2819_s10 }
 0x63f   : > { %1221 = vrot.lane.b32.xlu0 %v3307_v45, %s2819_s10 }
 0x643   : > { %1219 = vrot.lane.b32.xlu0 %v3282_v16, %s2819_s10 }
 0x6ae   : > { %v1032_v32 = vpop.xlane.xlu0 %1031 }
 0x6af   : > { %2394 = vrcp.f32 %v1032_v32  ;;  %v2381_v32 = vld [vmem:[#allocation8 + $0xd8] sm:$0xff]  }
 0x6b2   : > { %v1042_v33 = vpop.permute.xlu0 %1041 }
 0x6b3   : > { %v1047_v34 = vsel %vm795_vm2, %v1042_v33, 0  ;;  %v1403_v33 = vsel %vm660_vm1, %v2381_v32, 0 }
 0x6b4   : > { %2130 = vmatpush3.bf16.msra.mxu0 %v1047_v34  ;;  %v2382_v34 = vld [vmem:[#allocation8 + $0xe0] sm:$0xff]  }
 0x6b5   : > { %2135 = vmatprep.subr.bf16.mxu0 %v2815_v0 }
 0x6b6   : > { %v1107_v35 = vpop.permute.xlu0 %1106 }
 0x6b9   : > { %v2395_v37 = vpop.eup %2394 }
 0x6ba   : > { %v1034_v38 = vmul.f32 %v2395_v37, %v2393_v29  ;;  %v1222_v39 = vpop.permute.xlu0 %1221  ;;  %v2380_v29 = vld [vmem:[#allocation8 + $0xd0] sm:$0xff]   ;;  %v1409_v37 = vsel %vm660_vm1, %v2383_v36, 0 }
 0x6bb   : > { %v1227_v40 = vsel %vm660_vm1, %v1222_v39, 0  ;;  %v1400_v30 = vsel %vm660_vm1, %v2380_v29, 0 }
 0x6bc   : > { %v1035_v41 = vpack.c.bf16 %v1034_v38, %v1034_v38  ;;  %2156 = vmatpush3.bf16.xpose.msra.mxu1 %v1227_v40  ;;  %v2384_v38 = vld [vmem:[#allocation8 + $0xf0] sm:$0xff]   ;;  %v2385_v40 = vld [vmem:[#allocation8 + $0xf8] sm:$0xff]  }
 0x6bd   : > { %2161 = vmatprep.subr.bf16.mxu1 %v2815_v0  ;;  %v1412_v39 = vsel %vm660_vm1, %v2384_v38, 0 }
 0x6be   : > { %1977 = vst.msk [vmem:[%s3326_s29 + $0x4] sm:$0xf] %vm790_vm3, %v1035_v41  ;;  %2132 = vmatmul.mubr.msk.bf16.vlgmr.msra.gmra.mrb[8].mxu0 %vm660_vm1, %v1035_v41  ;;  %v1220_v44 = vpop.permute.xlu0 %1219  ;;  %v1415_v41 = vsel %vm660_vm1, %v2385_v40, 0 }
 0x6bf   : > { %2136 = vmatpush3.bf16.xpose.msra.mxu0 %v1152_v42  ;;  %2151 = vmatprep.mubr.msk.bf16.mxu0 %vm2816_vm0, %v2815_v0 }
 0x6c0   : > { %2137 = vmatprep.subr.bf16.mxu0 %v2815_v0 }
 0x6c3   : > { %2158 = vmatmul.mubr.msk.bf16.vlgmr.msra.gmra.mrb[12].mxu1 %vm660_vm1, %v1220_v44 }
 0x6c4   : > { %2163 = vmatprep.mubr.msk.bf16.mxu1 %vm2816_vm0, %v2815_v0 }
 0x6c7   : > { %2138 = vmatpush3.bf16.xpose.msra.mxu0 %v1155_v46 }
 0x6c8   : > { %2139 = vmatprep.subr.bf16.mxu0 %v2815_v0 }
 0x6cf   : > { %2140 = vmatpush3.bf16.xpose.msra.mxu0 %v1158_v48 }
 0x6d0   : > { %2141 = vmatprep.subr.bf16.mxu0 %v2815_v0 }
 0x6d7   : > { %2142 = vmatpush3.bf16.xpose.msra.mxu0 %v1161_v50 }
 0x6d8   : > { %2143 = vmatprep.subr.bf16.mxu0 %v2815_v0 }
 0x6df   : > { %2144 = vmatpush3.bf16.xpose.msra.mxu0 %v1164_v52 }
 0x6e0   : > { %2145 = vmatprep.subr.bf16.mxu0 %v2815_v0 }
 0x6e7   : > { %2146 = vmatpush3.bf16.xpose.msra.mxu0 %v1167_v54 }
 0x6e8   : > { %2147 = vmatprep.subr.bf16.mxu0 %v2815_v0 }
 0x6ef   : > { %2148 = vmatpush3.bf16.xpose.msra.mxu0 %v1170_v56 }
 0x6f0   : > { %2149 = vmatprep.subr.bf16.mxu0 %v2815_v0 }
 0x6f7   : > { %2150 = vmatpush3.bf16.xpose.msra.mxu0 %v1173_v58 }
 0x6f8   : > { %2187 = vmatprep.subr.bf16.mxu0 %v2815_v0 }
 0x6fe   : > { %2152 = vmatmul.mubr.msk.bf16.vlgmr.msra.gmra.mrb[12].mxu0 %vm660_vm1, %v1107_v35  ;;  %v1406_v35 = vsel %vm660_vm1, %v2382_v34, 0 }
 0x6ff   : > { %2189 = vmatprep.mubr.msk.bf16.mxu0 %vm2816_vm0, %v2815_v0 }
 0x791   : > { %v3402_v59 = vpop.f32.mrb[8].mxu0 }
 0x792   : > { %v2133_v60 = vpop.f32.mrb[9].mxu0 }
 0x793   : > { %v1086_v61 = vpop.f32.mrb[10].mxu0 }
 0x794   : > { %v2134_v62 = vpop.f32.mrb[11].mxu0 }
 0x796   : > { %v1263_v63 = vpop.f32.mrb[12].mxu1 }
 0x797   : > { %v2159_v1 = vpop.f32.mrb[13].mxu1 }
 0x798   : > { %v1266_v2 = vpop.f32.mrb[14].mxu1 }
 0x799   : > { %v2160_v3 = vpop.f32.mrb[15].mxu1 }
 0x7d1   : > { %v1209_v4 = vpop.f32.mrb[12].mxu0 }
 0x7d2   : > { %1217 = vrot.lane.b32.xlu1 %v1209_v4, %s2817_s19  ;;  %v2153_v5 = vpop.f32.mrb[13].mxu0 }
 0x7d3   : > { %v1212_v6 = vpop.f32.mrb[14].mxu0 }
 0x7d4   : > { %v2154_v7 = vpop.f32.mrb[15].mxu0 }
 0x7d5   : > { %v2386_v7 = vld [vmem:[#allocation14] sm:$0xff]  }
 0x844   : > { %v1218_v8 = vpop.permute.xlu1 %1217 }
 0x845   : > { %v1264_v10 = vadd.f32 %v1263_v63, %v1218_v8  ;;  %v2387_v8 = vld [vmem:[#allocation14 + $0x8] sm:$0xff]  }
 0x847   : > { %v1269_v11 = vsel %vm660_vm1, %v1264_v10, -inf }
 0x848   : > { %1270 = vmax.xlane.f32.xlu0 %v1269_v11 }
 0x85e   : > { %1283 = vrot.lane.b32.xlu0 %v3361_v31, %s2819_s10 }
 0x862   : > { %1463 = vrot.lane.b32.xlu0 %v3307_v45, %s2820_s1 }
 0x866   : > { %1461 = vrot.lane.b32.xlu0 %v3282_v16, %s2820_s1 }
 0x8d5   : > { %v1271_v12 = vpop.xlane.xlu0 %1270 }
 0x8d6   : > { %v1272_v13 = vsub.f32 %v1264_v10, %v1271_v12 }
 0x8d8   : > { %v1273_v14 = vmul.f32 1.442695, %v1272_v13 }
 0x8d9   : > { %v1284_v18 = vpop.permute.xlu0 %1283 }
 0x8da   : > { %2396 = vpow2.f32 %v1273_v14  ;;  %v1289_v19 = vsel %vm795_vm2, %v1284_v18, 0 }
 0x8db   : > { %2162 = vmatpush3.bf16.msra.mxu1 %v1289_v19 }
 0x8dc   : > { %2167 = vmatprep.subr.bf16.mxu1 %v2815_v0 }
 0x8dd   : > { %v1464_v45 = vpop.permute.xlu0 %1463 }
 0x8de   : > { %v1469_v16 = vsel %vm660_vm1, %v1464_v45, 0 }
 0x8df   : > { %2188 = vmatpush3.bf16.xpose.msra.mxu0 %v1469_v16 }
 0x8e0   : > { %2193 = vmatprep.subr.bf16.mxu0 %v2815_v0 }
 0x8e1   : > { %v1462_v20 = vpop.permute.xlu0 %1461 }
 0x8e4   : > { %v2397_v15 = vpop.eup %2396 }
 0x8e5   : > { %v1275_v17 = vsel %vm660_vm1, %v2397_v15, 0.0 }
 0x8e6   : > { %1276 = vadd.xlane.f32.xlu1 %v1275_v17  ;;  %2190 = vmatmul.mubr.msk.bf16.vlgmr.msra.gmra.mrb[16].mxu0 %vm660_vm1, %v1462_v20 }
 0x8e7   : > { %2195 = vmatprep.mubr.msk.bf16.mxu0 %vm2816_vm0, %v2815_v0 }
 0x8f7   : > { %1348 = vrot.lane.b32.xlu1 %v3298_v28, %s2820_s1 }
 0x973   : > { %v1277_v28 = vpop.xlane.xlu1 %1276 }
 0x974   : > { %2398 = vrcp.f32 %v1277_v28 }
 0x977   : > { %v1349_v42 = vpop.permute.xlu1 %1348 }
 0x97e   : > { %v2399_v22 = vpop.eup %2398 }
 0x97f   : > { %v1279_v23 = vmul.f32 %v2399_v22, %v2397_v15 }
 0x981   : > { %v1280_v24 = vpack.c.bf16 %v1279_v23, %v1279_v23 }
 0x983   : > { %1990 = vst.msk [vmem:[%s3326_s29 + $0x8] sm:$0xf] %vm790_vm3, %v1280_v24  ;;  %2164 = vmatmul.mubr.msk.bf16.vlgmr.msra.gmra.mrb[16].mxu1 %vm660_vm1, %v1280_v24 }
 0x984   : > { %2168 = vmatpush3.bf16.xpose.msra.mxu1 %v1394_v25  ;;  %2183 = vmatprep.mubr.msk.bf16.mxu1 %vm2816_vm0, %v2815_v0 }
 0x985   : > { %2169 = vmatprep.subr.bf16.mxu1 %v2815_v0 }
 0x98c   : > { %2170 = vmatpush3.bf16.xpose.msra.mxu1 %v1397_v27 }
 0x98d   : > { %2171 = vmatprep.subr.bf16.mxu1 %v2815_v0 }
 0x994   : > { %2172 = vmatpush3.bf16.xpose.msra.mxu1 %v1400_v30 }
 0x995   : > { %2173 = vmatprep.subr.bf16.mxu1 %v2815_v0 }
 0x99c   : > { %2174 = vmatpush3.bf16.xpose.msra.mxu1 %v1403_v33 }
 0x99d   : > { %2175 = vmatprep.subr.bf16.mxu1 %v2815_v0 }
 0x9a4   : > { %2176 = vmatpush3.bf16.xpose.msra.mxu1 %v1406_v35 }
 0x9a5   : > { %2177 = vmatprep.subr.bf16.mxu1 %v2815_v0 }
 0x9ac   : > { %2178 = vmatpush3.bf16.xpose.msra.mxu1 %v1409_v37 }
 0x9ad   : > { %2179 = vmatprep.subr.bf16.mxu1 %v2815_v0 }
 0x9b4   : > { %2180 = vmatpush3.bf16.xpose.msra.mxu1 %v1412_v39 }
 0x9b5   : > { %2181 = vmatprep.subr.bf16.mxu1 %v2815_v0 }
 0x9b9   : > { %v1505_v43 = vpop.f32.mrb[16].mxu0 }
 0x9ba   : > { %v2191_v44 = vpop.f32.mrb[17].mxu0 }
 0x9bb   : > { %v1508_v46 = vpop.f32.mrb[18].mxu0 }
 0x9bc   : > { %2182 = vmatpush3.bf16.xpose.msra.mxu1 %v1415_v41  ;;  %v2192_v47 = vpop.f32.mrb[19].mxu0 }
 0x9c3   : > { %2184 = vmatmul.mubr.msk.bf16.vlgmr.msra.gmra.mrb[20].mxu1 %vm660_vm1, %v1349_v42 }
 0xa56   : > { %v1325_v48 = vpop.f32.mrb[16].mxu1 }
 0xa57   : > { %v2165_v49 = vpop.f32.mrb[17].mxu1 }
 0xa58   : > { %v1328_v50 = vpop.f32.mrb[18].mxu1 }
 0xa59   : > { %v2166_v51 = vpop.f32.mrb[19].mxu1 }
 0xa96   : > { %v1451_v52 = vpop.f32.mrb[20].mxu1 }
 0xa97   : > { %1459 = vrot.lane.b32.xlu0 %v1451_v52, %s2817_s19  ;;  %v2185_v53 = vpop.f32.mrb[21].mxu1  ;;  %s2670_s19 = scalar_lea.vmem %s2669_s23, 512 }
 0xa98   : > { %v1454_v54 = vpop.f32.mrb[22].mxu1  ;;  %p2672_p2 = scmp.lt.s32.totalorder %s2670_s19, %s2664_s4 }
 0xa99   : > { %v2186_v55 = vpop.f32.mrb[23].mxu1 }
 0xa9a   : > { %p2673_p10 = por %p2672_p2, %p2671_p11 }
 0xa9c   : > { %p2674_p7 = pnand %p2673_p10, %p2667_p4 }
 0xb09   : > { %v1460_v56 = vpop.permute.xlu0 %1459 }
 0xb0a   : > { %v1506_v57 = vadd.f32 %v1505_v43, %v1460_v56 }
 0xb0c   : > { %v1511_v58 = vsel %vm660_vm1, %v1506_v57, -inf }
 0xb0d   : > { %1512 = vmax.xlane.f32.xlu0 %v1511_v58 }
 0xb23   : > { %1525 = vrot.lane.b32.xlu0 %v3361_v31, %s2820_s1 }
 0xb27   : > { %1578 = vrot.lane.b32.xlu0 %v1325_v48, %s2821_s24 }
 0xb9a   : > { %v1513_v60 = vpop.xlane.xlu0 %1512 }
 0xb9b   : > { %v1514_v61 = vsub.f32 %v1506_v57, %v1513_v60 }
 0xb9d   : > { %v1515_v62 = vmul.f32 1.442695, %v1514_v61 }
 0xb9e   : > { %v1526_v63 = vpop.permute.xlu0 %1525 }
 0xb9f   : > { %2400 = vpow2.f32 %v1515_v62  ;;  %v1531_v1 = vsel %vm795_vm2, %v1526_v63, 0 }
 0xba0   : > { %2194 = vmatpush3.bf16.msra.mxu0 %v1531_v1 }
 0xba1   : > { %2199 = vmatprep.subr.bf16.mxu0 %v2815_v0 }
 0xba2   : > { %v1579_v15 = vpop.permute.xlu0 %1578 }
 0xba9   : > { %v2401_v2 = vpop.eup %2400 }
 0xbaa   : > { %v1517_v3 = vsel %vm660_vm1, %v2401_v2, 0.0 }
 0xbab   : > { %1518 = vadd.xlane.f32.xlu1 %v1517_v3 }
 0xbbc   : > { %1574 = vrot.lane.b32.xlu1 %v3402_v59, %s2822_s3 }
 0xc38   : > { %v1519_v31 = vpop.xlane.xlu1 %1518 }
 0xc39   : > { %2402 = vrcp.f32 %v1519_v31 }
 0xc3c   : > { %v1575_v13 = vpop.permute.xlu1 %1574 }
 0xc3d   : > { %v1585_v14 = vsel %vm660_vm1, %v3354_v9, %v1575_v13 }
 0xc43   : > { %v2403_v4 = vpop.eup %2402 }
 0xc44   : > { %v1521_v5 = vmul.f32 %v2403_v4, %v2401_v2 }
 0xc46   : > { %v1522_v6 = vpack.c.bf16 %v1521_v5, %v1521_v5 }
 0xc48   : > { %2002 = vst.msk [vmem:[%s3326_s29 + $0xc] sm:$0xf] %vm790_vm3, %v1522_v6  ;;  %2196 = vmatmul.mubr.msk.bf16.vlgmr.msra.gmra.mrb[20].mxu0 %vm660_vm1, %v1522_v6 }
 0xc49   : > { %2203 = vmatprep.mubr.msk.bf16.mxu0 %vm2816_vm0, %v2815_v0  ;;  %2200 = vmatpush3.bf16.msra.mxu0 %v2386_v7 }
 0xc4a   : > { %2201 = vmatprep.subr.bf16.mxu0 %v2815_v0  ;;  %v1587_v0 = vsel %vm1586_vm4, %v1585_v14, %v1579_v15 }
 0xc4d   : > { %2202 = vmatpush3.bf16.msra.mxu0 %v2387_v8 }
 0xd1b   : > { %v1567_v10 = vpop.f32.mrb[20].mxu0 }
 0xd1c   : > { %1582 = vrot.lane.b32.xlu1 %v1567_v10, %s2823_s16  ;;  %v2197_v59 = vpop.f32.mrb[21].mxu0 }
 0xd1d   : > { %v1570_v11 = vpop.f32.mrb[22].mxu0 }
 0xd1e   : > { %v2198_v12 = vpop.f32.mrb[23].mxu0 }
 0xd8e   : > { %v1583_v17 = vpop.permute.xlu1 %1582 }
 0xd8f   : > { %v1589_v18 = vsel %vm1588_vm5, %v1587_v0, %v1583_v17 }
 0xd90   : > { %v1590_v19 = vpack.c.bf16 %v1589_v18, %v1589_v18 }
 0xd92   : > { %2204 = vmatmul.mubr.msk.bf16.vlgmr.msra.gmra.mrb[24].mxu0 %vm1616_vm6, %v1590_v19 }
 0xd93   : > { %2677 = shalt.err (!%p2674_p7)
}
 0xd94   : > { %s2678_s27 = scalar_lea.hbm %s3465_s21, 256  ;;  %s2682_s10 = scalar_lea.hbm %s3633_s11, 512 }
 0xd95   : > { %p2679_p6 = scmp.ne.s32.totalorder %s3465_s21, %s2678_s27  ;;  %p2683_p12 = scmp.lt.u32.totalorder %s3465_s21, %s3633_s11 }
 0xd96   : > { %p2684_p13 = scmp.lt.u32.totalorder %s2682_s10, %s2678_s27  ;;  %p2686_p3 = scmp.lt.u32.totalorder %s2678_s27, %s3465_s21 }
 0xd97   : > { %p2680_p8 = pnand %p2679_p6, %p3634_p5 }
 0xd98   : > { %p2685_p9 = por %p2684_p13, %p2683_p12 }
 0xd99   : > { %p2681_p1 = pneg %p2680_p8 }
 0xd9a   : > { %p2687_p0 = por %p2686_p3, %p2685_p9 }
 0xd9c   : > { %p2688_p4 = pnand %p2687_p0, %p2681_p1 }
 0xd9e   : > { %2691 = shalt.err (!%p2688_p4)
}
 0xd9f   : > { %s2825_s3 = smov 64   ;;  %s2826_s16 = smov 4   ;;  %v1591_v9 = vld [vmem:[%s3250_s7] sm:$0xff] }
 0xda0   : > { %2236 = dma.vmem_to_hbm [thread:$0]  (%p3634_p5), %s3467_s26, 256, %s3465_s21, %s1668_s13, %s2825_s3, %s2825_s3, %s2826_s16   ;;  %v2004_v45 = vld [vmem:[#allocation15] ss:$0 sm:$0xff] }
 0xda1   : > { %v1599_v16 = vadd.f32 %v2004_v45, %v1591_v9  ;;  %s2010_s25 = sshll.u32 %s3632_s30, 7  ;;  %s571_s20 = scalar_lea.vmem [#allocation16], %s1948_s18 }
 0xda2   : > { %s1682_s9 = sshll.u32 %s571_s20, 4  ;;  %s3635_s23 = sld [smem:[#allocation40_spill]]  ;;  %s3502_s9 = int_to_ptr.vmem [resolvable:$true] %s1682_s9 }
 0xda3   : > { %s1663_s7 = scalar_lea.sflag [#allocation4], %s3223_s0  ;;  %s2692_s18 = scalar_lea.vmem %s3502_s9, 128 }
 0xda4   : > { %p2693_p11 = scmp.ne.s32.totalorder %s3502_s9, %s2692_s18  ;;  %s2827_s30 = smov [#allocation16]  }
 0xda5   : > { %s2696_s26 = sshll.u32 %s2827_s30, 4  ;;  %s2697_s26 = int_to_ptr.vmem [resolvable:$false] %s2696_s26 }
 0xda6   : > { %p2694_p2 = pnand %p2693_p11, %p3634_p5  ;;  %s2698_s21 = scalar_lea.vmem %s2697_s26, 256 }
 0xda7   : > { %p2699_p7 = scmp.lt.s32.totalorder %s3502_s9, %s2697_s26  ;;  %p2700_p6 = scmp.lt.s32.totalorder %s2698_s21, %s2692_s18 }
 0xda8   : > { %s3500_s19 = scalar_lea.hbm %s3635_s23, %s2010_s25  ;;  %p2695_p10 = pneg %p2694_p2 }
 0xda9   : > { %p2701_p8 = por %p2700_p6, %p2699_p7 }
 0xdab   : > { %p2702_p1 = pnand %p2701_p8, %p2695_p10 }
 0xe65   : > { %v1654_v20 = vpop.f32.mrb[24].mxu0 }
 0xe66   : > { %v1660_v28 = vadd.f32 %v1654_v20, %v1599_v16  ;;  %v2205_v21 = vpop.f32.mrb[25].mxu0 }
 0xe67   : > { %v1657_v22 = vpop.f32.mrb[26].mxu0 }
 0xe68   : > { %v2206_v23 = vpop.f32.mrb[27].mxu0  ;;  %1661 = vst.msk [vmem:[%s571_s20] sm:$0xff] %vm1616_vm6, %v1660_v28 }
 0xe69   : > { %2705 = shalt.err (!%p2702_p1)
}
 0xe6a   : > { %s2706_s0 = scalar_lea.hbm %s3500_s19, 128  ;;  %s2710_s22 = scalar_lea.hbm %s3635_s23, 256 }
 0xe6b   : > { %p2707_p12 = scmp.ne.s32.totalorder %s3500_s19, %s2706_s0  ;;  %p2711_p3 = scmp.lt.u32.totalorder %s3500_s19, %s3635_s23 }
 0xe6c   : > { %p2712_p0 = scmp.lt.u32.totalorder %s2710_s22, %s2706_s0  ;;  %p2714_p11 = scmp.lt.u32.totalorder %s2706_s0, %s3500_s19 }
 0xe6d   : > { %p2708_p13 = pnand %p2707_p12, %p3634_p5 }
 0xe6e   : > { %p2713_p4 = por %p2712_p0, %p2711_p3 }
 0xe6f   : > { %p2709_p9 = pneg %p2708_p13 }
 0xe70   : > { %p2715_p2 = por %p2714_p11, %p2713_p4 }
 0xe72   : > { %p2716_p10 = pnand %p2715_p2, %p2709_p9 }
 0xe74   : > { %2719 = shalt.err (!%p2716_p10)
}
 0xe75   : > { %2235 = dma.vmem_to_hbm [thread:$0]  (%p3634_p5), %s3502_s9, 128, %s3500_s19, %s1663_s7  }
 0xe76 PF: > { %s3636_s1 = sld [smem:[#allocation28_spill]]  ;;  %s3637_s24 = sld [smem:[#allocation34_spill]] }
 0xe77   : > { %s3638_s3 = sld [smem:[#allocation30_spill]] }
 0xe7c   : > { %s1711_s16 = sand.u32 1, %s3636_s1   ;;  %p3639_p7 = scmp.ne.s32.totalorder %s3637_s24, 0 }
 0xe7d   : > { %p3640_p6 = scmp.ge.s32.totalorder %s3638_s3, 2  ;;  %s1712_s25 = scalar_lea.sflag [#allocation4], %s1711_s16 }
 0xe7f   : > { %p2269_p8 = pnand %p3640_p6, %p3639_p7 }
 0xe81   : > { %2773 = dma.done.wait (!%p2269_p8), %s1712_s25, 128  }
 0xe82   : > { %2775 = vsyncadd (!%p2269_p8), %s1712_s25, 4294967168  ;;  %s1721_s20 = scalar_lea.sflag [#allocation18], %s1711_s16 }
 0xe83   : > { %2777 = dma.done.wait (!%p2269_p8), %s1721_s20, 256  }
 0xe84   : > { %2779 = vsyncadd (!%p2269_p8), %s1721_s20, 4294967040  ;;  %s35_s18 = sadd.s32 1, %s3638_s3   ;;  %s3641_s12 = sld [smem:[#allocation33_spill]] }
 0xe85   : > { %p32_p1 = scmp.ge.s32.totalorder %s35_s18, 4   ;;  %s3642_s9 = sld [smem:[#allocation32_spill]] }
 0xe86   : > { %s3643_s13 = smov %s2786_s14  ;;  %s3644_s14 = smov %s2790_s15 }
 0xe87   : > { %s3646_s16 = smov %s2798_s17  ;;  %34 = sbr.rel (!%p32_p1) target bundleno = 20 (0x14), region = 179 }
 0xe8a   : > { %s3645_s15 = smov %s3641_s12 }
 0xe8b   : > { %s3647_s17 = smov %s3642_s9 }
 0xe8e   :  { %1726 = vsyncpa [#allocation3], 1 }
 0xe8f   :  { %1728 = vsyncpa [#allocation3 + $0x1], 1 }
 0xe90   :  { %1729 = vsyncpa [#allocation6], 1 }
 0xe91   :  { %1731 = vsyncpa [#allocation6 + $0x1], 1 }
 0xe92   :  { %1732 = vsyncpa [#allocation9], 1 }
 0xe93   :  { %1733 = vsyncpa [#allocation12], 1 }
 0xe94   :  { %1734 = vsyncpa [#allocation4], 1 }
 0xe95   :  { %1736 = vsyncpa [#allocation4 + $0x1], 1 }
 0xe96   :  { %1737 = vsyncpa [#allocation18], 1 }
 0xe97   :  { %1739 = vsyncpa [#allocation18 + $0x1], 1 }

</bundles_post_ra>
